<compile_context>
chip_gen: v6e
topology: v6e:2x2x1
jax: 0.10.0
libtpu: 0.0.40
codegen_flags: <defaults>
</compile_context>

<pallas_src>
import numpy as np
import jax
import jax.numpy as jnp
from jax.experimental import pallas as pl
from jax.experimental.pallas import tpu as pltpu


def attentional_lstm_kernel(x_ref, h0_ref, c0_ref, ctx_ref, maskb_ref,
                            wihT_ref, whhT_ref, bias_ref, win_ref,
                            woutcT_ref, wouthT_ref,
                            out_ref, hout_ref, cout_ref,
                            gx_ref, outs_ref):
    T, B, D = x_ref.shape
    H = h0_ref.shape[1]
    S = ctx_ref.shape[1]

    # ---- hoisted: input projection for all timesteps in one MXU call ----
    # TODO(synk): for very large T*B*4H (v7x 64 MiB VMEM ceiling), chunk this
    # over T into a double-buffered scratch instead of one resident buffer.
    x_all = x_ref[...].reshape(T * B, D)                           # (T*B, D)
    gx = jnp.dot(x_all, wihT_ref[...],
                 preferred_element_type=jnp.float32) + bias_ref[...]
    gx_ref[...] = gx.reshape(T, B, 4 * H)                          # (T, B, 4H)

    # ---- hoisted, time-invariant context projections ----
    ctx_flat = ctx_ref[...].reshape(B * S, H)                      # (B*S, H)
    # score(K, q) = (K W_in) . q  -> key projection once
    ctxP = jnp.dot(ctx_flat, win_ref[...],
                   preferred_element_type=jnp.float32).reshape(B, S, H)
    # wctx @ W_out_c^T == sum_s alpha_s * (ctx_s @ W_out_c^T)  (linearity)
    ctxO = jnp.dot(ctx_flat, woutcT_ref[...],
                   preferred_element_type=jnp.float32).reshape(B, S, H)

    # loop-invariant operands, loaded once outside the recurrence
    whhT = whhT_ref[...]                                           # (H, 4H)
    wouthT = wouthT_ref[...]                                       # (H, H)
    mask_bias = maskb_ref[...]                                     # (B, S)

    def step(t, carry):
        h, c = carry                                               # (B, H) each

        # nn.LSTMCell: only the recurrent matmul remains inside the loop.
        gates = gx_ref[t] + jnp.dot(h, whhT,
                                    preferred_element_type=jnp.float32)  # (B, 4H)
        i_g = jax.nn.sigmoid(gates[:, 0:H])
        f_g = jax.nn.sigmoid(gates[:, H:2 * H])
        g_g = jnp.tanh(gates[:, 2 * H:3 * H])
        o_g = jax.nn.sigmoid(gates[:, 3 * H:4 * H])
        cy = f_g * c + i_g * g_g
        hy = o_g * jnp.tanh(cy)

        # recurrent half of W_out; independent of the attention reductions, so
        # the scheduler can overlap this MXU op with the XLU reduces below.
        rec = jnp.dot(hy, wouthT, preferred_element_type=jnp.float32)     # (B, H)

        # BilinearAttention with pre-projected keys + additive mask bias,
        # softmax normalization deferred to a single (B,1) reciprocal.
        scores = jnp.sum(ctxP * hy[:, None, :], axis=-1) + mask_bias      # (B, S)
        scores = scores - jnp.max(scores, axis=-1, keepdims=True)
        e = jnp.exp(scores)                                               # (B, S)
        denom = jnp.sum(e, axis=-1, keepdims=True)                        # (B, 1)
        wctx_o = jnp.sum(e[:, :, None] * ctxO, axis=1)                    # (B, H)

        # exact reciprocal: approx would accumulate error over the recurrence
        h_tilde = jnp.tanh(wctx_o * (1.0 / denom) + rec)

        outs_ref[t] = h_tilde                                      # leading-axis store
        return (h_tilde, cy)

    # Full unroll only for short sequences; partial unroll keeps scheduler
    # visibility without instruction-memory blowup at large T.
    unroll = True if T <= 16 else 4
    h_fin, c_fin = jax.lax.fori_loop(
        0, T, step, (h0_ref[...], c0_ref[...]), unroll=unroll)

    # final state written exactly once
    hout_ref[...] = h_fin
    cout_ref[...] = c_fin

    # Static in-VMEM relayout (T, B, H) -> (B, T, H): removes the wrapper-side
    # output transpose (a full HBM read+write of the sequence output).
    for ts in range(T):
        out_ref[:, ts, :] = outs_ref[ts]


def attentional_lstm(x, h0, c0, ctx, srcmask, params):
    """x: (B, T, D_in); h0/c0: (B, H); ctx: (B, S, H); srcmask: (B, S) bool."""
    B, T, D = x.shape
    H = h0.shape[1]
    S = ctx.shape[1]

    x_t = jnp.transpose(x, (1, 0, 2)).astype(jnp.float32)         # (T, B, D)

    # One-time, wrapper-side layout plumbing (no per-step cost):
    w_ihT = params['w_ih'].T.astype(jnp.float32)                  # (D, 4H)
    w_hhT = params['w_hh'].T.astype(jnp.float32)                  # (H, 4H)
    bias = (params['b_ih'] + params['b_hh']).reshape(1, 4 * H).astype(jnp.float32)
    w_in = params['w_in'].astype(jnp.float32)                     # (H, H): ctx @ W_in
    w_out_cT = params['w_out'][:, 0:H].T.astype(jnp.float32)      # (H, H)
    w_out_hT = params['w_out'][:, H:2 * H].T.astype(jnp.float32)  # (H, H)
    mask_bias = jnp.where(srcmask, -1e30, 0.0).astype(jnp.float32)  # (B, S)

    # Explicit VMEM budget (largest consumers: gx scratch, sequence buffers).
    fp = 4
    est_bytes = fp * (
        T * B * D                     # x
        + 2 * T * B * 4 * H           # gx scratch + matmul temp
        + 2 * T * B * H               # outs scratch + out
        + 3 * B * S * H               # ctx + ctxP + ctxO
        + (D + H) * 4 * H + 3 * H * H + 4 * H   # weights + bias
        + B * S + 4 * B * H           # mask, h0/c0, final h/c
    )
    vmem_limit = int(min(max(2 * est_bytes, 32 * 1024 * 1024), 64 * 1024 * 1024))

    out, h_out, c_out = pl.pallas_call(
        attentional_lstm_kernel,
        out_shape=(jax.ShapeDtypeStruct((B, T, H), jnp.float32),   # output seq (batch-major)
                   jax.ShapeDtypeStruct((B, H), jnp.float32),      # final h_tilde
                   jax.ShapeDtypeStruct((B, H), jnp.float32)),     # final c
        scratch_shapes=[pltpu.VMEM((T, B, 4 * H), jnp.float32),    # hoisted x-gates
                        pltpu.VMEM((T, B, H), jnp.float32)],       # time-major out buffer
        compiler_params=pltpu.CompilerParams(vmem_limit_bytes=vmem_limit),
    )(x_t, h0.astype(jnp.float32), c0.astype(jnp.float32),
      ctx.astype(jnp.float32), mask_bias,
      w_ihT, w_hhT, bias, w_in, w_out_cT, w_out_hT)

    return out, (h_out, c_out)


def reference(x, h0, c0, ctx, srcmask, params):
    """Pure-JAX reference mirroring the PyTorch forward."""
    B, T, D = x.shape
    H = h0.shape[1]
    h, c = h0, c0
    outs = []
    for i in range(T):
        xt = x[:, i, :]
        gates = (xt @ params['w_ih'].T + params['b_ih']
                 + h @ params['w_hh'].T + params['b_hh'])
        i_g = jax.nn.sigmoid(gates[:, 0:H])
        f_g = jax.nn.sigmoid(gates[:, H:2 * H])
        g_g = jnp.tanh(gates[:, 2 * H:3 * H])
        o_g = jax.nn.sigmoid(gates[:, 3 * H:4 * H])
        cy = f_g * c + i_g * g_g
        hy = o_g * jnp.tanh(cy)
        q = hy @ params['w_in'].T
        scores = jnp.einsum('bsh,bh->bs', ctx, q)
        scores = jnp.where(srcmask, -jnp.inf, scores)
        alpha = jax.nn.softmax(scores, axis=-1)
        wctx = jnp.einsum('bs,bsh->bh', alpha, ctx)
        h_tilde = jnp.tanh(jnp.concatenate([wctx, hy], axis=1) @ params['w_out'].T)
        h, c = h_tilde, cy
        outs.append(h_tilde)
    out = jnp.stack(outs, axis=1)   # (B, T, H)
    return out, h, c


if __name__ == "__main__":
    B, T, D, H, S = 2, 8, 16, 32, 10
    key = jax.random.PRNGKey(0)
    keys = jax.random.split(key, 11)
    bound = 1.0 / np.sqrt(H)

    def u(k, shp):
        return jax.random.uniform(k, shp, jnp.float32, -bound, bound)

    # Deterministic parameter init (shapes from nn.LSTMCell + BilinearAttention).
    params = dict(
        w_ih=u(keys[0], (4 * H, D)),      # LSTMCell weight_ih
        w_hh=u(keys[1], (4 * H, H)),      # LSTMCell weight_hh
        b_ih=u(keys[2], (1, 4 * H)),      # LSTMCell bias_ih
        b_hh=u(keys[3], (1, 4 * H)),      # LSTMCell bias_hh
        w_in=u(keys[4], (H, H)),          # attention in_projection (no bias)
        w_out=u(keys[5], (H, 2 * H)),     # attention out_projection (no bias)
    )

    x = jax.random.normal(keys[6], (B, T, D), jnp.float32)
    h0 = jax.random.normal(keys[7], (B, H), jnp.float32)
    c0 = jax.random.normal(keys[8], (B, H), jnp.float32)
    ctx = jax.random.normal(keys[9], (B, S, H), jnp.float32)
    # Last 2 source positions are padding (True == masked, as in masked_fill).
    srcmask = jnp.concatenate(
        [jnp.zeros((B, S - 2), jnp.bool_), jnp.ones((B, 2), jnp.bool_)], axis=1)

    out, (hN, cN) = attentional_lstm(x, h0, c0, ctx, srcmask, params)
    jax.block_until_ready((out, hN, cN))

    out_r, h_r, c_r = reference(x, h0, c0, ctx, srcmask, params)
    assert np.allclose(np.asarray(out), np.asarray(out_r), atol=1e-4, rtol=1e-4)
    assert np.allclose(np.asarray(hN), np.asarray(h_r), atol=1e-4, rtol=1e-4)
    assert np.allclose(np.asarray(cN), np.asarray(c_r), atol=1e-4, rtol=1e-4)

    print("KERNEL_OK")
</pallas_src>

<mosaic_0001>
module attributes {stable_mosaic.version = 11 : i64} {
  func.func @attentional_lstm_kernel(%arg0: memref<8x2x16xf32, #tpu.memory_space<vmem>>, %arg1: memref<2x32xf32, #tpu.memory_space<vmem>>, %arg2: memref<2x32xf32, #tpu.memory_space<vmem>>, %arg3: memref<2x10x32xf32, #tpu.memory_space<vmem>>, %arg4: memref<2x10xf32, #tpu.memory_space<vmem>>, %arg5: memref<16x128xf32, #tpu.memory_space<vmem>>, %arg6: memref<32x128xf32, #tpu.memory_space<vmem>>, %arg7: memref<1x128xf32, #tpu.memory_space<vmem>>, %arg8: memref<32x32xf32, #tpu.memory_space<vmem>>, %arg9: memref<32x32xf32, #tpu.memory_space<vmem>>, %arg10: memref<32x32xf32, #tpu.memory_space<vmem>>, %arg11: memref<2x8x32xf32, #tpu.memory_space<vmem>>, %arg12: memref<2x32xf32, #tpu.memory_space<vmem>>, %arg13: memref<2x32xf32, #tpu.memory_space<vmem>>, %arg14: memref<8x2x128xf32, #tpu.memory_space<vmem>>, %arg15: memref<8x2x32xf32, #tpu.memory_space<vmem>>) attributes {dimension_semantics = [], scalar_prefetch = 0 : i64, scratch_operands = 2 : i64, tpu.core_type = #tpu.core_type<tc>} {
    %c0 = arith.constant 0 : index
    %c0_0 = arith.constant 0 : index
    %c0_1 = arith.constant 0 : index
    %0 = vector.load %arg0[%c0, %c0_0, %c0_1] : memref<8x2x16xf32, #tpu.memory_space<vmem>>, vector<8x2x16xf32>
    %1 = vector.shape_cast %0 : vector<8x2x16xf32> to vector<16x16xf32>
    %c0_2 = arith.constant 0 : index
    %c0_3 = arith.constant 0 : index
    %2 = vector.load %arg5[%c0_2, %c0_3] : memref<16x128xf32, #tpu.memory_space<vmem>>, vector<16x128xf32>
    %cst = arith.constant dense<0.000000e+00> : vector<16x128xf32>
    %3 = tpu.matmul %1, %2, %cst {dimension_numbers = #tpu.dot_dimension_numbers<[1], [0], [0], [1], [0, 0, 1, 1], [], []>} : vector<16x16xf32>, vector<16x128xf32>, vector<16x128xf32> -> vector<16x128xf32>
    %c0_4 = arith.constant 0 : index
    %c0_5 = arith.constant 0 : index
    %4 = vector.load %arg7[%c0_4, %c0_5] : memref<1x128xf32, #tpu.memory_space<vmem>>, vector<1x128xf32>
    %5 = vector.broadcast %4 : vector<1x128xf32> to vector<16x128xf32>
    %6 = arith.addf %3, %5 : vector<16x128xf32>
    %7 = vector.shape_cast %6 : vector<16x128xf32> to vector<8x2x128xf32>
    %c0_6 = arith.constant 0 : index
    %c0_7 = arith.constant 0 : index
    %c0_8 = arith.constant 0 : index
    %8 = vector.load %arg14[%c0_6, %c0_7, %c0_8] : memref<8x2x128xf32, #tpu.memory_space<vmem>>, vector<8x2x128xf32>
    tpu.vector_store %arg14[%c0_6, %c0_7, %c0_8], %7 {strides = array<i32>} : memref<8x2x128xf32, #tpu.memory_space<vmem>>, vector<8x2x128xf32>,
    %c0_9 = arith.constant 0 : index
    %c0_10 = arith.constant 0 : index
    %c0_11 = arith.constant 0 : index
    %9 = vector.load %arg3[%c0_9, %c0_10, %c0_11] : memref<2x10x32xf32, #tpu.memory_space<vmem>>, vector<2x10x32xf32>
    %10 = vector.shape_cast %9 : vector<2x10x32xf32> to vector<20x32xf32>
    %c0_12 = arith.constant 0 : index
    %c0_13 = arith.constant 0 : index
    %11 = vector.load %arg8[%c0_12, %c0_13] : memref<32x32xf32, #tpu.memory_space<vmem>>, vector<32x32xf32>
    %cst_14 = arith.constant dense<0.000000e+00> : vector<20x32xf32>
    %12 = tpu.matmul %10, %11, %cst_14 {dimension_numbers = #tpu.dot_dimension_numbers<[1], [0], [0], [1], [0, 0, 1, 1], [], []>} : vector<20x32xf32>, vector<32x32xf32>, vector<20x32xf32> -> vector<20x32xf32>
    %13 = vector.shape_cast %12 : vector<20x32xf32> to vector<2x10x32xf32>
    %c0_15 = arith.constant 0 : index
    %c0_16 = arith.constant 0 : index
    %14 = vector.load %arg9[%c0_15, %c0_16] : memref<32x32xf32, #tpu.memory_space<vmem>>, vector<32x32xf32>
    %cst_17 = arith.constant dense<0.000000e+00> : vector<20x32xf32>
    %15 = tpu.matmul %10, %14, %cst_17 {dimension_numbers = #tpu.dot_dimension_numbers<[1], [0], [0], [1], [0, 0, 1, 1], [], []>} : vector<20x32xf32>, vector<32x32xf32>, vector<20x32xf32> -> vector<20x32xf32>
    %16 = vector.shape_cast %15 : vector<20x32xf32> to vector<2x10x32xf32>
    %c0_18 = arith.constant 0 : index
    %c0_19 = arith.constant 0 : index
    %17 = vector.load %arg6[%c0_18, %c0_19] : memref<32x128xf32, #tpu.memory_space<vmem>>, vector<32x128xf32>
    %c0_20 = arith.constant 0 : index
    %c0_21 = arith.constant 0 : index
    %18 = vector.load %arg10[%c0_20, %c0_21] : memref<32x32xf32, #tpu.memory_space<vmem>>, vector<32x32xf32>
    %c0_22 = arith.constant 0 : index
    %c0_23 = arith.constant 0 : index
    %19 = vector.load %arg4[%c0_22, %c0_23] : memref<2x10xf32, #tpu.memory_space<vmem>>, vector<2x10xf32>
    %c0_24 = arith.constant 0 : index
    %c0_25 = arith.constant 0 : index
    %20 = vector.load %arg1[%c0_24, %c0_25] : memref<2x32xf32, #tpu.memory_space<vmem>>, vector<2x32xf32>
    %c0_26 = arith.constant 0 : index
    %c0_27 = arith.constant 0 : index
    %21 = vector.load %arg2[%c0_26, %c0_27] : memref<2x32xf32, #tpu.memory_space<vmem>>, vector<2x32xf32>
    %c0_i32 = arith.constant 0 : i32
    %22 = arith.index_cast %c0_i32 : i32 to index
    %c0_28 = arith.constant 0 : index
    %c0_29 = arith.constant 0 : index
    %23 = vector.load %arg14[%22, %c0_28, %c0_29] : memref<8x2x128xf32, #tpu.memory_space<vmem>>, vector<1x2x128xf32>
    %24 = vector.shape_cast %23 : vector<1x2x128xf32> to vector<2x128xf32>
    %cst_30 = arith.constant dense<0.000000e+00> : vector<2x128xf32>
    %25 = tpu.matmul %20, %17, %cst_30 {dimension_numbers = #tpu.dot_dimension_numbers<[1], [0], [0], [1], [0, 0, 1, 1], [], []>} : vector<2x32xf32>, vector<32x128xf32>, vector<2x128xf32> -> vector<2x128xf32>
    %26 = arith.addf %24, %25 : vector<2x128xf32>
    %27 = vector.extract_strided_slice %26 {offsets = [0, 0], sizes = [2, 32], strides = [1, 1]} : vector<2x128xf32> to vector<2x32xf32>
    %28 = arith.negf %27 : vector<2x32xf32>
    %29 = math.exp %28 : vector<2x32xf32>
    %cst_31 = arith.constant 1.000000e+00 : f32
    %30 = vector.broadcast %cst_31 : f32 to vector<2x32xf32>
    %31 = arith.addf %30, %29 : vector<2x32xf32>
    %32 = arith.divf %30, %31 : vector<2x32xf32>
    %33 = vector.extract_strided_slice %26 {offsets = [0, 32], sizes = [2, 32], strides = [1, 1]} : vector<2x128xf32> to vector<2x32xf32>
    %34 = arith.negf %33 : vector<2x32xf32>
    %35 = math.exp %34 : vector<2x32xf32>
    %cst_32 = arith.constant 1.000000e+00 : f32
    %36 = vector.broadcast %cst_32 : f32 to vector<2x32xf32>
    %37 = arith.addf %36, %35 : vector<2x32xf32>
    %38 = arith.divf %36, %37 : vector<2x32xf32>
    %39 = vector.extract_strided_slice %26 {offsets = [0, 64], sizes = [2, 32], strides = [1, 1]} : vector<2x128xf32> to vector<2x32xf32>
    %40 = math.tanh %39 : vector<2x32xf32>
    %41 = vector.extract_strided_slice %26 {offsets = [0, 96], sizes = [2, 32], strides = [1, 1]} : vector<2x128xf32> to vector<2x32xf32>
    %42 = arith.negf %41 : vector<2x32xf32>
    %43 = math.exp %42 : vector<2x32xf32>
    %cst_33 = arith.constant 1.000000e+00 : f32
    %44 = vector.broadcast %cst_33 : f32 to vector<2x32xf32>
    %45 = arith.addf %44, %43 : vector<2x32xf32>
    %46 = arith.divf %44, %45 : vector<2x32xf32>
    %47 = arith.mulf %38, %21 : vector<2x32xf32>
    %48 = arith.mulf %32, %40 : vector<2x32xf32>
    %49 = arith.addf %47, %48 : vector<2x32xf32>
    %50 = math.tanh %49 : vector<2x32xf32>
    %51 = arith.mulf %46, %50 : vector<2x32xf32>
    %cst_34 = arith.constant dense<0.000000e+00> : vector<2x32xf32>
    %52 = tpu.matmul %51, %18, %cst_34 {dimension_numbers = #tpu.dot_dimension_numbers<[1], [0], [0], [1], [0, 0, 1, 1], [], []>} : vector<2x32xf32>, vector<32x32xf32>, vector<2x32xf32> -> vector<2x32xf32>
    %53 = vector.shape_cast %51 : vector<2x32xf32> to vector<2x1x32xf32>
    %54 = vector.broadcast %53 : vector<2x1x32xf32> to vector<2x10x32xf32>
    %55 = arith.mulf %13, %54 : vector<2x10x32xf32>
    %cst_35 = arith.constant dense<0.000000e+00> : vector<2x10xf32>
    %56 = vector.multi_reduction <add>, %55, %cst_35 [2] : vector<2x10x32xf32> to vector<2x10xf32>
    %57 = arith.addf %56, %19 : vector<2x10xf32>
    %cst_36 = arith.constant dense<0xFF800000> : vector<2xf32>
    %58 = vector.multi_reduction <maximumf>, %57, %cst_36 [1] : vector<2x10xf32> to vector<2xf32>
    %59 = vector.shape_cast %58 : vector<2xf32> to vector<2x1xf32>
    %60 = vector.broadcast %59 : vector<2x1xf32> to vector<2x10xf32>
    %61 = arith.subf %57, %60 : vector<2x10xf32>
    %62 = math.exp %61 : vector<2x10xf32>
    %cst_37 = arith.constant dense<0.000000e+00> : vector<2xf32>
    %63 = vector.multi_reduction <add>, %62, %cst_37 [1] : vector<2x10xf32> to vector<2xf32>
    %64 = vector.shape_cast %63 : vector<2xf32> to vector<2x1xf32>
    %65 = vector.shape_cast %62 : vector<2x10xf32> to vector<2x10x1xf32>
    %66 = vector.broadcast %65 : vector<2x10x1xf32> to vector<2x10x32xf32>
    %67 = arith.mulf %66, %16 : vector<2x10x32xf32>
    %cst_38 = arith.constant dense<0.000000e+00> : vector<2x32xf32>
    %68 = vector.multi_reduction <add>, %67, %cst_38 [1] : vector<2x10x32xf32> to vector<2x32xf32>
    %cst_39 = arith.constant 1.000000e+00 : f32
    %69 = vector.broadcast %cst_39 : f32 to vector<2x1xf32>
    %70 = arith.divf %69, %64 : vector<2x1xf32>
    %71 = vector.broadcast %70 : vector<2x1xf32> to vector<2x32xf32>
    %72 = arith.mulf %68, %71 : vector<2x32xf32>
    %73 = arith.addf %72, %52 : vector<2x32xf32>
    %74 = math.tanh %73 : vector<2x32xf32>
    %75 = arith.index_cast %c0_i32 : i32 to index
    %c0_40 = arith.constant 0 : index
    %c0_41 = arith.constant 0 : index
    %76 = vector.load %arg15[%75, %c0_40, %c0_41] : memref<8x2x32xf32, #tpu.memory_space<vmem>>, vector<1x2x32xf32>
    %77 = vector.shape_cast %76 : vector<1x2x32xf32> to vector<2x32xf32>
    %78 = vector.shape_cast %74 : vector<2x32xf32> to vector<1x2x32xf32>
    tpu.vector_store %arg15[%75, %c0_40, %c0_41], %78 {strides = array<i32>} : memref<8x2x32xf32, #tpu.memory_space<vmem>>, vector<1x2x32xf32>,
    %c1_i32 = arith.constant 1 : i32
    %79 = arith.index_cast %c1_i32 : i32 to index
    %c0_42 = arith.constant 0 : index
    %c0_43 = arith.constant 0 : index
    %80 = vector.load %arg14[%79, %c0_42, %c0_43] : memref<8x2x128xf32, #tpu.memory_space<vmem>>, vector<1x2x128xf32>
    %81 = vector.shape_cast %80 : vector<1x2x128xf32> to vector<2x128xf32>
    %cst_44 = arith.constant dense<0.000000e+00> : vector<2x128xf32>
    %82 = tpu.matmul %74, %17, %cst_44 {dimension_numbers = #tpu.dot_dimension_numbers<[1], [0], [0], [1], [0, 0, 1, 1], [], []>} : vector<2x32xf32>, vector<32x128xf32>, vector<2x128xf32> -> vector<2x128xf32>
    %83 = arith.addf %81, %82 : vector<2x128xf32>
    %84 = vector.extract_strided_slice %83 {offsets = [0, 0], sizes = [2, 32], strides = [1, 1]} : vector<2x128xf32> to vector<2x32xf32>
    %85 = arith.negf %84 : vector<2x32xf32>
    %86 = math.exp %85 : vector<2x32xf32>
    %cst_45 = arith.constant 1.000000e+00 : f32
    %87 = vector.broadcast %cst_45 : f32 to vector<2x32xf32>
    %88 = arith.addf %87, %86 : vector<2x32xf32>
    %89 = arith.divf %87, %88 : vector<2x32xf32>
    %90 = vector.extract_strided_slice %83 {offsets = [0, 32], sizes = [2, 32], strides = [1, 1]} : vector<2x128xf32> to vector<2x32xf32>
    %91 = arith.negf %90 : vector<2x32xf32>
    %92 = math.exp %91 : vector<2x32xf32>
    %cst_46 = arith.constant 1.000000e+00 : f32
    %93 = vector.broadcast %cst_46 : f32 to vector<2x32xf32>
    %94 = arith.addf %93, %92 : vector<2x32xf32>
    %95 = arith.divf %93, %94 : vector<2x32xf32>
    %96 = vector.extract_strided_slice %83 {offsets = [0, 64], sizes = [2, 32], strides = [1, 1]} : vector<2x128xf32> to vector<2x32xf32>
    %97 = math.tanh %96 : vector<2x32xf32>
    %98 = vector.extract_strided_slice %83 {offsets = [0, 96], sizes = [2, 32], strides = [1, 1]} : vector<2x128xf32> to vector<2x32xf32>
    %99 = arith.negf %98 : vector<2x32xf32>
    %100 = math.exp %99 : vector<2x32xf32>
    %cst_47 = arith.constant 1.000000e+00 : f32
    %101 = vector.broadcast %cst_47 : f32 to vector<2x32xf32>
    %102 = arith.addf %101, %100 : vector<2x32xf32>
    %103 = arith.divf %101, %102 : vector<2x32xf32>
    %104 = arith.mulf %95, %49 : vector<2x32xf32>
    %105 = arith.mulf %89, %97 : vector<2x32xf32>
    %106 = arith.addf %104, %105 : vector<2x32xf32>
    %107 = math.tanh %106 : vector<2x32xf32>
    %108 = arith.mulf %103, %107 : vector<2x32xf32>
    %cst_48 = arith.constant dense<0.000000e+00> : vector<2x32xf32>
    %109 = tpu.matmul %108, %18, %cst_48 {dimension_numbers = #tpu.dot_dimension_numbers<[1], [0], [0], [1], [0, 0, 1, 1], [], []>} : vector<2x32xf32>, vector<32x32xf32>, vector<2x32xf32> -> vector<2x32xf32>
    %110 = vector.shape_cast %108 : vector<2x32xf32> to vector<2x1x32xf32>
    %111 = vector.broadcast %110 : vector<2x1x32xf32> to vector<2x10x32xf32>
    %112 = arith.mulf %13, %111 : vector<2x10x32xf32>
    %cst_49 = arith.constant dense<0.000000e+00> : vector<2x10xf32>
    %113 = vector.multi_reduction <add>, %112, %cst_49 [2] : vector<2x10x32xf32> to vector<2x10xf32>
    %114 = arith.addf %113, %19 : vector<2x10xf32>
    %cst_50 = arith.constant dense<0xFF800000> : vector<2xf32>
    %115 = vector.multi_reduction <maximumf>, %114, %cst_50 [1] : vector<2x10xf32> to vector<2xf32>
    %116 = vector.shape_cast %115 : vector<2xf32> to vector<2x1xf32>
    %117 = vector.broadcast %116 : vector<2x1xf32> to vector<2x10xf32>
    %118 = arith.subf %114, %117 : vector<2x10xf32>
    %119 = math.exp %118 : vector<2x10xf32>
    %cst_51 = arith.constant dense<0.000000e+00> : vector<2xf32>
    %120 = vector.multi_reduction <add>, %119, %cst_51 [1] : vector<2x10xf32> to vector<2xf32>
    %121 = vector.shape_cast %120 : vector<2xf32> to vector<2x1xf32>
    %122 = vector.shape_cast %119 : vector<2x10xf32> to vector<2x10x1xf32>
    %123 = vector.broadcast %122 : vector<2x10x1xf32> to vector<2x10x32xf32>
    %124 = arith.mulf %123, %16 : vector<2x10x32xf32>
    %cst_52 = arith.constant dense<0.000000e+00> : vector<2x32xf32>
    %125 = vector.multi_reduction <add>, %124, %cst_52 [1] : vector<2x10x32xf32> to vector<2x32xf32>
    %cst_53 = arith.constant 1.000000e+00 : f32
    %126 = vector.broadcast %cst_53 : f32 to vector<2x1xf32>
    %127 = arith.divf %126, %121 : vector<2x1xf32>
    %128 = vector.broadcast %127 : vector<2x1xf32> to vector<2x32xf32>
    %129 = arith.mulf %125, %128 : vector<2x32xf32>
    %130 = arith.addf %129, %109 : vector<2x32xf32>
    %131 = math.tanh %130 : vector<2x32xf32>
    %132 = arith.index_cast %c1_i32 : i32 to index
    %c0_54 = arith.constant 0 : index
    %c0_55 = arith.constant 0 : index
    %133 = vector.load %arg15[%132, %c0_54, %c0_55] : memref<8x2x32xf32, #tpu.memory_space<vmem>>, vector<1x2x32xf32>
    %134 = vector.shape_cast %133 : vector<1x2x32xf32> to vector<2x32xf32>
    %135 = vector.shape_cast %131 : vector<2x32xf32> to vector<1x2x32xf32>
    tpu.vector_store %arg15[%132, %c0_54, %c0_55], %135 {strides = array<i32>} : memref<8x2x32xf32, #tpu.memory_space<vmem>>, vector<1x2x32xf32>,
    %c2_i32 = arith.constant 2 : i32
    %136 = arith.index_cast %c2_i32 : i32 to index
    %c0_56 = arith.constant 0 : index
    %c0_57 = arith.constant 0 : index
    %137 = vector.load %arg14[%136, %c0_56, %c0_57] : memref<8x2x128xf32, #tpu.memory_space<vmem>>, vector<1x2x128xf32>
    %138 = vector.shape_cast %137 : vector<1x2x128xf32> to vector<2x128xf32>
    %cst_58 = arith.constant dense<0.000000e+00> : vector<2x128xf32>
    %139 = tpu.matmul %131, %17, %cst_58 {dimension_numbers = #tpu.dot_dimension_numbers<[1], [0], [0], [1], [0, 0, 1, 1], [], []>} : vector<2x32xf32>, vector<32x128xf32>, vector<2x128xf32> -> vector<2x128xf32>
    %140 = arith.addf %138, %139 : vector<2x128xf32>
    %141 = vector.extract_strided_slice %140 {offsets = [0, 0], sizes = [2, 32], strides = [1, 1]} : vector<2x128xf32> to vector<2x32xf32>
    %142 = arith.negf %141 : vector<2x32xf32>
    %143 = math.exp %142 : vector<2x32xf32>
    %cst_59 = arith.constant 1.000000e+00 : f32
    %144 = vector.broadcast %cst_59 : f32 to vector<2x32xf32>
    %145 = arith.addf %144, %143 : vector<2x32xf32>
    %146 = arith.divf %144, %145 : vector<2x32xf32>
    %147 = vector.extract_strided_slice %140 {offsets = [0, 32], sizes = [2, 32], strides = [1, 1]} : vector<2x128xf32> to vector<2x32xf32>
    %148 = arith.negf %147 : vector<2x32xf32>
    %149 = math.exp %148 : vector<2x32xf32>
    %cst_60 = arith.constant 1.000000e+00 : f32
    %150 = vector.broadcast %cst_60 : f32 to vector<2x32xf32>
    %151 = arith.addf %150, %149 : vector<2x32xf32>
    %152 = arith.divf %150, %151 : vector<2x32xf32>
    %153 = vector.extract_strided_slice %140 {offsets = [0, 64], sizes = [2, 32], strides = [1, 1]} : vector<2x128xf32> to vector<2x32xf32>
    %154 = math.tanh %153 : vector<2x32xf32>
    %155 = vector.extract_strided_slice %140 {offsets = [0, 96], sizes = [2, 32], strides = [1, 1]} : vector<2x128xf32> to vector<2x32xf32>
    %156 = arith.negf %155 : vector<2x32xf32>
    %157 = math.exp %156 : vector<2x32xf32>
    %cst_61 = arith.constant 1.000000e+00 : f32
    %158 = vector.broadcast %cst_61 : f32 to vector<2x32xf32>
    %159 = arith.addf %158, %157 : vector<2x32xf32>
    %160 = arith.divf %158, %159 : vector<2x32xf32>
    %161 = arith.mulf %152, %106 : vector<2x32xf32>
    %162 = arith.mulf %146, %154 : vector<2x32xf32>
    %163 = arith.addf %161, %162 : vector<2x32xf32>
    %164 = math.tanh %163 : vector<2x32xf32>
    %165 = arith.mulf %160, %164 : vector<2x32xf32>
    %cst_62 = arith.constant dense<0.000000e+00> : vector<2x32xf32>
    %166 = tpu.matmul %165, %18, %cst_62 {dimension_numbers = #tpu.dot_dimension_numbers<[1], [0], [0], [1], [0, 0, 1, 1], [], []>} : vector<2x32xf32>, vector<32x32xf32>, vector<2x32xf32> -> vector<2x32xf32>
    %167 = vector.shape_cast %165 : vector<2x32xf32> to vector<2x1x32xf32>
    %168 = vector.broadcast %167 : vector<2x1x32xf32> to vector<2x10x32xf32>
    %169 = arith.mulf %13, %168 : vector<2x10x32xf32>
    %cst_63 = arith.constant dense<0.000000e+00> : vector<2x10xf32>
    %170 = vector.multi_reduction <add>, %169, %cst_63 [2] : vector<2x10x32xf32> to vector<2x10xf32>
    %171 = arith.addf %170, %19 : vector<2x10xf32>
    %cst_64 = arith.constant dense<0xFF800000> : vector<2xf32>
    %172 = vector.multi_reduction <maximumf>, %171, %cst_64 [1] : vector<2x10xf32> to vector<2xf32>
    %173 = vector.shape_cast %172 : vector<2xf32> to vector<2x1xf32>
    %174 = vector.broadcast %173 : vector<2x1xf32> to vector<2x10xf32>
    %175 = arith.subf %171, %174 : vector<2x10xf32>
    %176 = math.exp %175 : vector<2x10xf32>
    %cst_65 = arith.constant dense<0.000000e+00> : vector<2xf32>
    %177 = vector.multi_reduction <add>, %176, %cst_65 [1] : vector<2x10xf32> to vector<2xf32>
    %178 = vector.shape_cast %177 : vector<2xf32> to vector<2x1xf32>
    %179 = vector.shape_cast %176 : vector<2x10xf32> to vector<2x10x1xf32>
    %180 = vector.broadcast %179 : vector<2x10x1xf32> to vector<2x10x32xf32>
    %181 = arith.mulf %180, %16 : vector<2x10x32xf32>
    %cst_66 = arith.constant dense<0.000000e+00> : vector<2x32xf32>
    %182 = vector.multi_reduction <add>, %181, %cst_66 [1] : vector<2x10x32xf32> to vector<2x32xf32>
    %cst_67 = arith.constant 1.000000e+00 : f32
    %183 = vector.broadcast %cst_67 : f32 to vector<2x1xf32>
    %184 = arith.divf %183, %178 : vector<2x1xf32>
    %185 = vector.broadcast %184 : vector<2x1xf32> to vector<2x32xf32>
    %186 = arith.mulf %182, %185 : vector<2x32xf32>
    %187 = arith.addf %186, %166 : vector<2x32xf32>
    %188 = math.tanh %187 : vector<2x32xf32>
    %189 = arith.index_cast %c2_i32 : i32 to index
    %c0_68 = arith.constant 0 : index
    %c0_69 = arith.constant 0 : index
    %190 = vector.load %arg15[%189, %c0_68, %c0_69] : memref<8x2x32xf32, #tpu.memory_space<vmem>>, vector<1x2x32xf32>
    %191 = vector.shape_cast %190 : vector<1x2x32xf32> to vector<2x32xf32>
    %192 = vector.shape_cast %188 : vector<2x32xf32> to vector<1x2x32xf32>
    tpu.vector_store %arg15[%189, %c0_68, %c0_69], %192 {strides = array<i32>} : memref<8x2x32xf32, #tpu.memory_space<vmem>>, vector<1x2x32xf32>,
    %c3_i32 = arith.constant 3 : i32
    %193 = arith.index_cast %c3_i32 : i32 to index
    %c0_70 = arith.constant 0 : index
    %c0_71 = arith.constant 0 : index
    %194 = vector.load %arg14[%193, %c0_70, %c0_71] : memref<8x2x128xf32, #tpu.memory_space<vmem>>, vector<1x2x128xf32>
    %195 = vector.shape_cast %194 : vector<1x2x128xf32> to vector<2x128xf32>
    %cst_72 = arith.constant dense<0.000000e+00> : vector<2x128xf32>
    %196 = tpu.matmul %188, %17, %cst_72 {dimension_numbers = #tpu.dot_dimension_numbers<[1], [0], [0], [1], [0, 0, 1, 1], [], []>} : vector<2x32xf32>, vector<32x128xf32>, vector<2x128xf32> -> vector<2x128xf32>
    %197 = arith.addf %195, %196 : vector<2x128xf32>
    %198 = vector.extract_strided_slice %197 {offsets = [0, 0], sizes = [2, 32], strides = [1, 1]} : vector<2x128xf32> to vector<2x32xf32>
    %199 = arith.negf %198 : vector<2x32xf32>
    %200 = math.exp %199 : vector<2x32xf32>
    %cst_73 = arith.constant 1.000000e+00 : f32
    %201 = vector.broadcast %cst_73 : f32 to vector<2x32xf32>
    %202 = arith.addf %201, %200 : vector<2x32xf32>
    %203 = arith.divf %201, %202 : vector<2x32xf32>
    %204 = vector.extract_strided_slice %197 {offsets = [0, 32], sizes = [2, 32], strides = [1, 1]} : vector<2x128xf32> to vector<2x32xf32>
    %205 = arith.negf %204 : vector<2x32xf32>
    %206 = math.exp %205 : vector<2x32xf32>
    %cst_74 = arith.constant 1.000000e+00 : f32
    %207 = vector.broadcast %cst_74 : f32 to vector<2x32xf32>
    %208 = arith.addf %207, %206 : vector<2x32xf32>
    %209 = arith.divf %207, %208 : vector<2x32xf32>
    %210 = vector.extract_strided_slice %197 {offsets = [0, 64], sizes = [2, 32], strides = [1, 1]} : vector<2x128xf32> to vector<2x32xf32>
    %211 = math.tanh %210 : vector<2x32xf32>
    %212 = vector.extract_strided_slice %197 {offsets = [0, 96], sizes = [2, 32], strides = [1, 1]} : vector<2x128xf32> to vector<2x32xf32>
    %213 = arith.negf %212 : vector<2x32xf32>
    %214 = math.exp %213 : vector<2x32xf32>
    %cst_75 = arith.constant 1.000000e+00 : f32
    %215 = vector.broadcast %cst_75 : f32 to vector<2x32xf32>
    %216 = arith.addf %215, %214 : vector<2x32xf32>
    %217 = arith.divf %215, %216 : vector<2x32xf32>
    %218 = arith.mulf %209, %163 : vector<2x32xf32>
    %219 = arith.mulf %203, %211 : vector<2x32xf32>
    %220 = arith.addf %218, %219 : vector<2x32xf32>
    %221 = math.tanh %220 : vector<2x32xf32>
    %222 = arith.mulf %217, %221 : vector<2x32xf32>
    %cst_76 = arith.constant dense<0.000000e+00> : vector<2x32xf32>
    %223 = tpu.matmul %222, %18, %cst_76 {dimension_numbers = #tpu.dot_dimension_numbers<[1], [0], [0], [1], [0, 0, 1, 1], [], []>} : vector<2x32xf32>, vector<32x32xf32>, vector<2x32xf32> -> vector<2x32xf32>
    %224 = vector.shape_cast %222 : vector<2x32xf32> to vector<2x1x32xf32>
    %225 = vector.broadcast %224 : vector<2x1x32xf32> to vector<2x10x32xf32>
    %226 = arith.mulf %13, %225 : vector<2x10x32xf32>
    %cst_77 = arith.constant dense<0.000000e+00> : vector<2x10xf32>
    %227 = vector.multi_reduction <add>, %226, %cst_77 [2] : vector<2x10x32xf32> to vector<2x10xf32>
    %228 = arith.addf %227, %19 : vector<2x10xf32>
    %cst_78 = arith.constant dense<0xFF800000> : vector<2xf32>
    %229 = vector.multi_reduction <maximumf>, %228, %cst_78 [1] : vector<2x10xf32> to vector<2xf32>
    %230 = vector.shape_cast %229 : vector<2xf32> to vector<2x1xf32>
    %231 = vector.broadcast %230 : vector<2x1xf32> to vector<2x10xf32>
    %232 = arith.subf %228, %231 : vector<2x10xf32>
    %233 = math.exp %232 : vector<2x10xf32>
    %cst_79 = arith.constant dense<0.000000e+00> : vector<2xf32>
    %234 = vector.multi_reduction <add>, %233, %cst_79 [1] : vector<2x10xf32> to vector<2xf32>
    %235 = vector.shape_cast %234 : vector<2xf32> to vector<2x1xf32>
    %236 = vector.shape_cast %233 : vector<2x10xf32> to vector<2x10x1xf32>
    %237 = vector.broadcast %236 : vector<2x10x1xf32> to vector<2x10x32xf32>
    %238 = arith.mulf %237, %16 : vector<2x10x32xf32>
    %cst_80 = arith.constant dense<0.000000e+00> : vector<2x32xf32>
    %239 = vector.multi_reduction <add>, %238, %cst_80 [1] : vector<2x10x32xf32> to vector<2x32xf32>
    %cst_81 = arith.constant 1.000000e+00 : f32
    %240 = vector.broadcast %cst_81 : f32 to vector<2x1xf32>
    %241 = arith.divf %240, %235 : vector<2x1xf32>
    %242 = vector.broadcast %241 : vector<2x1xf32> to vector<2x32xf32>
    %243 = arith.mulf %239, %242 : vector<2x32xf32>
    %244 = arith.addf %243, %223 : vector<2x32xf32>
    %245 = math.tanh %244 : vector<2x32xf32>
    %246 = arith.index_cast %c3_i32 : i32 to index
    %c0_82 = arith.constant 0 : index
    %c0_83 = arith.constant 0 : index
    %247 = vector.load %arg15[%246, %c0_82, %c0_83] : memref<8x2x32xf32, #tpu.memory_space<vmem>>, vector<1x2x32xf32>
    %248 = vector.shape_cast %247 : vector<1x2x32xf32> to vector<2x32xf32>
    %249 = vector.shape_cast %245 : vector<2x32xf32> to vector<1x2x32xf32>
    tpu.vector_store %arg15[%246, %c0_82, %c0_83], %249 {strides = array<i32>} : memref<8x2x32xf32, #tpu.memory_space<vmem>>, vector<1x2x32xf32>,
    %c4_i32 = arith.constant 4 : i32
    %250 = arith.index_cast %c4_i32 : i32 to index
    %c0_84 = arith.constant 0 : index
    %c0_85 = arith.constant 0 : index
    %251 = vector.load %arg14[%250, %c0_84, %c0_85] : memref<8x2x128xf32, #tpu.memory_space<vmem>>, vector<1x2x128xf32>
    %252 = vector.shape_cast %251 : vector<1x2x128xf32> to vector<2x128xf32>
    %cst_86 = arith.constant dense<0.000000e+00> : vector<2x128xf32>
    %253 = tpu.matmul %245, %17, %cst_86 {dimension_numbers = #tpu.dot_dimension_numbers<[1], [0], [0], [1], [0, 0, 1, 1], [], []>} : vector<2x32xf32>, vector<32x128xf32>, vector<2x128xf32> -> vector<2x128xf32>
    %254 = arith.addf %252, %253 : vector<2x128xf32>
    %255 = vector.extract_strided_slice %254 {offsets = [0, 0], sizes = [2, 32], strides = [1, 1]} : vector<2x128xf32> to vector<2x32xf32>
    %256 = arith.negf %255 : vector<2x32xf32>
    %257 = math.exp %256 : vector<2x32xf32>
    %cst_87 = arith.constant 1.000000e+00 : f32
    %258 = vector.broadcast %cst_87 : f32 to vector<2x32xf32>
    %259 = arith.addf %258, %257 : vector<2x32xf32>
    %260 = arith.divf %258, %259 : vector<2x32xf32>
    %261 = vector.extract_strided_slice %254 {offsets = [0, 32], sizes = [2, 32], strides = [1, 1]} : vector<2x128xf32> to vector<2x32xf32>
    %262 = arith.negf %261 : vector<2x32xf32>
    %263 = math.exp %262 : vector<2x32xf32>
    %cst_88 = arith.constant 1.000000e+00 : f32
    %264 = vector.broadcast %cst_88 : f32 to vector<2x32xf32>
    %265 = arith.addf %264, %263 : vector<2x32xf32>
    %266 = arith.divf %264, %265 : vector<2x32xf32>
    %267 = vector.extract_strided_slice %254 {offsets = [0, 64], sizes = [2, 32], strides = [1, 1]} : vector<2x128xf32> to vector<2x32xf32>
    %268 = math.tanh %267 : vector<2x32xf32>
    %269 = vector.extract_strided_slice %254 {offsets = [0, 96], sizes = [2, 32], strides = [1, 1]} : vector<2x128xf32> to vector<2x32xf32>
    %270 = arith.negf %269 : vector<2x32xf32>
    %271 = math.exp %270 : vector<2x32xf32>
    %cst_89 = arith.constant 1.000000e+00 : f32
    %272 = vector.broadcast %cst_89 : f32 to vector<2x32xf32>
    %273 = arith.addf %272, %271 : vector<2x32xf32>
    %274 = arith.divf %272, %273 : vector<2x32xf32>
    %275 = arith.mulf %266, %220 : vector<2x32xf32>
    %276 = arith.mulf %260, %268 : vector<2x32xf32>
    %277 = arith.addf %275, %276 : vector<2x32xf32>
    %278 = math.tanh %277 : vector<2x32xf32>
    %279 = arith.mulf %274, %278 : vector<2x32xf32>
    %cst_90 = arith.constant dense<0.000000e+00> : vector<2x32xf32>
    %280 = tpu.matmul %279, %18, %cst_90 {dimension_numbers = #tpu.dot_dimension_numbers<[1], [0], [0], [1], [0, 0, 1, 1], [], []>} : vector<2x32xf32>, vector<32x32xf32>, vector<2x32xf32> -> vector<2x32xf32>
    %281 = vector.shape_cast %279 : vector<2x32xf32> to vector<2x1x32xf32>
    %282 = vector.broadcast %281 : vector<2x1x32xf32> to vector<2x10x32xf32>
    %283 = arith.mulf %13, %282 : vector<2x10x32xf32>
    %cst_91 = arith.constant dense<0.000000e+00> : vector<2x10xf32>
    %284 = vector.multi_reduction <add>, %283, %cst_91 [2] : vector<2x10x32xf32> to vector<2x10xf32>
    %285 = arith.addf %284, %19 : vector<2x10xf32>
    %cst_92 = arith.constant dense<0xFF800000> : vector<2xf32>
    %286 = vector.multi_reduction <maximumf>, %285, %cst_92 [1] : vector<2x10xf32> to vector<2xf32>
    %287 = vector.shape_cast %286 : vector<2xf32> to vector<2x1xf32>
    %288 = vector.broadcast %287 : vector<2x1xf32> to vector<2x10xf32>
    %289 = arith.subf %285, %288 : vector<2x10xf32>
    %290 = math.exp %289 : vector<2x10xf32>
    %cst_93 = arith.constant dense<0.000000e+00> : vector<2xf32>
    %291 = vector.multi_reduction <add>, %290, %cst_93 [1] : vector<2x10xf32> to vector<2xf32>
    %292 = vector.shape_cast %291 : vector<2xf32> to vector<2x1xf32>
    %293 = vector.shape_cast %290 : vector<2x10xf32> to vector<2x10x1xf32>
    %294 = vector.broadcast %293 : vector<2x10x1xf32> to vector<2x10x32xf32>
    %295 = arith.mulf %294, %16 : vector<2x10x32xf32>
    %cst_94 = arith.constant dense<0.000000e+00> : vector<2x32xf32>
    %296 = vector.multi_reduction <add>, %295, %cst_94 [1] : vector<2x10x32xf32> to vector<2x32xf32>
    %cst_95 = arith.constant 1.000000e+00 : f32
    %297 = vector.broadcast %cst_95 : f32 to vector<2x1xf32>
    %298 = arith.divf %297, %292 : vector<2x1xf32>
    %299 = vector.broadcast %298 : vector<2x1xf32> to vector<2x32xf32>
    %300 = arith.mulf %296, %299 : vector<2x32xf32>
    %301 = arith.addf %300, %280 : vector<2x32xf32>
    %302 = math.tanh %301 : vector<2x32xf32>
    %303 = arith.index_cast %c4_i32 : i32 to index
    %c0_96 = arith.constant 0 : index
    %c0_97 = arith.constant 0 : index
    %304 = vector.load %arg15[%303, %c0_96, %c0_97] : memref<8x2x32xf32, #tpu.memory_space<vmem>>, vector<1x2x32xf32>
    %305 = vector.shape_cast %304 : vector<1x2x32xf32> to vector<2x32xf32>
    %306 = vector.shape_cast %302 : vector<2x32xf32> to vector<1x2x32xf32>
    tpu.vector_store %arg15[%303, %c0_96, %c0_97], %306 {strides = array<i32>} : memref<8x2x32xf32, #tpu.memory_space<vmem>>, vector<1x2x32xf32>,
    %c5_i32 = arith.constant 5 : i32
    %307 = arith.index_cast %c5_i32 : i32 to index
    %c0_98 = arith.constant 0 : index
    %c0_99 = arith.constant 0 : index
    %308 = vector.load %arg14[%307, %c0_98, %c0_99] : memref<8x2x128xf32, #tpu.memory_space<vmem>>, vector<1x2x128xf32>
    %309 = vector.shape_cast %308 : vector<1x2x128xf32> to vector<2x128xf32>
    %cst_100 = arith.constant dense<0.000000e+00> : vector<2x128xf32>
    %310 = tpu.matmul %302, %17, %cst_100 {dimension_numbers = #tpu.dot_dimension_numbers<[1], [0], [0], [1], [0, 0, 1, 1], [], []>} : vector<2x32xf32>, vector<32x128xf32>, vector<2x128xf32> -> vector<2x128xf32>
    %311 = arith.addf %309, %310 : vector<2x128xf32>
    %312 = vector.extract_strided_slice %311 {offsets = [0, 0], sizes = [2, 32], strides = [1, 1]} : vector<2x128xf32> to vector<2x32xf32>
    %313 = arith.negf %312 : vector<2x32xf32>
    %314 = math.exp %313 : vector<2x32xf32>
    %cst_101 = arith.constant 1.000000e+00 : f32
    %315 = vector.broadcast %cst_101 : f32 to vector<2x32xf32>
    %316 = arith.addf %315, %314 : vector<2x32xf32>
    %317 = arith.divf %315, %316 : vector<2x32xf32>
    %318 = vector.extract_strided_slice %311 {offsets = [0, 32], sizes = [2, 32], strides = [1, 1]} : vector<2x128xf32> to vector<2x32xf32>
    %319 = arith.negf %318 : vector<2x32xf32>
    %320 = math.exp %319 : vector<2x32xf32>
    %cst_102 = arith.constant 1.000000e+00 : f32
    %321 = vector.broadcast %cst_102 : f32 to vector<2x32xf32>
    %322 = arith.addf %321, %320 : vector<2x32xf32>
    %323 = arith.divf %321, %322 : vector<2x32xf32>
    %324 = vector.extract_strided_slice %311 {offsets = [0, 64], sizes = [2, 32], strides = [1, 1]} : vector<2x128xf32> to vector<2x32xf32>
    %325 = math.tanh %324 : vector<2x32xf32>
    %326 = vector.extract_strided_slice %311 {offsets = [0, 96], sizes = [2, 32], strides = [1, 1]} : vector<2x128xf32> to vector<2x32xf32>
    %327 = arith.negf %326 : vector<2x32xf32>
    %328 = math.exp %327 : vector<2x32xf32>
    %cst_103 = arith.constant 1.000000e+00 : f32
    %329 = vector.broadcast %cst_103 : f32 to vector<2x32xf32>
    %330 = arith.addf %329, %328 : vector<2x32xf32>
    %331 = arith.divf %329, %330 : vector<2x32xf32>
    %332 = arith.mulf %323, %277 : vector<2x32xf32>
    %333 = arith.mulf %317, %325 : vector<2x32xf32>
    %334 = arith.addf %332, %333 : vector<2x32xf32>
    %335 = math.tanh %334 : vector<2x32xf32>
    %336 = arith.mulf %331, %335 : vector<2x32xf32>
    %cst_104 = arith.constant dense<0.000000e+00> : vector<2x32xf32>
    %337 = tpu.matmul %336, %18, %cst_104 {dimension_numbers = #tpu.dot_dimension_numbers<[1], [0], [0], [1], [0, 0, 1, 1], [], []>} : vector<2x32xf32>, vector<32x32xf32>, vector<2x32xf32> -> vector<2x32xf32>
    %338 = vector.shape_cast %336 : vector<2x32xf32> to vector<2x1x32xf32>
    %339 = vector.broadcast %338 : vector<2x1x32xf32> to vector<2x10x32xf32>
    %340 = arith.mulf %13, %339 : vector<2x10x32xf32>
    %cst_105 = arith.constant dense<0.000000e+00> : vector<2x10xf32>
    %341 = vector.multi_reduction <add>, %340, %cst_105 [2] : vector<2x10x32xf32> to vector<2x10xf32>
    %342 = arith.addf %341, %19 : vector<2x10xf32>
    %cst_106 = arith.constant dense<0xFF800000> : vector<2xf32>
    %343 = vector.multi_reduction <maximumf>, %342, %cst_106 [1] : vector<2x10xf32> to vector<2xf32>
    %344 = vector.shape_cast %343 : vector<2xf32> to vector<2x1xf32>
    %345 = vector.broadcast %344 : vector<2x1xf32> to vector<2x10xf32>
    %346 = arith.subf %342, %345 : vector<2x10xf32>
    %347 = math.exp %346 : vector<2x10xf32>
    %cst_107 = arith.constant dense<0.000000e+00> : vector<2xf32>
    %348 = vector.multi_reduction <add>, %347, %cst_107 [1] : vector<2x10xf32> to vector<2xf32>
    %349 = vector.shape_cast %348 : vector<2xf32> to vector<2x1xf32>
    %350 = vector.shape_cast %347 : vector<2x10xf32> to vector<2x10x1xf32>
    %351 = vector.broadcast %350 : vector<2x10x1xf32> to vector<2x10x32xf32>
    %352 = arith.mulf %351, %16 : vector<2x10x32xf32>
    %cst_108 = arith.constant dense<0.000000e+00> : vector<2x32xf32>
    %353 = vector.multi_reduction <add>, %352, %cst_108 [1] : vector<2x10x32xf32> to vector<2x32xf32>
    %cst_109 = arith.constant 1.000000e+00 : f32
    %354 = vector.broadcast %cst_109 : f32 to vector<2x1xf32>
    %355 = arith.divf %354, %349 : vector<2x1xf32>
    %356 = vector.broadcast %355 : vector<2x1xf32> to vector<2x32xf32>
    %357 = arith.mulf %353, %356 : vector<2x32xf32>
    %358 = arith.addf %357, %337 : vector<2x32xf32>
    %359 = math.tanh %358 : vector<2x32xf32>
    %360 = arith.index_cast %c5_i32 : i32 to index
    %c0_110 = arith.constant 0 : index
    %c0_111 = arith.constant 0 : index
    %361 = vector.load %arg15[%360, %c0_110, %c0_111] : memref<8x2x32xf32, #tpu.memory_space<vmem>>, vector<1x2x32xf32>
    %362 = vector.shape_cast %361 : vector<1x2x32xf32> to vector<2x32xf32>
    %363 = vector.shape_cast %359 : vector<2x32xf32> to vector<1x2x32xf32>
    tpu.vector_store %arg15[%360, %c0_110, %c0_111], %363 {strides = array<i32>} : memref<8x2x32xf32, #tpu.memory_space<vmem>>, vector<1x2x32xf32>,
    %c6_i32 = arith.constant 6 : i32
    %364 = arith.index_cast %c6_i32 : i32 to index
    %c0_112 = arith.constant 0 : index
    %c0_113 = arith.constant 0 : index
    %365 = vector.load %arg14[%364, %c0_112, %c0_113] : memref<8x2x128xf32, #tpu.memory_space<vmem>>, vector<1x2x128xf32>
    %366 = vector.shape_cast %365 : vector<1x2x128xf32> to vector<2x128xf32>
    %cst_114 = arith.constant dense<0.000000e+00> : vector<2x128xf32>
    %367 = tpu.matmul %359, %17, %cst_114 {dimension_numbers = #tpu.dot_dimension_numbers<[1], [0], [0], [1], [0, 0, 1, 1], [], []>} : vector<2x32xf32>, vector<32x128xf32>, vector<2x128xf32> -> vector<2x128xf32>
    %368 = arith.addf %366, %367 : vector<2x128xf32>
    %369 = vector.extract_strided_slice %368 {offsets = [0, 0], sizes = [2, 32], strides = [1, 1]} : vector<2x128xf32> to vector<2x32xf32>
    %370 = arith.negf %369 : vector<2x32xf32>
    %371 = math.exp %370 : vector<2x32xf32>
    %cst_115 = arith.constant 1.000000e+00 : f32
    %372 = vector.broadcast %cst_115 : f32 to vector<2x32xf32>
    %373 = arith.addf %372, %371 : vector<2x32xf32>
    %374 = arith.divf %372, %373 : vector<2x32xf32>
    %375 = vector.extract_strided_slice %368 {offsets = [0, 32], sizes = [2, 32], strides = [1, 1]} : vector<2x128xf32> to vector<2x32xf32>
    %376 = arith.negf %375 : vector<2x32xf32>
    %377 = math.exp %376 : vector<2x32xf32>
    %cst_116 = arith.constant 1.000000e+00 : f32
    %378 = vector.broadcast %cst_116 : f32 to vector<2x32xf32>
    %379 = arith.addf %378, %377 : vector<2x32xf32>
    %380 = arith.divf %378, %379 : vector<2x32xf32>
    %381 = vector.extract_strided_slice %368 {offsets = [0, 64], sizes = [2, 32], strides = [1, 1]} : vector<2x128xf32> to vector<2x32xf32>
    %382 = math.tanh %381 : vector<2x32xf32>
    %383 = vector.extract_strided_slice %368 {offsets = [0, 96], sizes = [2, 32], strides = [1, 1]} : vector<2x128xf32> to vector<2x32xf32>
    %384 = arith.negf %383 : vector<2x32xf32>
    %385 = math.exp %384 : vector<2x32xf32>
    %cst_117 = arith.constant 1.000000e+00 : f32
    %386 = vector.broadcast %cst_117 : f32 to vector<2x32xf32>
    %387 = arith.addf %386, %385 : vector<2x32xf32>
    %388 = arith.divf %386, %387 : vector<2x32xf32>
    %389 = arith.mulf %380, %334 : vector<2x32xf32>
    %390 = arith.mulf %374, %382 : vector<2x32xf32>
    %391 = arith.addf %389, %390 : vector<2x32xf32>
    %392 = math.tanh %391 : vector<2x32xf32>
    %393 = arith.mulf %388, %392 : vector<2x32xf32>
    %cst_118 = arith.constant dense<0.000000e+00> : vector<2x32xf32>
    %394 = tpu.matmul %393, %18, %cst_118 {dimension_numbers = #tpu.dot_dimension_numbers<[1], [0], [0], [1], [0, 0, 1, 1], [], []>} : vector<2x32xf32>, vector<32x32xf32>, vector<2x32xf32> -> vector<2x32xf32>
    %395 = vector.shape_cast %393 : vector<2x32xf32> to vector<2x1x32xf32>
    %396 = vector.broadcast %395 : vector<2x1x32xf32> to vector<2x10x32xf32>
    %397 = arith.mulf %13, %396 : vector<2x10x32xf32>
    %cst_119 = arith.constant dense<0.000000e+00> : vector<2x10xf32>
    %398 = vector.multi_reduction <add>, %397, %cst_119 [2] : vector<2x10x32xf32> to vector<2x10xf32>
    %399 = arith.addf %398, %19 : vector<2x10xf32>
    %cst_120 = arith.constant dense<0xFF800000> : vector<2xf32>
    %400 = vector.multi_reduction <maximumf>, %399, %cst_120 [1] : vector<2x10xf32> to vector<2xf32>
    %401 = vector.shape_cast %400 : vector<2xf32> to vector<2x1xf32>
    %402 = vector.broadcast %401 : vector<2x1xf32> to vector<2x10xf32>
    %403 = arith.subf %399, %402 : vector<2x10xf32>
    %404 = math.exp %403 : vector<2x10xf32>
    %cst_121 = arith.constant dense<0.000000e+00> : vector<2xf32>
    %405 = vector.multi_reduction <add>, %404, %cst_121 [1] : vector<2x10xf32> to vector<2xf32>
    %406 = vector.shape_cast %405 : vector<2xf32> to vector<2x1xf32>
    %407 = vector.shape_cast %404 : vector<2x10xf32> to vector<2x10x1xf32>
    %408 = vector.broadcast %407 : vector<2x10x1xf32> to vector<2x10x32xf32>
    %409 = arith.mulf %408, %16 : vector<2x10x32xf32>
    %cst_122 = arith.constant dense<0.000000e+00> : vector<2x32xf32>
    %410 = vector.multi_reduction <add>, %409, %cst_122 [1] : vector<2x10x32xf32> to vector<2x32xf32>
    %cst_123 = arith.constant 1.000000e+00 : f32
    %411 = vector.broadcast %cst_123 : f32 to vector<2x1xf32>
    %412 = arith.divf %411, %406 : vector<2x1xf32>
    %413 = vector.broadcast %412 : vector<2x1xf32> to vector<2x32xf32>
    %414 = arith.mulf %410, %413 : vector<2x32xf32>
    %415 = arith.addf %414, %394 : vector<2x32xf32>
    %416 = math.tanh %415 : vector<2x32xf32>
    %417 = arith.index_cast %c6_i32 : i32 to index
    %c0_124 = arith.constant 0 : index
    %c0_125 = arith.constant 0 : index
    %418 = vector.load %arg15[%417, %c0_124, %c0_125] : memref<8x2x32xf32, #tpu.memory_space<vmem>>, vector<1x2x32xf32>
    %419 = vector.shape_cast %418 : vector<1x2x32xf32> to vector<2x32xf32>
    %420 = vector.shape_cast %416 : vector<2x32xf32> to vector<1x2x32xf32>
    tpu.vector_store %arg15[%417, %c0_124, %c0_125], %420 {strides = array<i32>} : memref<8x2x32xf32, #tpu.memory_space<vmem>>, vector<1x2x32xf32>,
    %c7_i32 = arith.constant 7 : i32
    %421 = arith.index_cast %c7_i32 : i32 to index
    %c0_126 = arith.constant 0 : index
    %c0_127 = arith.constant 0 : index
    %422 = vector.load %arg14[%421, %c0_126, %c0_127] : memref<8x2x128xf32, #tpu.memory_space<vmem>>, vector<1x2x128xf32>
    %423 = vector.shape_cast %422 : vector<1x2x128xf32> to vector<2x128xf32>
    %cst_128 = arith.constant dense<0.000000e+00> : vector<2x128xf32>
    %424 = tpu.matmul %416, %17, %cst_128 {dimension_numbers = #tpu.dot_dimension_numbers<[1], [0], [0], [1], [0, 0, 1, 1], [], []>} : vector<2x32xf32>, vector<32x128xf32>, vector<2x128xf32> -> vector<2x128xf32>
    %425 = arith.addf %423, %424 : vector<2x128xf32>
    %426 = vector.extract_strided_slice %425 {offsets = [0, 0], sizes = [2, 32], strides = [1, 1]} : vector<2x128xf32> to vector<2x32xf32>
    %427 = arith.negf %426 : vector<2x32xf32>
    %428 = math.exp %427 : vector<2x32xf32>
    %cst_129 = arith.constant 1.000000e+00 : f32
    %429 = vector.broadcast %cst_129 : f32 to vector<2x32xf32>
    %430 = arith.addf %429, %428 : vector<2x32xf32>
    %431 = arith.divf %429, %430 : vector<2x32xf32>
    %432 = vector.extract_strided_slice %425 {offsets = [0, 32], sizes = [2, 32], strides = [1, 1]} : vector<2x128xf32> to vector<2x32xf32>
    %433 = arith.negf %432 : vector<2x32xf32>
    %434 = math.exp %433 : vector<2x32xf32>
    %cst_130 = arith.constant 1.000000e+00 : f32
    %435 = vector.broadcast %cst_130 : f32 to vector<2x32xf32>
    %436 = arith.addf %435, %434 : vector<2x32xf32>
    %437 = arith.divf %435, %436 : vector<2x32xf32>
    %438 = vector.extract_strided_slice %425 {offsets = [0, 64], sizes = [2, 32], strides = [1, 1]} : vector<2x128xf32> to vector<2x32xf32>
    %439 = math.tanh %438 : vector<2x32xf32>
    %440 = vector.extract_strided_slice %425 {offsets = [0, 96], sizes = [2, 32], strides = [1, 1]} : vector<2x128xf32> to vector<2x32xf32>
    %441 = arith.negf %440 : vector<2x32xf32>
    %442 = math.exp %441 : vector<2x32xf32>
    %cst_131 = arith.constant 1.000000e+00 : f32
    %443 = vector.broadcast %cst_131 : f32 to vector<2x32xf32>
    %444 = arith.addf %443, %442 : vector<2x32xf32>
    %445 = arith.divf %443, %444 : vector<2x32xf32>
    %446 = arith.mulf %437, %391 : vector<2x32xf32>
    %447 = arith.mulf %431, %439 : vector<2x32xf32>
    %448 = arith.addf %446, %447 : vector<2x32xf32>
    %449 = math.tanh %448 : vector<2x32xf32>
    %450 = arith.mulf %445, %449 : vector<2x32xf32>
    %cst_132 = arith.constant dense<0.000000e+00> : vector<2x32xf32>
    %451 = tpu.matmul %450, %18, %cst_132 {dimension_numbers = #tpu.dot_dimension_numbers<[1], [0], [0], [1], [0, 0, 1, 1], [], []>} : vector<2x32xf32>, vector<32x32xf32>, vector<2x32xf32> -> vector<2x32xf32>
    %452 = vector.shape_cast %450 : vector<2x32xf32> to vector<2x1x32xf32>
    %453 = vector.broadcast %452 : vector<2x1x32xf32> to vector<2x10x32xf32>
    %454 = arith.mulf %13, %453 : vector<2x10x32xf32>
    %cst_133 = arith.constant dense<0.000000e+00> : vector<2x10xf32>
    %455 = vector.multi_reduction <add>, %454, %cst_133 [2] : vector<2x10x32xf32> to vector<2x10xf32>
    %456 = arith.addf %455, %19 : vector<2x10xf32>
    %cst_134 = arith.constant dense<0xFF800000> : vector<2xf32>
    %457 = vector.multi_reduction <maximumf>, %456, %cst_134 [1] : vector<2x10xf32> to vector<2xf32>
    %458 = vector.shape_cast %457 : vector<2xf32> to vector<2x1xf32>
    %459 = vector.broadcast %458 : vector<2x1xf32> to vector<2x10xf32>
    %460 = arith.subf %456, %459 : vector<2x10xf32>
    %461 = math.exp %460 : vector<2x10xf32>
    %cst_135 = arith.constant dense<0.000000e+00> : vector<2xf32>
    %462 = vector.multi_reduction <add>, %461, %cst_135 [1] : vector<2x10xf32> to vector<2xf32>
    %463 = vector.shape_cast %462 : vector<2xf32> to vector<2x1xf32>
    %464 = vector.shape_cast %461 : vector<2x10xf32> to vector<2x10x1xf32>
    %465 = vector.broadcast %464 : vector<2x10x1xf32> to vector<2x10x32xf32>
    %466 = arith.mulf %465, %16 : vector<2x10x32xf32>
    %cst_136 = arith.constant dense<0.000000e+00> : vector<2x32xf32>
    %467 = vector.multi_reduction <add>, %466, %cst_136 [1] : vector<2x10x32xf32> to vector<2x32xf32>
    %cst_137 = arith.constant 1.000000e+00 : f32
    %468 = vector.broadcast %cst_137 : f32 to vector<2x1xf32>
    %469 = arith.divf %468, %463 : vector<2x1xf32>
    %470 = vector.broadcast %469 : vector<2x1xf32> to vector<2x32xf32>
    %471 = arith.mulf %467, %470 : vector<2x32xf32>
    %472 = arith.addf %471, %451 : vector<2x32xf32>
    %473 = math.tanh %472 : vector<2x32xf32>
    %474 = arith.index_cast %c7_i32 : i32 to index
    %c0_138 = arith.constant 0 : index
    %c0_139 = arith.constant 0 : index
    %475 = vector.load %arg15[%474, %c0_138, %c0_139] : memref<8x2x32xf32, #tpu.memory_space<vmem>>, vector<1x2x32xf32>
    %476 = vector.shape_cast %475 : vector<1x2x32xf32> to vector<2x32xf32>
    %477 = vector.shape_cast %473 : vector<2x32xf32> to vector<1x2x32xf32>
    tpu.vector_store %arg15[%474, %c0_138, %c0_139], %477 {strides = array<i32>} : memref<8x2x32xf32, #tpu.memory_space<vmem>>, vector<1x2x32xf32>,
    %c8_i32 = arith.constant 8 : i32
    %c0_140 = arith.constant 0 : index
    %c0_141 = arith.constant 0 : index
    %478 = vector.load %arg12[%c0_140, %c0_141] : memref<2x32xf32, #tpu.memory_space<vmem>>, vector<2x32xf32>
    tpu.vector_store %arg12[%c0_140, %c0_141], %473 {strides = array<i32>} : memref<2x32xf32, #tpu.memory_space<vmem>>, vector<2x32xf32>,
    %c0_142 = arith.constant 0 : index
    %c0_143 = arith.constant 0 : index
    %479 = vector.load %arg13[%c0_142, %c0_143] : memref<2x32xf32, #tpu.memory_space<vmem>>, vector<2x32xf32>
    tpu.vector_store %arg13[%c0_142, %c0_143], %448 {strides = array<i32>} : memref<2x32xf32, #tpu.memory_space<vmem>>, vector<2x32xf32>,
    %c0_144 = arith.constant 0 : index
    %c0_145 = arith.constant 0 : index
    %c0_146 = arith.constant 0 : index
    %480 = vector.load %arg15[%c0_144, %c0_145, %c0_146] : memref<8x2x32xf32, #tpu.memory_space<vmem>>, vector<1x2x32xf32>
    %481 = vector.shape_cast %480 : vector<1x2x32xf32> to vector<2x32xf32>
    %c0_147 = arith.constant 0 : index
    %c0_148 = arith.constant 0 : index
    %c0_149 = arith.constant 0 : index
    %482 = vector.load %arg11[%c0_147, %c0_148, %c0_149] : memref<2x8x32xf32, #tpu.memory_space<vmem>>, vector<2x1x32xf32>
    %483 = vector.shape_cast %482 : vector<2x1x32xf32> to vector<2x32xf32>
    %484 = vector.shape_cast %481 : vector<2x32xf32> to vector<2x1x32xf32>
    tpu.vector_store %arg11[%c0_147, %c0_148, %c0_149], %484 {strides = array<i32>} : memref<2x8x32xf32, #tpu.memory_space<vmem>>, vector<2x1x32xf32>,
    %c1 = arith.constant 1 : index
    %c0_150 = arith.constant 0 : index
    %c0_151 = arith.constant 0 : index
    %485 = vector.load %arg15[%c1, %c0_150, %c0_151] : memref<8x2x32xf32, #tpu.memory_space<vmem>>, vector<1x2x32xf32>
    %486 = vector.shape_cast %485 : vector<1x2x32xf32> to vector<2x32xf32>
    %c0_152 = arith.constant 0 : index
    %c1_153 = arith.constant 1 : index
    %c0_154 = arith.constant 0 : index
    %487 = vector.load %arg11[%c0_152, %c1_153, %c0_154] : memref<2x8x32xf32, #tpu.memory_space<vmem>>, vector<2x1x32xf32>
    %488 = vector.shape_cast %487 : vector<2x1x32xf32> to vector<2x32xf32>
    %489 = vector.shape_cast %486 : vector<2x32xf32> to vector<2x1x32xf32>
    tpu.vector_store %arg11[%c0_152, %c1_153, %c0_154], %489 {strides = array<i32>} : memref<2x8x32xf32, #tpu.memory_space<vmem>>, vector<2x1x32xf32>,
    %c2 = arith.constant 2 : index
    %c0_155 = arith.constant 0 : index
    %c0_156 = arith.constant 0 : index
    %490 = vector.load %arg15[%c2, %c0_155, %c0_156] : memref<8x2x32xf32, #tpu.memory_space<vmem>>, vector<1x2x32xf32>
    %491 = vector.shape_cast %490 : vector<1x2x32xf32> to vector<2x32xf32>
    %c0_157 = arith.constant 0 : index
    %c2_158 = arith.constant 2 : index
    %c0_159 = arith.constant 0 : index
    %492 = vector.load %arg11[%c0_157, %c2_158, %c0_159] : memref<2x8x32xf32, #tpu.memory_space<vmem>>, vector<2x1x32xf32>
    %493 = vector.shape_cast %492 : vector<2x1x32xf32> to vector<2x32xf32>
    %494 = vector.shape_cast %491 : vector<2x32xf32> to vector<2x1x32xf32>
    tpu.vector_store %arg11[%c0_157, %c2_158, %c0_159], %494 {strides = array<i32>} : memref<2x8x32xf32, #tpu.memory_space<vmem>>, vector<2x1x32xf32>,
    %c3 = arith.constant 3 : index
    %c0_160 = arith.constant 0 : index
    %c0_161 = arith.constant 0 : index
    %495 = vector.load %arg15[%c3, %c0_160, %c0_161] : memref<8x2x32xf32, #tpu.memory_space<vmem>>, vector<1x2x32xf32>
    %496 = vector.shape_cast %495 : vector<1x2x32xf32> to vector<2x32xf32>
    %c0_162 = arith.constant 0 : index
    %c3_163 = arith.constant 3 : index
    %c0_164 = arith.constant 0 : index
    %497 = vector.load %arg11[%c0_162, %c3_163, %c0_164] : memref<2x8x32xf32, #tpu.memory_space<vmem>>, vector<2x1x32xf32>
    %498 = vector.shape_cast %497 : vector<2x1x32xf32> to vector<2x32xf32>
    %499 = vector.shape_cast %496 : vector<2x32xf32> to vector<2x1x32xf32>
    tpu.vector_store %arg11[%c0_162, %c3_163, %c0_164], %499 {strides = array<i32>} : memref<2x8x32xf32, #tpu.memory_space<vmem>>, vector<2x1x32xf32>,
    %c4 = arith.constant 4 : index
    %c0_165 = arith.constant 0 : index
    %c0_166 = arith.constant 0 : index
    %500 = vector.load %arg15[%c4, %c0_165, %c0_166] : memref<8x2x32xf32, #tpu.memory_space<vmem>>, vector<1x2x32xf32>
    %501 = vector.shape_cast %500 : vector<1x2x32xf32> to vector<2x32xf32>
    %c0_167 = arith.constant 0 : index
    %c4_168 = arith.constant 4 : index
    %c0_169 = arith.constant 0 : index
    %502 = vector.load %arg11[%c0_167, %c4_168, %c0_169] : memref<2x8x32xf32, #tpu.memory_space<vmem>>, vector<2x1x32xf32>
    %503 = vector.shape_cast %502 : vector<2x1x32xf32> to vector<2x32xf32>
    %504 = vector.shape_cast %501 : vector<2x32xf32> to vector<2x1x32xf32>
    tpu.vector_store %arg11[%c0_167, %c4_168, %c0_169], %504 {strides = array<i32>} : memref<2x8x32xf32, #tpu.memory_space<vmem>>, vector<2x1x32xf32>,
    %c5 = arith.constant 5 : index
    %c0_170 = arith.constant 0 : index
    %c0_171 = arith.constant 0 : index
    %505 = vector.load %arg15[%c5, %c0_170, %c0_171] : memref<8x2x32xf32, #tpu.memory_space<vmem>>, vector<1x2x32xf32>
    %506 = vector.shape_cast %505 : vector<1x2x32xf32> to vector<2x32xf32>
    %c0_172 = arith.constant 0 : index
    %c5_173 = arith.constant 5 : index
    %c0_174 = arith.constant 0 : index
    %507 = vector.load %arg11[%c0_172, %c5_173, %c0_174] : memref<2x8x32xf32, #tpu.memory_space<vmem>>, vector<2x1x32xf32>
    %508 = vector.shape_cast %507 : vector<2x1x32xf32> to vector<2x32xf32>
    %509 = vector.shape_cast %506 : vector<2x32xf32> to vector<2x1x32xf32>
    tpu.vector_store %arg11[%c0_172, %c5_173, %c0_174], %509 {strides = array<i32>} : memref<2x8x32xf32, #tpu.memory_space<vmem>>, vector<2x1x32xf32>,
    %c6 = arith.constant 6 : index
    %c0_175 = arith.constant 0 : index
    %c0_176 = arith.constant 0 : index
    %510 = vector.load %arg15[%c6, %c0_175, %c0_176] : memref<8x2x32xf32, #tpu.memory_space<vmem>>, vector<1x2x32xf32>
    %511 = vector.shape_cast %510 : vector<1x2x32xf32> to vector<2x32xf32>
    %c0_177 = arith.constant 0 : index
    %c6_178 = arith.constant 6 : index
    %c0_179 = arith.constant 0 : index
    %512 = vector.load %arg11[%c0_177, %c6_178, %c0_179] : memref<2x8x32xf32, #tpu.memory_space<vmem>>, vector<2x1x32xf32>
    %513 = vector.shape_cast %512 : vector<2x1x32xf32> to vector<2x32xf32>
    %514 = vector.shape_cast %511 : vector<2x32xf32> to vector<2x1x32xf32>
    tpu.vector_store %arg11[%c0_177, %c6_178, %c0_179], %514 {strides = array<i32>} : memref<2x8x32xf32, #tpu.memory_space<vmem>>, vector<2x1x32xf32>,
    %c7 = arith.constant 7 : index
    %c0_180 = arith.constant 0 : index
    %c0_181 = arith.constant 0 : index
    %515 = vector.load %arg15[%c7, %c0_180, %c0_181] : memref<8x2x32xf32, #tpu.memory_space<vmem>>, vector<1x2x32xf32>
    %516 = vector.shape_cast %515 : vector<1x2x32xf32> to vector<2x32xf32>
    %c0_182 = arith.constant 0 : index
    %c7_183 = arith.constant 7 : index
    %c0_184 = arith.constant 0 : index
    %517 = vector.load %arg11[%c0_182, %c7_183, %c0_184] : memref<2x8x32xf32, #tpu.memory_space<vmem>>, vector<2x1x32xf32>
    %518 = vector.shape_cast %517 : vector<2x1x32xf32> to vector<2x32xf32>
    %519 = vector.shape_cast %516 : vector<2x32xf32> to vector<2x1x32xf32>
    tpu.vector_store %arg11[%c0_182, %c7_183, %c0_184], %519 {strides = array<i32>} : memref<2x8x32xf32, #tpu.memory_space<vmem>>, vector<2x1x32xf32>,
    return
  }
}

</mosaic_0001>

<bundles_post_ra>
// kernel: tpu_custom_call.1
= control target key start
LH: loop header
LB: loop body
LE: loop exit
PB: predicated region body
PF: predicated region fallthrough
CT: control target
= control target key end

     0   :  { %19 = vsyncpa [#allocation5], 0  ;;  %s7167_s0 = inlined_call_operand.hbm [shape: f32[8,2,16], index: 0, kind: input, shape index: {}]   ;;  %s7168_s1 = inlined_call_operand.hbm [shape: f32[2,32], index: 1, kind: input, shape index: {}]   ;;  %s7169_s2 = inlined_call_operand.hbm [shape: f32[2,32], index: 2, kind: input, shape index: {}]   ;;  %s7170_s3 = inlined_call_operand.vmem [shape: f32[2,10,32], index: 3, kind: input, shape index: {}]   ;;  %s7171_s4 = inlined_call_operand.hbm [shape: f32[2,10], index: 4, kind: input, shape index: {}]   ;;  %s7172_s5 = inlined_call_operand.hbm [shape: f32[16,128], index: 5, kind: input, shape index: {}]   ;;  %s7173_s6 = inlined_call_operand.vmem [shape: f32[32,128], index: 6, kind: input, shape index: {}]   ;;  %s7174_s7 = inlined_call_operand.hbm [shape: f32[1,128], index: 7, kind: input, shape index: {}]   ;;  %s7175_s8 = inlined_call_operand.vmem [shape: f32[32,32], index: 8, kind: input, shape index: {}]   ;;  %s7176_s9 = inlined_call_operand.hbm [shape: f32[32,32], index: 9, kind: input, shape index: {}]   ;;  %s7177_s10 = inlined_call_operand.hbm [shape: f32[32,32], index: 10, kind: input, shape index: {}]   ;;  %s7178_s11 = inlined_call_operand.hbm [shape: f32[2,8,32], index: 11, kind: output, shape index: {0}]   ;;  %s7179_s12 = inlined_call_operand.hbm [shape: f32[2,32], index: 12, kind: output, shape index: {1}]   ;;  %s7180_s13 = inlined_call_operand.hbm [shape: f32[2,32], index: 13, kind: output, shape index: {2}]  }
   0x1   :  { %20 = vsyncpa [#allocation8], 0 }
   0x2   :  { %21 = vsyncpa [#allocation11], 0 }
   0x3   :  { %22 = vsyncpa [#allocation14], 0 }
   0x4   :  { %23 = vsyncpa [#allocation17], 0 }
   0x5   :  { %24 = vsyncpa [#allocation6], 0 }
   0x6   :  { %25 = vsyncpa [#allocation20], 0  ;;  %s5901_s25 = smov [#allocation7]   ;;  %s5902_s27 = smov [#allocation10]  }
   0x7   :  { %s44_s26 = sshll.u32 %s5901_s25, 4  ;;  %s66_s28 = sshll.u32 %s5902_s27, 4  ;;  %s45_s26 = int_to_ptr.vmem [resolvable:$true] %s44_s26  ;;  %s67_s28 = int_to_ptr.vmem [resolvable:$true] %s66_s28 }
   0x8   :  { %s5675_s29 = scalar_lea.vmem %s45_s26, 32  ;;  %p5680_p1 = scmp.lt.s32.totalorder %s45_s26, %s45_s26 }
   0x9   :  { %p5676_p0 = scmp.ne.s32.totalorder %s45_s26, %s5675_s29  ;;  %p5681_p2 = scmp.lt.s32.totalorder %s5675_s29, %s5675_s29 }
   0xb   :  { %p5682_p3 = por %p5681_p2, %p5680_p1 }
   0xd   :  { %p5683_p4 = pnand %p5682_p3, %p5676_p0 }
   0xf   :  { %5686 = shalt.err (!%p5683_p4)
}
  0x10   :  { %47 = dma.hbm_to_vmem [thread:$0]  %s7168_s1, 32, %s45_s26, [#allocation8]  }
  0x11   :  { %s5695_s15 = scalar_lea.vmem %s67_s28, 32  ;;  %p5700_p6 = scmp.lt.s32.totalorder %s67_s28, %s67_s28 }
  0x12   :  { %p5696_p5 = scmp.ne.s32.totalorder %s67_s28, %s5695_s15  ;;  %p5701_p7 = scmp.lt.s32.totalorder %s5695_s15, %s5695_s15 }
  0x14   :  { %p5702_p8 = por %p5701_p7, %p5700_p6 }
  0x16   :  { %p5703_p9 = pnand %p5702_p8, %p5696_p5 }
  0x18   :  { %5706 = shalt.err (!%p5703_p9)
}
  0x19   :  { %69 = dma.hbm_to_vmem [thread:$0]  %s7171_s4, 32, %s67_s28, [#allocation11]  }
  0x1a   :  { %s5903_s18 = smov [#allocation13]   ;;  %s5904_s20 = smov [#allocation4]  }
  0x1b   :  { %s90_s19 = sshll.u32 %s5903_s18, 4  ;;  %s31_s21 = sshll.u32 %s5904_s20, 4  ;;  %s91_s19 = int_to_ptr.vmem [resolvable:$true] %s90_s19  ;;  %s32_s21 = int_to_ptr.vmem [resolvable:$true] %s31_s21 }
  0x1c   :  { %s5715_s22 = scalar_lea.vmem %s91_s19, 16  ;;  %s5719_s1 = scalar_lea.vmem %s91_s19, 32 }
  0x1d   :  { %p5716_p10 = scmp.ne.s32.totalorder %s91_s19, %s5715_s22  ;;  %p5720_p11 = scmp.lt.s32.totalorder %s91_s19, %s91_s19 }
  0x1e   :  { %p5721_p12 = scmp.lt.s32.totalorder %s5719_s1, %s5715_s22 }
  0x20   :  { %p5722_p13 = por %p5721_p12, %p5720_p11 }
  0x22   :  { %p5723_p0 = pnand %p5722_p13, %p5716_p10 }
  0x24   :  { %5726 = shalt.err (!%p5723_p0)
}
  0x25   :  { %93 = dma.hbm_to_vmem [thread:$0]  %s7174_s7, 16, %s91_s19, [#allocation14]  }
  0x26   :  { %s5735_s25 = scalar_lea.vmem %s32_s21, 256  ;;  %p5740_p2 = scmp.lt.s32.totalorder %s32_s21, %s32_s21 }
  0x27   :  { %p5736_p1 = scmp.ne.s32.totalorder %s32_s21, %s5735_s25  ;;  %p5741_p3 = scmp.lt.s32.totalorder %s5735_s25, %s5735_s25 }
  0x29   :  { %p5742_p4 = por %p5741_p3, %p5740_p2 }
  0x2b   :  { %p5743_p5 = pnand %p5742_p4, %p5736_p1 }
  0x2d   :  { %5746 = shalt.err (!%p5743_p5)
}
  0x2e   :  { %s5905_s4 = smov 32   ;;  %s5906_s26 = smov 2  }
  0x2f   :  { %37 = dma.hbm_to_vmem [thread:$0]  %s7167_s0, 256, %s32_s21, [#allocation5], %s5905_s4, %s5905_s4, %s5906_s26  }
  0x30   :  { %s5907_s29 = smov [#allocation9]   ;;  %s5908_s14 = smov [#allocation12]  }
  0x31   :  { %s54_s30 = sshll.u32 %s5907_s29, 4  ;;  %s75_s15 = sshll.u32 %s5908_s14, 4  ;;  %s55_s30 = int_to_ptr.vmem [resolvable:$true] %s54_s30  ;;  %s76_s15 = int_to_ptr.vmem [resolvable:$true] %s75_s15 }
  0x32   :  { %s5755_s7 = scalar_lea.vmem %s55_s30, 32  ;;  %p5760_p7 = scmp.lt.s32.totalorder %s55_s30, %s55_s30 }
  0x33   :  { %p5756_p6 = scmp.ne.s32.totalorder %s55_s30, %s5755_s7  ;;  %p5761_p8 = scmp.lt.s32.totalorder %s5755_s7, %s5755_s7 }
  0x35   :  { %p5762_p9 = por %p5761_p8, %p5760_p7 }
  0x37   :  { %p5763_p10 = pnand %p5762_p9, %p5756_p6 }
  0x39   :  { %5766 = shalt.err (!%p5763_p10)
}
  0x3a   :  { %57 = dma.hbm_to_vmem [thread:$0]  %s7169_s2, 32, %s55_s30, [#allocation8]  }
  0x3b   :  { %s5775_s18 = scalar_lea.vmem %s76_s15, 256  ;;  %p5780_p12 = scmp.lt.s32.totalorder %s76_s15, %s76_s15 }
  0x3c   :  { %p5776_p11 = scmp.ne.s32.totalorder %s76_s15, %s5775_s18  ;;  %p5781_p13 = scmp.lt.s32.totalorder %s5775_s18, %s5775_s18 }
  0x3e   :  { %p5782_p0 = por %p5781_p13, %p5780_p12 }
  0x40   :  { %p5783_p1 = pnand %p5782_p0, %p5776_p11 }
  0x42   :  { %5786 = shalt.err (!%p5783_p1)
}
  0x43   :  { %s5909_s0 = smov 128   ;;  %s5910_s19 = smov 8  }
  0x44   :  { %81 = dma.hbm_to_vmem [thread:$0]  %s7172_s5, 256, %s76_s15, [#allocation11], %s5909_s0, %s5909_s0, %s5910_s19  }
  0x45   :  { %s5911_s22 = smov [#allocation15]   ;;  %s5912_s23 = smov [#allocation16]  }
  0x46   :  { %s101_s1 = sshll.u32 %s5911_s22, 4  ;;  %s113_s2 = sshll.u32 %s5912_s23, 4  ;;  %s102_s1 = int_to_ptr.vmem [resolvable:$true] %s101_s1  ;;  %s114_s2 = int_to_ptr.vmem [resolvable:$true] %s113_s2 }
  0x47   :  { %s5795_s24 = scalar_lea.vmem %s102_s1, 512  ;;  %p5800_p3 = scmp.lt.s32.totalorder %s102_s1, %s102_s1 }
  0x48   :  { %p5796_p2 = scmp.ne.s32.totalorder %s102_s1, %s5795_s24  ;;  %p5801_p4 = scmp.lt.s32.totalorder %s5795_s24, %s5795_s24 }
  0x4a   :  { %p5802_p5 = por %p5801_p4, %p5800_p3 }
  0x4c   :  { %p5803_p6 = pnand %p5802_p5, %p5796_p2 }
  0x4e   :  { %5806 = shalt.err (!%p5803_p6)
}
  0x4f   :  { %107 = dma.hbm_to_vmem [thread:$0]  %s7176_s9, 512, %s102_s1, [#allocation14], %s5909_s0, %s5909_s0, %s5910_s19  }
  0x50   :  { %s5815_s5 = scalar_lea.vmem %s114_s2, 512  ;;  %p5820_p8 = scmp.lt.s32.totalorder %s114_s2, %s114_s2 }
  0x51   :  { %p5816_p7 = scmp.ne.s32.totalorder %s114_s2, %s5815_s5  ;;  %p5821_p9 = scmp.lt.s32.totalorder %s5815_s5, %s5815_s5 }
  0x53   :  { %p5822_p10 = por %p5821_p9, %p5820_p8 }
  0x55   :  { %p5823_p11 = pnand %p5822_p10, %p5816_p7 }
  0x57   :  { %5826 = shalt.err (!%p5823_p11)
}
  0x58   :  { %119 = dma.hbm_to_vmem [thread:$0]  %s7177_s10, 512, %s114_s2, [#allocation17], %s5909_s0, %s5909_s0, %s5910_s19  }
  0x59   :  { %5887 = dma.done.wait [#allocation5], 256  }
  0x5a   :  { %5888 = vsyncadd [#allocation5], 4294967040 }
  0x5b   :  { %5889 = dma.done.wait [#allocation8], 64  }
  0x5c   :  { %5890 = vsyncadd [#allocation8], 4294967232 }
  0x5d   :  { %5891 = dma.done.wait [#allocation11], 288  }
  0x5e   :  { %5892 = vsyncadd [#allocation11], 4294967008 }
  0x5f   :  { %5893 = dma.done.wait [#allocation14], 528  }
  0x60   :  { %5894 = vsyncadd [#allocation14], 4294966768 }
  0x61   :  { %5895 = dma.done.wait [#allocation17], 512  }
  0x62   :  { %5896 = vsyncadd [#allocation17], 4294966784  ;;  %v5913_v0 = vmov 0.0   ;;  %v5914_v1 = vmov 1983009808   ;;  %v174_v3 = vlaneseq  ;;  %vm5915_vm0 = vmmov 0  }
  0x63   :  { %5239 = vmatprep.subr.mxu1 %v5913_v0  ;;  %v172_v2 = vunpack.c.l.s4 %v5914_v1  ;;  %5247 = vmatprep.mubr.msk.f32.mxu1 %vm5915_vm0, %v5913_v0  ;;  %v394_v6 = vld [vmem:[%s7175_s8 + $0x18] sm:$0xff]  ;;  %v393_v8 = vld [vmem:[%s7175_s8 + $0x10] sm:$0xff]  ;;  %v392_v10 = vld [vmem:[%s7175_s8 + $0x8] sm:$0xff]  ;;  %vm203_vm1 = vcmask 130048   ;;  %vm437_vm2 = vcmask 261120   ;;  %s5916_s9 = smov 64  }
  0x64   :  { %v6032_v5 = vshrl.u32 %v174_v3, 7  ;;  %v153_v7 = vld [vmem:[#allocation12 + $0x8] sm:$0xff]  ;;  %5240 = vmatpush3.msra.mxu1 %v394_v6  ;;  %v152_v9 = vld [vmem:[#allocation12] sm:$0xff]  ;;  %v147_v14 = vld [vmem:[#allocation4 + $0x6] sm:$0x3]  ;;  %vm1060_vm3 = vcmask 254976  }
  0x65   :  { %v173_v4 = vunpack.c.0.s8 %v172_v2  ;;  %5232 = vmatprep.subr.mxu0 %v153_v7  ;;  %v144_v11 = vld [vmem:[#allocation4] sm:$0x3]  ;;  %5241 = vmatprep.subr.mxu1 %v5913_v0  ;;  %v145_v12 = vld [vmem:[#allocation4 + $0x2] sm:$0x3]  ;;  %v146_v13 = vld [vmem:[#allocation4 + $0x4] sm:$0x3] }
  0x66   :  { %5233 = vmatpush3.msra.mxu0 %v153_v7  ;;  %5242 = vmatpush3.msra.mxu1 %v393_v8  ;;  %v169_v16 = vcombine.low %v144_v11, %v145_v12  ;;  %v170_v17 = vcombine.low %v146_v13, %v147_v14  ;;  %v148_v18 = vld [vmem:[#allocation4 + $0x8] sm:$0x3]  ;;  %v149_v19 = vld [vmem:[#allocation4 + $0xa] sm:$0x3]  ;;  %v150_v20 = vld [vmem:[#allocation4 + $0xc] sm:$0x3] }
  0x67   :  { %v6045_v15 = vsub.s32 %v173_v4, %v6032_v5  ;;  %5234 = vmatprep.subr.mxu0 %v152_v9  ;;  %5243 = vmatprep.subr.mxu1 %v5913_v0  ;;  %v151_v21 = vld [vmem:[#allocation4 + $0xe] sm:$0x3]  ;;  %v186_v22 = vcombine.low %v148_v18, %v149_v19  ;;  %v391_v23 = vld [vmem:[%s7175_s8] sm:$0xff]  ;;  %v337_v31 = vld [vmem:[%s7170_s3 + $0x10] sm:$0xff]  ;;  %vm1128_vm4 = vcmask 130112   ;;  %vm1139_vm5 = vcmask 1041409  }
  0x68   :  { %5235 = vmatpush3.msra.mxu0 %v152_v9  ;;  %v335_v24 = vld [vmem:[%s7170_s3] sm:$0xff]  ;;  %5244 = vmatpush3.msra.mxu1 %v392_v10  ;;  %v187_v27 = vcombine.low %v150_v20, %v151_v21  ;;  %v5094_v35 = vld.sshfl [vmem:[%s7170_s3 + $0x8] sm:$0x3 pattern:$0x76325410]  ;;  %v367_v36 = vcombine.high %v337_v31, %v337_v31  ;;  %v6087_v54 = vld [vmem:[%s7173_s6 + $0x18] sm:$0xff] }
  0x69   :  { %v177_v25 = vrot.slane %v169_v16, %v6045_v15  ;;  %v184_v26 = vrot.slane %v170_v17, %v6045_v15  ;;  %v343_v28 = vcombine.high %v335_v24, %v335_v24  ;;  %5245 = vmatprep.subr.mxu1 %v5913_v0  ;;  %v194_v29 = vrot.slane %v186_v22, %v6045_v15  ;;  %v5095_v52 = vld.sshfl [vmem:[%s7170_s3 + $0x18] sm:$0x3 pattern:$0x76325410]  ;;  %v6094_v55 = vld [vmem:[%s7173_s6 + $0x10] sm:$0xff]  ;;  %v6105_v58 = vld [vmem:[%s7173_s6 + $0x8] sm:$0xff] }
  0x6a   :  { %v350_v30 = vrot.slane %v335_v24, %v6045_v15  ;;  %5256 = vmatprep.subr.mxu0 %v5913_v0  ;;  %v201_v33 = vrot.slane %v187_v27, %v6045_v15  ;;  %5246 = vmatpush3.msra.mxu1 %v391_v23  ;;  %v374_v38 = vrot.slane %v337_v31, %v6045_v15  ;;  %v6117_v60 = vld [vmem:[%s7173_s6] sm:$0xff]  ;;  %v717_v61 = vld [vmem:[#allocation7] sm:$0x3]  ;;  %vm1142_vm6 = vcmask 74752   ;;  %s5921_s25 = smov [#allocation21]  }
  0x6b   :  { %v185_v32 = vcombine.low %v177_v25, %v184_v26  ;;  %v357_v34 = vrot.slane %v343_v28, %v6045_v15  ;;  %5273 = vmatprep.subr.mxu1 %v5913_v0  ;;  %v381_v41 = vrot.slane %v367_v36, %v6045_v15  ;;  %v5087_v62 = vld [vmem:[#allocation13] ss:$0 sm:$0xff]  ;;  %v718_v28 = vld [vmem:[#allocation9] sm:$0x3]  ;;  %vm4840_vm7 = vcmask 253952   ;;  %s5067_s26 = sshll.u32 %s5921_s25, 4  ;;  %s5068_s26 = int_to_ptr.vmem [resolvable:$true] %s5067_s26 }
  0x6c   :  { %v358_v37 = vcombine.high %v350_v30, %v350_v30  ;;  %v202_v39 = vcombine.low %v194_v29, %v201_v33  ;;  %v382_v43 = vcombine.high %v374_v38, %v374_v38  ;;  %v412_v44 = vcombine.low %v5094_v35, %v374_v38 }
  0x6d   :  { %5236 = vmatprep.mubr.msk.f32.mxu0 %vm203_vm1, %v185_v32  ;;  %v359_v40 = vcombine.high %v357_v34, %v357_v34  ;;  %v383_v50 = vcombine.high %v381_v41, %v381_v41 }
  0x6e   :  { %v395_v42 = vcombine.low %v350_v30, %v358_v37  ;;  %5237 = vmatmul.mubr.msk.f32.vlgmr.msra.gmra.mxu0 %vm203_vm1, %v202_v39  ;;  %v413_v47 = vcombine.low %v382_v43, %v381_v41  ;;  %v420_v49 = vrot.slane %v412_v44, %v6045_v15 }
  0x6f   :  { %v396_v45 = vcombine.low %v357_v34, %v359_v40  ;;  %5264 = vmatprep.mubr.msk.f32.mxu0 %vm5915_vm0, %v5913_v0  ;;  %v429_v57 = vcombine.low %v383_v50, %v5095_v52  ;;  %v5917_v40 = vmov 1966171168  }
  0x70   :  { %v403_v46 = vrot.slane %v395_v42, %v6045_v15  ;;  %v427_v51 = vrot.slane %v413_v47, %v6045_v15  ;;  %v898_v41 = vunpack.c.l.s4 %v5917_v40  ;;  %v6165_v47 = vsub.s32 0, %v6032_v5 }
  0x71   :  { %v410_v48 = vrot.slane %v396_v45, %v6045_v15  ;;  %v6112_v59 = vrot.slane %v429_v57, %v6045_v15 }
  0x72   :  { %v6096_v56 = vcombine.low %v420_v49, %v427_v51  ;;  %v899_v42 = vunpack.c.0.s8 %v898_v41 }
  0x73   :  { %v6082_v53 = vcombine.low %v403_v46, %v410_v48 }
  0x74   :  { %v6158_v43 = vsub.s32 %v899_v42, %v6032_v5 }
  0x75   :  { %5248 = vmatmul.mubr.msk.f32.vlgmr.msra.gmra.mxu1 %vm437_vm2, %v6082_v53 }
  0x76   :  { %5274 = vmatpush3.msra.mxu1 %v6087_v54  ;;  %5250 = vmatprep.mubr.msk.f32.mxu1 %vm5915_vm0, %v5913_v0 }
  0x77   :  { %5275 = vmatprep.subr.mxu1 %v5913_v0 }
  0x78   :  { %5276 = vmatpush3.msra.mxu1 %v6094_v55 }
  0x79   :  { %5251 = vmatmul.mubr.msk.f32.gmra.mxu1 %vm437_vm2, %v6096_v56  ;;  %5277 = vmatprep.subr.mxu1 %v5913_v0 }
  0x7a   :  { %5278 = vmatpush3.msra.mxu1 %v6105_v58  ;;  %5253 = vmatprep.mubr.msk.f32.mxu1 %vm5915_vm0, %v5913_v0 }
  0x7b   :  { %5279 = vmatprep.subr.mxu1 %v5913_v0 }
  0x7c   :  { %5280 = vmatpush3.msra.mxu1 %v6117_v60 }
  0x7d   :  { %5254 = vmatmul.mubr.msk.f32.gmra.mxu1 %vm437_vm2, %v6112_v59  ;;  %5295 = vmatprep.subr.mxu1 %v5913_v0 }
  0x7e   :  { %5281 = vmatprep.mubr.msk.f32.mxu1 %vm5915_vm0, %v5913_v0 }
  0x81   :  { %5282 = vmatmul.mubr.msk.f32.vlgmr.msra.gmra.mxu1 %vm437_vm2, %v717_v61 }
  0x82   :  { %5296 = vmatpush3.msra.mxu1 %v6087_v54  ;;  %5303 = vmatprep.mubr.msk.f32.mxu1 %vm5915_vm0, %v5913_v0 }
  0x83   :  { %5297 = vmatprep.subr.mxu1 %v5913_v0 }
  0x84   :  { %5298 = vmatpush3.msra.mxu1 %v6094_v55 }
  0x85   :  { %5299 = vmatprep.subr.mxu1 %v5913_v0 }
  0x86   :  { %5300 = vmatpush3.msra.mxu1 %v6105_v58 }
  0x87   :  { %5301 = vmatprep.subr.mxu1 %v5913_v0 }
  0x88   :  { %5302 = vmatpush3.msra.mxu1 %v6117_v60 }
  0x89   :  { %5317 = vmatprep.subr.mxu1 %v5913_v0 }
 0x12e   :  { %v5238_v63 = vpop.f32.mrf.mxu0 }
 0x12f   :  { %v280_v1 = vadd.f32 %v5238_v63, %v5087_v62 }
 0x130   :  { %v274_v2 = vpop.f32.mrf.mxu0 }
 0x131   :  { %v302_v4 = vcombine.high %v280_v1, %v280_v1  ;;  %v309_v6 = vrot.slane %v280_v1, %v6045_v15  ;;  %5092 = vst.sshfl [vmem:[#allocation2 + $0x8] sm:$0x3 pattern:$0x76325410] %v280_v1  ;;  %v275_v7 = vadd.f32 %v5087_v62, %v274_v2 }
 0x133   :  { %v316_v8 = vrot.slane %v302_v4, %v6045_v15  ;;  %v317_v9 = vcombine.high %v309_v6, %v309_v6  ;;  %5093 = vst.sshfl [vmem:[#allocation2 + $0xc] sm:$0x3 pattern:$0x76325410] %v302_v4  ;;  %v285_v10 = vcombine.high %v275_v7, %v275_v7  ;;  %v292_v11 = vrot.slane %v275_v7, %v6045_v15 }
 0x134   :  { %5090 = vst.sshfl [vmem:[#allocation2] sm:$0x3 pattern:$0x76325410] %v275_v7 }
 0x135   :  { %v6143_v12 = vpop.f32.mrf.mxu1  ;;  %v318_v13 = vcombine.high %v316_v8, %v316_v8  ;;  %332 = vst [vmem:[#allocation2 + $0xa] sm:$0x3] %v317_v9  ;;  %v299_v14 = vrot.slane %v285_v10, %v6045_v15  ;;  %v300_v16 = vcombine.high %v292_v11, %v292_v11  ;;  %5091 = vst.sshfl [vmem:[#allocation2 + $0x4] sm:$0x3 pattern:$0x76325410] %v285_v10 }
 0x136   :  { %v716_v8 = vld [vmem:[#allocation10] sm:$0x3]  ;;  %v527_v11 = vcombine.high %v6143_v12, %v6143_v12 }
 0x137   :  { %v5249_v17 = vpop.f32.mrf.mxu1  ;;  %334 = vst [vmem:[#allocation2 + $0xe] sm:$0x3] %v318_v13  ;;  %v301_v18 = vcombine.high %v299_v14, %v299_v14  ;;  %328 = vst [vmem:[#allocation2 + $0x2] sm:$0x3] %v300_v16  ;;  %v1074_v10 = vrot.slane %v716_v8, %v6165_v47  ;;  %v6188_v13 = vrot.slane %v6143_v12, %v6045_v15 }
 0x138   :  { %v6195_v17 = vrot.slane %v527_v11, %v6045_v15 }
 0x139   :  { %v6146_v19 = vpop.f32.mrf.mxu1  ;;  %330 = vst [vmem:[#allocation2 + $0x6] sm:$0x3] %v301_v18 }
 0x13a   :  { %v6192_v14 = vrot.slane %v6146_v19, %v6045_v15 }
 0x13b   :  { %v5252_v20 = vpop.f32.mrf.mxu1  ;;  %v719_v23 = vld [vmem:[#allocation2] sm:$0x3] }
 0x13c   :  { %v6200_v20 = vcombine.high %v6188_v13, %v6188_v13 }
 0x13d   :  { %v6148_v21 = vpop.f32.mrf.mxu1 }
 0x13e   :  { %v6204_v12 = vrot.slane %v6148_v21, %v6045_v15 }
 0x13f   :  { %v5255_v22 = vpop.f32.mrf.mxu1 }
 0x141   :  { %v789_v24 = vpop.f32.mrf.mxu1 }
 0x142   :  { %v793_v25 = vadd.f32 %v789_v24, %v719_v23 }
 0x143   :  { %v5283_v26 = vpop.f32.mrf.mxu1 }
 0x144   :  { %5475 = vtanh.f32 %v793_v25  ;;  %v5103_v29 = vmul.f32 -1.442695, %v793_v25  ;;  %v544_v26 = vcombine.high %v6146_v19, %v6146_v19 }
 0x146   :  { %5477 = vpow2.f32 %v5103_v29 }
 0x151   :  { %v5476_v27 = vpop.eup %5475 }
 0x152   :  { %807 = vrot.lane.b32.xlu0 %v5476_v27, %s5916_s9 }
 0x153   :  { %v5478_v30 = vpop.eup %5477 }
 0x154   :  { %v797_v31 = vadd.f32 1.0, %v5478_v30 }
 0x156   :  { %802 = vrot.lane.b32.xlu0 %v718_v28, %s5905_s4  ;;  %5479 = vrcp.f32 %v797_v31  ;;  %v6213_v28 = vcombine.high %v6195_v17, %v6195_v17 }
 0x163   :  { %v5480_v32 = vpop.eup %5479 }
 0x1c4   :  { %v808_v33 = vpop.permute.xlu0 %807 }
 0x1c5   :  { %v810_v34 = vmul.f32 %v5480_v32, %v808_v33  ;;  %v6220_v33 = vcombine.high %v6204_v12, %v6204_v12 }
 0x1c7   :  { %812 = vrot.lane.b32.xlu1 %v810_v34, %s5905_s4  ;;  %v6223_v34 = vrot.slane %v544_v26, %v6045_v15  ;;  %v580_v26 = vld [vmem:[#allocation15 + $0x8] sm:$0xff] }
 0x1c8   :  { %v803_v35 = vpop.permute.xlu0 %802 }
 0x1c9   :  { %v805_v36 = vmul.f32 %v5480_v32, %v803_v35 }
 0x239   :  { %v813_v37 = vpop.permute.xlu1 %812 }
 0x23a   :  { %v6153_v38 = vadd.f32 %v813_v37, %v805_v36  ;;  %v6228_v37 = vcombine.high %v6192_v14, %v6192_v14 }
 0x23c   :  { %5481 = vtanh.f32 %v6153_v38 }
 0x249   :  { %v5482_v39 = vpop.eup %5481 }
 0x24a   :  { %818 = vrot.lane.b32.xlu1 %v5482_v39, %s5916_s9 }
 0x2bc   :  { %v819_v44 = vpop.permute.xlu1 %818 }
 0x2bd   :  { %v6160_v45 = vmul.f32 %v5480_v32, %v819_v44 }
 0x2bf   :  { %v903_v46 = vrot.slane %v6160_v45, %v6158_v43 }
 0x2c1   :  { %v904_v48 = vcombine.high %v903_v46, %v903_v46  ;;  %v911_v49 = vrot.slane %v903_v46, %v6158_v43 }
 0x2c3   :  { %v922_v50 = vrot.slane %v911_v49, %v6165_v47  ;;  %v918_v51 = vrot.slane %v904_v48, %v6158_v43  ;;  %v6237_v49 = vcombine.high %v6223_v34, %v6223_v34 }
 0x2c5   :  { %v934_v52 = vrot.slane %v922_v50, %v6045_v15  ;;  %v927_v57 = vcombine.high %v922_v50, %v922_v50  ;;  %v926_v63 = vrot.slane %v918_v51, %v6165_v47 }
 0x2c7   :  { %961 = vrot.lane.b32.xlu0 %v934_v52, %s5905_s4  ;;  %v942_v61 = vcombine.high %v934_v52, %v934_v52  ;;  %v941_v62 = vrot.slane %v927_v57, %v6045_v15  ;;  %v951_v2 = vrot.slane %v926_v63, %v6045_v15  ;;  %v944_v4 = vcombine.high %v926_v63, %v926_v63 }
 0x2c8   :  { %v6243_v63 = vsub.s32 1, %v6032_v5 }
 0x2c9   :  { %963 = vrot.lane.b32.xlu1 %v942_v61, %s5905_s4  ;;  %v943_v1 = vcombine.high %v941_v62, %v941_v62  ;;  %v959_v6 = vcombine.high %v951_v2, %v951_v2  ;;  %v958_v7 = vrot.slane %v944_v4, %v6045_v15 }
 0x2cb   :  { %965 = vrot.lane.b32.xlu0 %v941_v62, %s5905_s4  ;;  %v960_v9 = vcombine.high %v958_v7, %v958_v7 }
 0x2cd   :  { %967 = vrot.lane.b32.xlu1 %v943_v1, %s5905_s4 }
 0x2cf   :  { %969 = vrot.lane.b32.xlu0 %v951_v2, %s5905_s4 }
 0x2d1   :  { %971 = vrot.lane.b32.xlu1 %v959_v6, %s5905_s4 }
 0x2d3   :  { %973 = vrot.lane.b32.xlu0 %v958_v7, %s5905_s4  ;;  %v1085_v7 = vrot.slane %v716_v8, %v6243_v63 }
 0x2d5   :  { %975 = vrot.lane.b32.xlu1 %v960_v9, %s5905_s4 }
 0x2d9   :  { %1076 = vbcast.lane.b32.xlu1 %v1074_v10, 256 }
 0x339   :  { %v962_v16 = vpop.permute.xlu0 %961 }
 0x33a   :  { %v989_v18 = vmul.f32 %v962_v16, %v6192_v14  ;;  %v985_v27 = vmul.f32 %v962_v16, %v6188_v13  ;;  %v5918_v16 = vmov 0  }
 0x33b   :  { %v964_v22 = vpop.permute.xlu1 %963  ;;  %5472 = vset.pattern.permute.xlu0 %v5918_v16  ;;  %5471 = vset.pattern.permute.xlu1 %v5918_v16 }
 0x33c   :  { %v986_v23 = vmul.f32 %v964_v22, %v6200_v20  ;;  %v1028_v24 = vrot.slane %v989_v18, %v6045_v15  ;;  %v582_v18 = vld [vmem:[#allocation15 + $0x18] sm:$0xff] }
 0x33d   :  { %v966_v25 = vpop.permute.xlu0 %965  ;;  %5257 = vmatpush3.msra.mxu0 %v582_v18 }
 0x33e   :  { %v1061_v29 = vsel %vm1060_vm3, %v1028_v24, 0.0  ;;  %v1005_v21 = vcombine.low %v985_v27, %v986_v23  ;;  %v987_v31 = vmul.f32 %v966_v25, %v6195_v17  ;;  %5258 = vmatprep.subr.mxu0 %v5913_v0  ;;  %v581_v25 = vld [vmem:[#allocation15 + $0x10] sm:$0xff] }
 0x33f   :  { %v968_v30 = vpop.permute.xlu1 %967  ;;  %1062 = vadd.xlane.f32.xlu1 %v1061_v29  ;;  %5259 = vmatpush3.msra.mxu0 %v581_v25 }
 0x340   :  { %v988_v32 = vmul.f32 %v968_v30, %v6213_v28  ;;  %v1013_v42 = vrot.slane %v1005_v21, %v6045_v15  ;;  %5260 = vmatprep.subr.mxu0 %v5913_v0  ;;  %v579_v30 = vld [vmem:[#allocation15] sm:$0xff] }
 0x341   :  { %v970_v19 = vpop.permute.xlu0 %969  ;;  %5261 = vmatpush3.msra.mxu0 %v580_v26 }
 0x342   :  { %v1006_v35 = vcombine.low %v987_v31, %v988_v32  ;;  %v994_v36 = vmul.f32 %v970_v19, %v6220_v33  ;;  %v990_v48 = vmul.f32 %v970_v19, %v6228_v37  ;;  %5262 = vmatprep.subr.mxu0 %v5913_v0  ;;  %v6274_v32 = vld [vmem:[#allocation16 + $0x18] sm:$0xff]  ;;  %v6276_v19 = vld [vmem:[#allocation16 + $0x10] sm:$0xff] }
 0x343   :  { %v972_v39 = vpop.permute.xlu1 %971  ;;  %5263 = vmatpush3.msra.mxu0 %v579_v30 }
 0x344   :  { %v991_v40 = vmul.f32 %v972_v39, %v6223_v34  ;;  %v1052_v41 = vrot.slane %v994_v36, %v6045_v15  ;;  %v1020_v44 = vrot.slane %v1006_v35, %v6045_v15  ;;  %5265 = vmatmul.mubr.msk.f32.vlgmr.msra.gmra.mxu0 %vm437_vm2, %v6082_v53  ;;  %5284 = vmatprep.subr.mxu0 %v5913_v0  ;;  %v6294_v36 = vld [vmem:[#allocation16] sm:$0xff] }
 0x345   :  { %v974_v46 = vpop.permute.xlu0 %973  ;;  %5267 = vmatprep.mubr.msk.f32.mxu0 %vm5915_vm0, %v5913_v0  ;;  %5285 = vmatpush3.msra.mxu0 %v6274_v32 }
 0x346   :  { %v1067_v50 = vsel %vm1060_vm3, %v1052_v41, 0.0  ;;  %v1021_v51 = vcombine.low %v1013_v42, %v1020_v44  ;;  %v1029_v57 = vcombine.low %v990_v48, %v991_v40  ;;  %v992_v61 = vmul.f32 %v974_v46, %v6237_v49  ;;  %5286 = vmatprep.subr.mxu0 %v5913_v0 }
 0x347   :  { %1068 = vadd.xlane.f32.xlu0 %v1067_v50  ;;  %v976_v52 = vpop.permute.xlu1 %975  ;;  %5287 = vmatpush3.msra.mxu0 %v6276_v19 }
 0x348   :  { %v993_v62 = vmul.f32 %v976_v52, %v6204_v12  ;;  %v1057_v2 = vsel %vm437_vm2, %v1021_v51, 0.0  ;;  %v1037_v4 = vrot.slane %v1029_v57, %v6045_v15  ;;  %5268 = vmatmul.mubr.msk.f32.gmra.mxu0 %vm437_vm2, %v6096_v56  ;;  %v6291_v56 = vld [vmem:[#allocation16 + $0x8] sm:$0xff]  ;;  %5288 = vmatprep.subr.mxu0 %v5913_v0 }
 0x349   :  { %5270 = vmatprep.mubr.msk.f32.mxu0 %vm5915_vm0, %v5913_v0  ;;  %5289 = vmatpush3.msra.mxu0 %v6291_v56 }
 0x34a   :  { %v1030_v1 = vcombine.low %v992_v61, %v993_v62  ;;  %5290 = vmatprep.subr.mxu0 %v5913_v0 }
 0x34b   :  { %1058 = vadd.xlane.f32.xlu0 %v1057_v2  ;;  %v6251_v22 = vpop.permute.xlu1 %1076  ;;  %5291 = vmatpush3.msra.mxu0 %v6294_v36 }
 0x34c   :  { %v1044_v6 = vrot.slane %v1030_v1, %v6045_v15  ;;  %5271 = vmatmul.mubr.msk.f32.gmra.mxu0 %vm437_vm2, %v6112_v59  ;;  %5306 = vmatprep.subr.mxu0 %v5913_v0  ;;  %v1118_v59 = vand.u32 127, %v174_v3 }
 0x34d   :  { %5292 = vmatprep.mubr.msk.f32.mxu0 %vm5915_vm0, %v5913_v0 }
 0x34e   :  { %v1045_v9 = vcombine.low %v1037_v4, %v1044_v6  ;;  %v1123_v41 = vadd.s32 4294967288, %v1118_v59  ;;  %v6310_v44 = vsub.s32 %v1118_v59, %v6032_v5 }
 0x350   :  { %v1064_v11 = vsel %vm437_vm2, %v1045_v9, 0.0  ;;  %1087 = vbcast.lane.b32.xlu1 %v1085_v7, 256  ;;  %v6313_v46 = vsub.s32 %v1123_v41, %v6032_v5 }
 0x351   :  { %1065 = vadd.xlane.f32.xlu0 %v1064_v11 }
 0x354   :  { %1091 = vbcast.lane.b32.xlu1 %v1085_v7, 264 }
 0x367   :  { %1080 = vbcast.lane.b32.xlu0 %v1074_v10, 264 }
 0x3c8   :  { %v1063_v23 = vpop.xlane.xlu1 %1062 }
 0x3cc   :  { %v6253_v24 = vpop.permute.xlu1 %1087 }
 0x3d0   :  { %v1069_v8 = vpop.xlane.xlu0 %1068  ;;  %v6259_v10 = vpop.permute.xlu1 %1091 }
 0x3d1   :  { %v6264_v21 = vadd.f32 %v6259_v10, %v1069_v8 }
 0x3d4   :  { %v1059_v27 = vpop.xlane.xlu0 %1058 }
 0x3d5   :  { %v6256_v29 = vadd.f32 %v6251_v22, %v1059_v27 }
 0x3d7   :  { %1106 = vperm.xlu0 %5472, %v6256_v29  }
 0x3da   :  { %v1066_v31 = vpop.xlane.xlu0 %1065 }
 0x3db   :  { %1115 = vperm.xlu0 %5472, %v6264_v21   ;;  %v6299_v39 = vadd.f32 %v6253_v24, %v1066_v31 }
 0x3de   :  { %v6278_v35 = vpop.permute.xlu0 %1080 }
 0x3df   :  { %v6284_v53 = vadd.f32 %v6278_v35, %v1063_v23 }
 0x3e1   :  { %1109 = vperm.xlu1 %5471, %v6284_v53  }
 0x3e5   :  { %1112 = vperm.xlu1 %5471, %v6299_v39  }
 0x3e9   :  { %823 = vrot.lane.b32.xlu1 %v6160_v45, %s5905_s4 }
 0x404   :  { %v649_v2 = vpop.f32.mrf.mxu0 }
 0x406   :  { %v5266_v4 = vpop.f32.mrf.mxu0 }
 0x408   :  { %v654_v6 = vpop.f32.mrf.mxu0 }
 0x409   :  { %v683_v7 = vcombine.high %v654_v6, %v654_v6  ;;  %v690_v9 = vrot.slane %v654_v6, %v6045_v15 }
 0x40a   :  { %v5269_v11 = vpop.f32.mrf.mxu0 }
 0x40b   :  { %v697_v16 = vrot.slane %v683_v7, %v6045_v15  ;;  %v698_v18 = vcombine.high %v690_v9, %v690_v9 }
 0x40c   :  { %v659_v23 = vpop.f32.mrf.mxu0 }
 0x40d   :  { %v1236_v8 = vcombine.low %v698_v18, %v697_v16  ;;  %v699_v25 = vcombine.high %v697_v16, %v697_v16  ;;  %v706_v26 = vrot.slane %v659_v23, %v6045_v15 }
 0x40e   :  { %v5272_v27 = vpop.f32.mrf.mxu0 }
 0x40f   :  { %v1244_v30 = vrot.slane %v1236_v8, %v6045_v15  ;;  %v1237_v31 = vcombine.low %v699_v25, %v706_v26 }
 0x411   :  { %v1251_v59 = vrot.slane %v1237_v31, %v6045_v15 }
 0x452   :  { %v1107_v40 = vpop.permute.xlu0 %1106 }
 0x453   :  { %v1122_v52 = vrot.slane %v1107_v40, %v6310_v44  ;;  %v6339_v40 = vcombine.low %v1244_v30, %v1251_v59  ;;  %v666_v59 = vcombine.high %v649_v2, %v649_v2 }
 0x456   :  { %v1116_v48 = vpop.permute.xlu0 %1115 }
 0x457   :  { %v1137_v45 = vrot.slane %v1116_v48, %v6313_v46 }
 0x45c   :  { %v1110_v42 = vpop.permute.xlu1 %1109 }
 0x45d   :  { %v1127_v50 = vrot.slane %v1110_v42, %v6313_v46 }
 0x45f   :  { %v1129_v57 = vsel %vm1128_vm4, %v1127_v50, %v1122_v52 }
 0x460   :  { %v1113_v51 = vpop.permute.xlu1 %1112 }
 0x461   :  { %v1133_v3 = vrot.slane %v1113_v51, %v6310_v44 }
 0x463   :  { %v1138_v61 = vsel %vm1128_vm4, %v1137_v45, %v1133_v3 }
 0x464   :  { %v824_v62 = vpop.permute.xlu1 %823  ;;  %v1140_v5 = vsel %vm1139_vm5, %v1138_v61, %v1129_v57 }
 0x465   :  { %5293 = vmatmul.mubr.msk.f32.vlgmr.msra.gmra.mxu0 %vm437_vm2, %v824_v62  ;;  %v1143_v1 = vsel %vm1142_vm6, %v1140_v5, -inf }
 0x466   :  { %1144 = vmax.xlane.f32.xlu0 %v1143_v1  ;;  %5307 = vmatpush3.msra.mxu0 %v6274_v32 }
 0x467   :  { %5308 = vmatprep.subr.mxu0 %v5913_v0  ;;  %5314 = vmatprep.mubr.msk.f32.mxu0 %vm5915_vm0, %v5913_v0 }
 0x468   :  { %5309 = vmatpush3.msra.mxu0 %v6276_v19 }
 0x469   :  { %5310 = vmatprep.subr.mxu0 %v5913_v0 }
 0x46a   :  { %5311 = vmatpush3.msra.mxu0 %v6291_v56 }
 0x46b   :  { %5312 = vmatprep.subr.mxu0 %v5913_v0 }
 0x46c   :  { %5313 = vmatpush3.msra.mxu0 %v6294_v36 }
 0x46d   :  { %5328 = vmatprep.subr.mxu0 %v5913_v0 }
 0x4ef   :  { %v1145_v41 = vpop.xlane.xlu0 %1144 }
 0x4f0   :  { %v1150_v42 = vrot.slane %v1145_v41, %v6165_v47  ;;  %v1154_v48 = vrot.slane %v1145_v41, %v6243_v63  ;;  %v673_v41 = vrot.slane %v649_v2, %v6045_v15 }
 0x4f2   :  { %v1157_v50 = vsub.f32 %v6256_v29, %v1150_v42  ;;  %v1158_v51 = vsub.f32 %v6284_v53, %v1150_v42  ;;  %v1159_v45 = vsub.f32 %v6299_v39, %v1154_v48  ;;  %v1160_v57 = vsub.f32 %v6264_v21, %v1154_v48 }
 0x4f3   :  { %v680_v42 = vrot.slane %v666_v59, %v6045_v15  ;;  %v681_v48 = vcombine.high %v673_v41, %v673_v41 }
 0x4f4   :  { %v1161_v52 = vmul.f32 1.442695, %v1157_v50  ;;  %v1163_v3 = vmul.f32 1.442695, %v1158_v51  ;;  %v1165_v61 = vmul.f32 1.442695, %v1159_v45 }
 0x4f5   :  { %v1167_v62 = vmul.f32 1.442695, %v1160_v57  ;;  %v682_v50 = vcombine.high %v680_v42, %v680_v42  ;;  %v1212_v51 = vcombine.low %v673_v41, %v681_v48  ;;  %v707_v57 = vcombine.high %v706_v26, %v706_v26 }
 0x4f6   :  { %5483 = vpow2.f32 %v1161_v52 }
 0x4f7   :  { %5485 = vpow2.f32 %v1163_v3  ;;  %v1213_v52 = vcombine.low %v680_v42, %v682_v50  ;;  %v1220_v45 = vrot.slane %v1212_v51, %v6045_v15 }
 0x4f8   :  { %5487 = vpow2.f32 %v1165_v61  ;;  %v6360_v61 = vrot.slane %v690_v9, %v6045_v15 }
 0x4f9   :  { %5489 = vpow2.f32 %v1167_v62  ;;  %v1227_v3 = vrot.slane %v1213_v52, %v6045_v15 }
 0x4fb   :  { %v6362_v62 = vcombine.low %v1220_v45, %v1227_v3 }
 0x503   :  { %v5484_v5 = vpop.eup %5483 }
 0x504   :  { %1174 = vperm.xlu1 %5471, %v5484_v5   ;;  %v5486_v1 = vpop.eup %5485  ;;  %v6365_v5 = vrot.slane %v707_v57, %v6045_v15 }
 0x505   :  { %v5488_v4 = vpop.eup %5487 }
 0x506   :  { %v5490_v29 = vpop.eup %5489 }
 0x508   :  { %1177 = vperm.xlu1 %5471, %v5486_v1  }
 0x50c   :  { %1180 = vperm.xlu1 %5471, %v5488_v4  }
 0x510   :  { %1183 = vperm.xlu1 %5471, %v5490_v29  }
 0x525   :  { %v893_v53 = vpop.f32.mrf.mxu0 }
 0x526   :  { %v1295_v45 = vrot.slane %v893_v53, 1 }
 0x527   :  { %v5294_v6 = vpop.f32.mrf.mxu0 }
 0x57f   :  { %v1175_v39 = vpop.permute.xlu1 %1174 }
 0x580   :  { %v1188_v18 = vrot.slane %v1175_v39, %v6310_v44  ;;  %v1264_v1 = vmul.f32 %v6362_v62, %v1175_v39 }
 0x582   :  { %v1268_v26 = vsel %vm437_vm2, %v1264_v1, 0.0 }
 0x583   :  { %v1178_v7 = vpop.permute.xlu1 %1177 }
 0x584   :  { %v1192_v21 = vrot.slane %v1178_v7, %v6313_v46  ;;  %v1265_v2 = vmul.f32 %v6360_v61, %v1178_v7 }
 0x586   :  { %v1193_v25 = vsel %vm1128_vm4, %v1192_v21, %v1188_v18  ;;  %v1269_v29 = vsel %vm1060_vm3, %v1265_v2, 0.0 }
 0x587   :  { %v1181_v11 = vpop.permute.xlu1 %1180  ;;  %v1270_v21 = vadd.f32 %v1269_v29, %v1268_v26 }
 0x588   :  { %v1197_v23 = vrot.slane %v1181_v11, %v6310_v44  ;;  %v1266_v6 = vmul.f32 %v6339_v40, %v1181_v11 }
 0x58a   :  { %v1277_v18 = vsel %vm437_vm2, %v1266_v6, 0.0 }
 0x58b   :  { %v1184_v16 = vpop.permute.xlu1 %1183 }
 0x58c   :  { %v1201_v8 = vrot.slane %v1184_v16, %v6313_v46  ;;  %v1267_v4 = vmul.f32 %v6365_v5, %v1184_v16 }
 0x58e   :  { %v1202_v27 = vsel %vm1128_vm4, %v1201_v8, %v1197_v23  ;;  %v1278_v9 = vsel %vm1060_vm3, %v1267_v4, 0.0  ;;  %v1271_v8 = vrot.slane %v1270_v21, 4 }
 0x58f   :  { %v1203_v30 = vsel %vm1139_vm5, %v1202_v27, %v1193_v25  ;;  %v1279_v23 = vadd.f32 %v1278_v9, %v1277_v18 }
 0x590   :  { %v1205_v31 = vsel %vm1142_vm6, %v1203_v30, 0.0  ;;  %v1272_v27 = vadd.f32 %v1271_v8, %v1270_v21 }
 0x591   :  { %1206 = vadd.xlane.f32.xlu1 %v1205_v31  ;;  %v1280_v25 = vrot.slane %v1279_v23, 4 }
 0x592   :  { %v1273_v39 = vrot.slane %v1272_v27, 2 }
 0x593   :  { %v1281_v7 = vadd.f32 %v1280_v25, %v1279_v23 }
 0x594   :  { %v1274_v31 = vadd.f32 %v1273_v39, %v1272_v27 }
 0x595   :  { %v1282_v16 = vrot.slane %v1281_v7, 2 }
 0x596   :  { %v1275_v41 = vrot.slane %v1274_v31, 1 }
 0x597   :  { %v1283_v59 = vadd.f32 %v1282_v16, %v1281_v7 }
 0x598   :  { %v1276_v42 = vadd.f32 %v1275_v41, %v1274_v31 }
 0x599   :  { %v1284_v11 = vrot.slane %v1283_v59, 1 }
 0x59b   :  { %v1285_v50 = vadd.f32 %v1284_v11, %v1283_v59 }
 0x61a   :  { %v1207_v30 = vpop.xlane.xlu1 %1206 }
 0x61b   :  { %5491 = vrcp.f32 %v1207_v30 }
 0x628   :  { %v5492_v48 = vpop.eup %5491 }
 0x629   :  { %v1289_v51 = vrot.slane %v5492_v48, 1  ;;  %v1292_v52 = vmul.f32 %v5492_v48, %v1276_v42 }
 0x62b   :  { %v1293_v3 = vmul.f32 %v1289_v51, %v1285_v50  ;;  %v1298_v57 = vadd.f32 %v1292_v52, %v893_v53 }
 0x62d   :  { %v1299_v2 = vadd.f32 %v1295_v45, %v1293_v3 }
 0x62f   :  { %5493 = vtanh.f32 %v1299_v2 }
 0x630   :  { %5495 = vtanh.f32 %v1298_v57 }
 0x63c   :  { %v5494_v1 = vpop.eup %5493 }
 0x63d   :  { %v1304_v4 = vrot.slane %v5494_v1, 7  ;;  %v5496_v29 = vpop.eup %5495 }
 0x63f   :  { %v1305_v6 = vsel %vm1139_vm5, %v1304_v4, %v5496_v29 }
 0x640   :  { %1307 = vst.msk [vmem:[#allocation3] sm:$0x3] %vm1060_vm3, %v1305_v6  ;;  %5304 = vmatmul.mubr.msk.f32.vlgmr.msra.gmra.mxu1 %vm437_vm2, %v1305_v6 }
 0x641   :  { %5318 = vmatpush3.msra.mxu1 %v6087_v54  ;;  %5325 = vmatprep.mubr.msk.f32.mxu1 %vm5915_vm0, %v5913_v0 }
 0x642   :  { %5319 = vmatprep.subr.mxu1 %v5913_v0 }
 0x643   :  { %5320 = vmatpush3.msra.mxu1 %v6094_v55  ;;  %v1309_v55 = vld [vmem:[#allocation2 + $0x2] sm:$0x3] }
 0x644   :  { %5321 = vmatprep.subr.mxu1 %v5913_v0 }
 0x645   :  { %5322 = vmatpush3.msra.mxu1 %v6105_v58 }
 0x646   :  { %5323 = vmatprep.subr.mxu1 %v5913_v0 }
 0x647   :  { %v5126_v53 = vld.sshfl [vmem:[#allocation3] sm:$0x11 pattern:$0x75316420]  ;;  %5324 = vmatpush3.msra.mxu1 %v6117_v60 }
 0x648   :  { %v4823_v26 = vcombine.high %v5126_v53, %v5126_v53  ;;  %v4830_v54 = vrot.slane %v5126_v53, %v6158_v43  ;;  %5339 = vmatprep.subr.mxu1 %v5913_v0 }
 0x64a   :  { %v4837_v9 = vrot.slane %v4823_v26, %v6158_v43  ;;  %4841 = vst.msk [vmem:[#allocation18] sm:$0x1] %vm4840_vm7, %v4830_v54 }
 0x64c   :  { %4842 = vst.msk [vmem:[#allocation18 + $0x8] sm:$0x1] %vm4840_vm7, %v4837_v9 }
 0x700   :  { %v1378_v21 = vpop.f32.mrf.mxu1 }
 0x701   :  { %v1382_v58 = vadd.f32 %v1378_v21, %v1309_v55 }
 0x702   :  { %v5305_v18 = vpop.f32.mrf.mxu1 }
 0x703   :  { %5497 = vtanh.f32 %v1382_v58  ;;  %v5106_v60 = vmul.f32 -1.442695, %v1382_v58 }
 0x705   :  { %5499 = vpow2.f32 %v5106_v60 }
 0x710   :  { %v5498_v23 = vpop.eup %5497 }
 0x711   :  { %1392 = vrot.lane.b32.xlu0 %v5498_v23, %s5916_s9 }
 0x712   :  { %v5500_v8 = vpop.eup %5499 }
 0x713   :  { %v1386_v25 = vadd.f32 1.0, %v5500_v8 }
 0x715   :  { %5501 = vrcp.f32 %v1386_v25 }
 0x722   :  { %v5502_v27 = vpop.eup %5501 }
 0x723   :  { %v1390_v39 = vmul.f32 %v5502_v27, %v6153_v38 }
 0x783   :  { %v1393_v7 = vpop.permute.xlu0 %1392 }
 0x784   :  { %v1395_v30 = vmul.f32 %v5502_v27, %v1393_v7 }
 0x786   :  { %1397 = vrot.lane.b32.xlu1 %v1395_v30, %s5905_s4 }
 0x7f8   :  { %v1398_v16 = vpop.permute.xlu1 %1397 }
 0x7f9   :  { %v6395_v31 = vadd.f32 %v1398_v16, %v1390_v39 }
 0x7fb   :  { %5503 = vtanh.f32 %v6395_v31 }
 0x808   :  { %v5504_v59 = vpop.eup %5503 }
 0x809   :  { %1403 = vrot.lane.b32.xlu0 %v5504_v59, %s5916_s9 }
 0x87b   :  { %v1404_v41 = vpop.permute.xlu0 %1403 }
 0x87c   :  { %v6399_v11 = vmul.f32 %v5502_v27, %v1404_v41 }
 0x87e   :  { %v1488_v42 = vrot.slane %v6399_v11, %v6158_v43 }
 0x880   :  { %v1489_v48 = vcombine.high %v1488_v42, %v1488_v42  ;;  %v1496_v50 = vrot.slane %v1488_v42, %v6158_v43 }
 0x882   :  { %v1507_v51 = vrot.slane %v1496_v50, %v6165_v47  ;;  %v1503_v38 = vrot.slane %v1489_v48, %v6158_v43 }
 0x884   :  { %v1519_v52 = vrot.slane %v1507_v51, %v6045_v15  ;;  %v1511_v45 = vrot.slane %v1503_v38, %v6165_v47  ;;  %v1512_v1 = vcombine.high %v1507_v51, %v1507_v51 }
 0x886   :  { %1546 = vrot.lane.b32.xlu0 %v1519_v52, %s5905_s4  ;;  %v1536_v3 = vrot.slane %v1511_v45, %v6045_v15  ;;  %v1529_v57 = vcombine.high %v1511_v45, %v1511_v45  ;;  %v1527_v2 = vcombine.high %v1519_v52, %v1519_v52  ;;  %v1526_v29 = vrot.slane %v1512_v1, %v6045_v15 }
 0x888   :  { %1554 = vrot.lane.b32.xlu1 %v1536_v3, %s5905_s4  ;;  %v1543_v4 = vrot.slane %v1529_v57, %v6045_v15  ;;  %v1528_v6 = vcombine.high %v1526_v29, %v1526_v29  ;;  %v1544_v53 = vcombine.high %v1536_v3, %v1536_v3 }
 0x88a   :  { %1548 = vrot.lane.b32.xlu0 %v1527_v2, %s5905_s4  ;;  %v1545_v26 = vcombine.high %v1543_v4, %v1543_v4 }
 0x88c   :  { %1558 = vrot.lane.b32.xlu1 %v1543_v4, %s5905_s4 }
 0x88e   :  { %1550 = vrot.lane.b32.xlu0 %v1526_v29, %s5905_s4 }
 0x892   :  { %1552 = vrot.lane.b32.xlu0 %v1528_v6, %s5905_s4 }
 0x896   :  { %1556 = vrot.lane.b32.xlu0 %v1544_v53, %s5905_s4 }
 0x89a   :  { %1560 = vrot.lane.b32.xlu0 %v1545_v26, %s5905_s4 }
 0x8f8   :  { %v1547_v54 = vpop.permute.xlu0 %1546 }
 0x8f9   :  { %v1574_v9 = vmul.f32 %v1547_v54, %v6192_v14  ;;  %v1570_v60 = vmul.f32 %v1547_v54, %v6188_v13 }
 0x8fa   :  { %v1555_v8 = vpop.permute.xlu1 %1554 }
 0x8fb   :  { %v1613_v55 = vrot.slane %v1574_v9, %v6045_v15  ;;  %v1579_v16 = vmul.f32 %v1555_v8, %v6220_v33  ;;  %v1575_v51 = vmul.f32 %v1555_v8, %v6228_v37 }
 0x8fc   :  { %v1549_v21 = vpop.permute.xlu0 %1548 }
 0x8fd   :  { %v1645_v58 = vsel %vm1060_vm3, %v1613_v55, 0.0  ;;  %v1571_v23 = vmul.f32 %v1549_v21, %v6200_v20  ;;  %v1637_v45 = vrot.slane %v1579_v16, %v6045_v15 }
 0x8fe   :  { %1646 = vadd.xlane.f32.xlu0 %v1645_v58  ;;  %v1559_v50 = vpop.permute.xlu1 %1558 }
 0x8ff   :  { %v1590_v27 = vcombine.low %v1570_v60, %v1571_v23  ;;  %v1577_v3 = vmul.f32 %v1559_v50, %v6237_v49  ;;  %v1651_v29 = vsel %vm1060_vm3, %v1637_v45, 0.0 }
 0x900   :  { %v1551_v18 = vpop.permute.xlu0 %1550 }
 0x901   :  { %v1572_v7 = vmul.f32 %v1551_v18, %v6195_v17  ;;  %v1598_v42 = vrot.slane %v1590_v27, %v6045_v15 }
 0x904   :  { %v1553_v25 = vpop.permute.xlu0 %1552 }
 0x905   :  { %v1573_v30 = vmul.f32 %v1553_v25, %v6213_v28 }
 0x907   :  { %v1591_v39 = vcombine.low %v1572_v7, %v1573_v30 }
 0x908   :  { %v1557_v59 = vpop.permute.xlu0 %1556 }
 0x909   :  { %v1576_v41 = vmul.f32 %v1557_v59, %v6223_v34  ;;  %v1605_v48 = vrot.slane %v1591_v39, %v6045_v15 }
 0x90b   :  { %v1606_v38 = vcombine.low %v1598_v42, %v1605_v48  ;;  %v1614_v57 = vcombine.low %v1575_v51, %v1576_v41 }
 0x90c   :  { %v1561_v52 = vpop.permute.xlu0 %1560 }
 0x90d   :  { %v1578_v2 = vmul.f32 %v1561_v52, %v6204_v12  ;;  %v1642_v1 = vsel %vm437_vm2, %v1606_v38, 0.0  ;;  %v1622_v6 = vrot.slane %v1614_v57, %v6045_v15 }
 0x90e   :  { %1643 = vadd.xlane.f32.xlu1 %v1642_v1 }
 0x90f   :  { %v1615_v4 = vcombine.low %v1577_v3, %v1578_v2 }
 0x911   :  { %v1629_v53 = vrot.slane %v1615_v4, %v6045_v15 }
 0x912   :  { %1652 = vadd.xlane.f32.xlu1 %v1651_v29 }
 0x913   :  { %v1630_v26 = vcombine.low %v1622_v6, %v1629_v53 }
 0x915   :  { %v1648_v54 = vsel %vm437_vm2, %v1630_v26, 0.0 }
 0x916   :  { %1649 = vadd.xlane.f32.xlu0 %v1648_v54 }
 0x987   :  { %v1647_v9 = vpop.xlane.xlu0 %1646 }
 0x988   :  { %v1655_v55 = vadd.f32 %v1647_v9, %v6278_v35 }
 0x98a   :  { %1666 = vperm.xlu1 %5471, %v1655_v55  }
 0x997   :  { %v1644_v21 = vpop.xlane.xlu1 %1643 }
 0x998   :  { %v1654_v58 = vadd.f32 %v1644_v21, %v6251_v22 }
 0x99a   :  { %1663 = vperm.xlu0 %5472, %v1654_v58  }
 0x99b   :  { %v1653_v18 = vpop.xlane.xlu1 %1652 }
 0x99c   :  { %v1657_v23 = vadd.f32 %v1653_v18, %v6259_v10 }
 0x99e   :  { %1672 = vperm.xlu0 %5472, %v1657_v23  }
 0x99f   :  { %v1650_v60 = vpop.xlane.xlu0 %1649 }
 0x9a0   :  { %v1656_v8 = vadd.f32 %v1650_v60, %v6253_v24 }
 0x9a2   :  { %1669 = vperm.xlu1 %5471, %v1656_v8  }
 0x9a6   :  { %1408 = vrot.lane.b32.xlu1 %v6399_v11, %s5905_s4 }
 0xa05   :  { %v1667_v27 = vpop.permute.xlu1 %1666 }
 0xa06   :  { %v1681_v16 = vrot.slane %v1667_v27, %v6313_v46 }
 0xa15   :  { %v1664_v25 = vpop.permute.xlu0 %1663 }
 0xa16   :  { %v1677_v30 = vrot.slane %v1664_v25, %v6310_v44 }
 0xa18   :  { %v1682_v42 = vsel %vm1128_vm4, %v1681_v16, %v1677_v30 }
 0xa19   :  { %v1673_v7 = vpop.permute.xlu0 %1672 }
 0xa1a   :  { %v1690_v59 = vrot.slane %v1673_v7, %v6313_v46 }
 0xa1d   :  { %v1670_v39 = vpop.permute.xlu1 %1669 }
 0xa1e   :  { %v1686_v41 = vrot.slane %v1670_v39, %v6310_v44 }
 0xa20   :  { %v1691_v48 = vsel %vm1128_vm4, %v1690_v59, %v1686_v41 }
 0xa21   :  { %v1409_v50 = vpop.permute.xlu1 %1408  ;;  %v1692_v51 = vsel %vm1139_vm5, %v1691_v48, %v1682_v42 }
 0xa22   :  { %5315 = vmatmul.mubr.msk.f32.vlgmr.msra.gmra.mxu0 %vm437_vm2, %v1409_v50  ;;  %v1694_v11 = vsel %vm1142_vm6, %v1692_v51, -inf }
 0xa23   :  { %1695 = vmax.xlane.f32.xlu0 %v1694_v11  ;;  %5329 = vmatpush3.msra.mxu0 %v6274_v32 }
 0xa24   :  { %5330 = vmatprep.subr.mxu0 %v5913_v0  ;;  %5336 = vmatprep.mubr.msk.f32.mxu0 %vm5915_vm0, %v5913_v0 }
 0xa25   :  { %5331 = vmatpush3.msra.mxu0 %v6276_v19 }
 0xa26   :  { %5332 = vmatprep.subr.mxu0 %v5913_v0 }
 0xa27   :  { %5333 = vmatpush3.msra.mxu0 %v6291_v56 }
 0xa28   :  { %5334 = vmatprep.subr.mxu0 %v5913_v0 }
 0xa29   :  { %5335 = vmatpush3.msra.mxu0 %v6294_v36 }
 0xa2a   :  { %5350 = vmatprep.subr.mxu0 %v5913_v0 }
 0xaac   :  { %v1696_v38 = vpop.xlane.xlu0 %1695 }
 0xaad   :  { %v1701_v52 = vrot.slane %v1696_v38, %v6165_v47  ;;  %v1705_v45 = vrot.slane %v1696_v38, %v6243_v63 }
 0xaaf   :  { %v1708_v3 = vsub.f32 %v1654_v58, %v1701_v52  ;;  %v1709_v57 = vsub.f32 %v1655_v55, %v1701_v52  ;;  %v1710_v1 = vsub.f32 %v1656_v8, %v1705_v45  ;;  %v1711_v29 = vsub.f32 %v1657_v23, %v1705_v45 }
 0xab1   :  { %v1712_v2 = vmul.f32 1.442695, %v1708_v3  ;;  %v1714_v4 = vmul.f32 1.442695, %v1709_v57  ;;  %v1716_v6 = vmul.f32 1.442695, %v1710_v1 }
 0xab2   :  { %v1718_v53 = vmul.f32 1.442695, %v1711_v29 }
 0xab3   :  { %5505 = vpow2.f32 %v1712_v2 }
 0xab4   :  { %5507 = vpow2.f32 %v1714_v4 }
 0xab5   :  { %5509 = vpow2.f32 %v1716_v6 }
 0xab6   :  { %5511 = vpow2.f32 %v1718_v53 }
 0xac0   :  { %v5506_v26 = vpop.eup %5505 }
 0xac1   :  { %1725 = vperm.xlu1 %5471, %v5506_v26   ;;  %v5508_v54 = vpop.eup %5507 }
 0xac2   :  { %v5510_v9 = vpop.eup %5509 }
 0xac3   :  { %v5512_v21 = vpop.eup %5511 }
 0xac5   :  { %1728 = vperm.xlu1 %5471, %v5508_v54  }
 0xac9   :  { %1731 = vperm.xlu1 %5471, %v5510_v9  }
 0xacd   :  { %1734 = vperm.xlu1 %5471, %v5512_v21  }
 0xae2   :  { %v1478_v58 = vpop.f32.mrf.mxu0 }
 0xae4   :  { %v5316_v55 = vpop.f32.mrf.mxu0 }
 0xb3c   :  { %v1726_v18 = vpop.permute.xlu1 %1725 }
 0xb3d   :  { %v1739_v27 = vrot.slane %v1726_v18, %v6310_v44  ;;  %v1763_v48 = vmul.f32 %v1726_v18, %v6362_v62 }
 0xb3f   :  { %v1767_v38 = vsel %vm437_vm2, %v1763_v48, 0.0  ;;  %v6488_v48 = vld [vmem:[%s7173_s6 + $0x18] sm:$0xff] }
 0xb40   :  { %v1729_v60 = vpop.permute.xlu1 %1728 }
 0xb41   :  { %v1743_v23 = vrot.slane %v1729_v60, %v6313_v46  ;;  %v1764_v42 = vmul.f32 %v1729_v60, %v6360_v61 }
 0xb43   :  { %v1744_v39 = vsel %vm1128_vm4, %v1743_v23, %v1739_v27  ;;  %v1768_v51 = vsel %vm1060_vm3, %v1764_v42, 0.0  ;;  %v1794_v27 = vrot.slane %v1478_v58, 1 }
 0xb44   :  { %v1732_v8 = vpop.permute.xlu1 %1731  ;;  %v1769_v45 = vadd.f32 %v1768_v51, %v1767_v38 }
 0xb45   :  { %v1748_v7 = vrot.slane %v1732_v8, %v6310_v44  ;;  %v1765_v11 = vmul.f32 %v1732_v8, %v6339_v40 }
 0xb46   :  { %v1770_v2 = vrot.slane %v1769_v45, 4 }
 0xb47   :  { %v1776_v3 = vsel %vm437_vm2, %v1765_v11, 0.0  ;;  %v6511_v11 = vld [vmem:[%s7173_s6] sm:$0xff] }
 0xb48   :  { %v1735_v25 = vpop.permute.xlu1 %1734  ;;  %v1771_v4 = vadd.f32 %v1770_v2, %v1769_v45 }
 0xb49   :  { %v1752_v30 = vrot.slane %v1735_v25, %v6313_v46  ;;  %v1766_v50 = vmul.f32 %v1735_v25, %v6365_v5 }
 0xb4a   :  { %v1772_v53 = vrot.slane %v1771_v4, 2 }
 0xb4b   :  { %v1753_v16 = vsel %vm1128_vm4, %v1752_v30, %v1748_v7  ;;  %v1777_v52 = vsel %vm1060_vm3, %v1766_v50, 0.0  ;;  %v6504_v50 = vld [vmem:[%s7173_s6 + $0x8] sm:$0xff] }
 0xb4c   :  { %v1754_v59 = vsel %vm1139_vm5, %v1753_v16, %v1744_v39  ;;  %v1778_v57 = vadd.f32 %v1777_v52, %v1776_v3  ;;  %v1773_v54 = vadd.f32 %v1772_v53, %v1771_v4  ;;  %v1809_v3 = vld [vmem:[#allocation2 + $0x4] sm:$0x3] }
 0xb4d   :  { %v1756_v41 = vsel %vm1142_vm6, %v1754_v59, 0.0 }
 0xb4e   :  { %1757 = vadd.xlane.f32.xlu1 %v1756_v41  ;;  %v1779_v1 = vrot.slane %v1778_v57, 4  ;;  %v1774_v21 = vrot.slane %v1773_v54, 1 }
 0xb50   :  { %v1780_v29 = vadd.f32 %v1779_v1, %v1778_v57  ;;  %v1775_v18 = vadd.f32 %v1774_v21, %v1773_v54 }
 0xb52   :  { %v1781_v26 = vrot.slane %v1780_v29, 2 }
 0xb54   :  { %v1782_v9 = vadd.f32 %v1781_v26, %v1780_v29 }
 0xb56   :  { %v1783_v55 = vrot.slane %v1782_v9, 1 }
 0xb58   :  { %v1784_v8 = vadd.f32 %v1783_v55, %v1782_v9 }
 0xbd7   :  { %v1758_v6 = vpop.xlane.xlu1 %1757 }
 0xbd8   :  { %5513 = vrcp.f32 %v1758_v6 }
 0xbe5   :  { %v5514_v60 = vpop.eup %5513 }
 0xbe6   :  { %v1788_v23 = vrot.slane %v5514_v60, 1  ;;  %v1791_v25 = vmul.f32 %v5514_v60, %v1775_v18 }
 0xbe8   :  { %v1792_v7 = vmul.f32 %v1788_v23, %v1784_v8  ;;  %v1797_v30 = vadd.f32 %v1791_v25, %v1478_v58  ;;  %v6497_v58 = vld [vmem:[%s7173_s6 + $0x10] sm:$0xff] }
 0xbea   :  { %v1798_v39 = vadd.f32 %v1794_v27, %v1792_v7 }
 0xbec   :  { %5515 = vtanh.f32 %v1798_v39 }
 0xbed   :  { %5517 = vtanh.f32 %v1797_v30 }
 0xbf9   :  { %v5516_v16 = vpop.eup %5515 }
 0xbfa   :  { %v1803_v59 = vrot.slane %v5516_v16, 7  ;;  %v5518_v41 = vpop.eup %5517 }
 0xbfc   :  { %v1804_v42 = vsel %vm1139_vm5, %v1803_v59, %v5518_v41 }
 0xbfd   :  { %1807 = vst.msk [vmem:[#allocation3 + $0x2] sm:$0x3] %vm1060_vm3, %v1804_v42  ;;  %5326 = vmatmul.mubr.msk.f32.vlgmr.msra.gmra.mxu1 %vm437_vm2, %v1804_v42 }
 0xbfe   :  { %5340 = vmatpush3.msra.mxu1 %v6488_v48  ;;  %5347 = vmatprep.mubr.msk.f32.mxu1 %vm5915_vm0, %v5913_v0 }
 0xbff   :  { %5341 = vmatprep.subr.mxu1 %v5913_v0 }
 0xc00   :  { %5342 = vmatpush3.msra.mxu1 %v6497_v58 }
 0xc01   :  { %5343 = vmatprep.subr.mxu1 %v5913_v0 }
 0xc02   :  { %5344 = vmatpush3.msra.mxu1 %v6504_v50 }
 0xc03   :  { %5345 = vmatprep.subr.mxu1 %v5913_v0 }
 0xc04   :  { %v5127_v51 = vld.sshfl [vmem:[#allocation3 + $0x2] sm:$0x11 pattern:$0x75316420]  ;;  %5346 = vmatpush3.msra.mxu1 %v6511_v11 }
 0xc05   :  { %v4852_v38 = vcombine.high %v5127_v51, %v5127_v51  ;;  %v4859_v52 = vrot.slane %v5127_v51, %v6158_v43  ;;  %5361 = vmatprep.subr.mxu1 %v5913_v0 }
 0xc07   :  { %v4866_v45 = vrot.slane %v4852_v38, %v6158_v43  ;;  %4869 = vst.msk [vmem:[#allocation18 + $0x1] sm:$0x1] %vm4840_vm7, %v4859_v52 }
 0xc09   :  { %4870 = vst.msk [vmem:[#allocation18 + $0x9] sm:$0x1] %vm4840_vm7, %v4866_v45 }
 0xcbd   :  { %v1878_v57 = vpop.f32.mrf.mxu1 }
 0xcbe   :  { %v1882_v2 = vadd.f32 %v1878_v57, %v1809_v3 }
 0xcbf   :  { %v5327_v1 = vpop.f32.mrf.mxu1 }
 0xcc0   :  { %5519 = vtanh.f32 %v1882_v2  ;;  %v5109_v29 = vmul.f32 -1.442695, %v1882_v2 }
 0xcc2   :  { %5521 = vpow2.f32 %v5109_v29 }
 0xccd   :  { %v5520_v4 = vpop.eup %5519 }
 0xcce   :  { %1892 = vrot.lane.b32.xlu0 %v5520_v4, %s5916_s9 }
 0xccf   :  { %v5522_v6 = vpop.eup %5521 }
 0xcd0   :  { %v1886_v53 = vadd.f32 1.0, %v5522_v6 }
 0xcd2   :  { %5523 = vrcp.f32 %v1886_v53 }
 0xcdf   :  { %v5524_v26 = vpop.eup %5523 }
 0xce0   :  { %v1890_v21 = vmul.f32 %v5524_v26, %v6395_v31 }
 0xd40   :  { %v1893_v54 = vpop.permute.xlu0 %1892 }
 0xd41   :  { %v1895_v9 = vmul.f32 %v5524_v26, %v1893_v54 }
 0xd43   :  { %1897 = vrot.lane.b32.xlu1 %v1895_v9, %s5905_s4 }
 0xdb5   :  { %v1898_v55 = vpop.permute.xlu1 %1897 }
 0xdb6   :  { %v6522_v18 = vadd.f32 %v1898_v55, %v1890_v21 }
 0xdb8   :  { %5525 = vtanh.f32 %v6522_v18 }
 0xdc5   :  { %v5526_v60 = vpop.eup %5525 }
 0xdc6   :  { %1903 = vrot.lane.b32.xlu0 %v5526_v60, %s5916_s9 }
 0xe38   :  { %v1904_v8 = vpop.permute.xlu0 %1903 }
 0xe39   :  { %v6526_v23 = vmul.f32 %v5524_v26, %v1904_v8 }
 0xe3b   :  { %v1988_v25 = vrot.slane %v6526_v23, %v6158_v43 }
 0xe3d   :  { %v1989_v27 = vcombine.high %v1988_v25, %v1988_v25  ;;  %v1996_v7 = vrot.slane %v1988_v25, %v6158_v43 }
 0xe3f   :  { %v2007_v30 = vrot.slane %v1996_v7, %v6165_v47  ;;  %v2003_v31 = vrot.slane %v1989_v27, %v6158_v43 }
 0xe41   :  { %v2019_v39 = vrot.slane %v2007_v30, %v6045_v15  ;;  %v2011_v16 = vrot.slane %v2003_v31, %v6165_v47  ;;  %v2012_v51 = vcombine.high %v2007_v30, %v2007_v30 }
 0xe43   :  { %2046 = vrot.lane.b32.xlu0 %v2019_v39, %s5905_s4  ;;  %v2036_v59 = vrot.slane %v2011_v16, %v6045_v15  ;;  %v2029_v41 = vcombine.high %v2011_v16, %v2011_v16  ;;  %v2027_v42 = vcombine.high %v2019_v39, %v2019_v39  ;;  %v2026_v52 = vrot.slane %v2012_v51, %v6045_v15 }
 0xe45   :  { %2054 = vrot.lane.b32.xlu1 %v2036_v59, %s5905_s4  ;;  %v2043_v38 = vrot.slane %v2029_v41, %v6045_v15  ;;  %v2028_v45 = vcombine.high %v2026_v52, %v2026_v52  ;;  %v2044_v3 = vcombine.high %v2036_v59, %v2036_v59 }
 0xe47   :  { %2048 = vrot.lane.b32.xlu0 %v2027_v42, %s5905_s4  ;;  %v2045_v57 = vcombine.high %v2043_v38, %v2043_v38 }
 0xe49   :  { %2058 = vrot.lane.b32.xlu1 %v2043_v38, %s5905_s4 }
 0xe4b   :  { %2050 = vrot.lane.b32.xlu0 %v2026_v52, %s5905_s4 }
 0xe4f   :  { %2052 = vrot.lane.b32.xlu0 %v2028_v45, %s5905_s4 }
 0xe53   :  { %2056 = vrot.lane.b32.xlu0 %v2044_v3, %s5905_s4 }
 0xe57   :  { %2060 = vrot.lane.b32.xlu0 %v2045_v57, %s5905_s4 }
 0xeb5   :  { %v2047_v2 = vpop.permute.xlu0 %2046 }
 0xeb6   :  { %v2074_v1 = vmul.f32 %v2047_v2, %v6192_v14  ;;  %v2070_v54 = vmul.f32 %v2047_v2, %v6188_v13 }
 0xeb7   :  { %v2055_v9 = vpop.permute.xlu1 %2054 }
 0xeb8   :  { %v2113_v4 = vrot.slane %v2074_v1, %v6045_v15  ;;  %v2079_v27 = vmul.f32 %v2055_v9, %v6220_v33  ;;  %v2075_v59 = vmul.f32 %v2055_v9, %v6228_v37 }
 0xeb9   :  { %v2049_v29 = vpop.permute.xlu0 %2048 }
 0xeba   :  { %v2145_v6 = vsel %vm1060_vm3, %v2113_v4, 0.0  ;;  %v2071_v26 = vmul.f32 %v2049_v29, %v6200_v20  ;;  %v2137_v51 = vrot.slane %v2079_v27, %v6045_v15 }
 0xebb   :  { %2146 = vadd.xlane.f32.xlu0 %v2145_v6  ;;  %v2059_v16 = vpop.permute.xlu1 %2058 }
 0xebc   :  { %v2090_v55 = vcombine.low %v2070_v54, %v2071_v26  ;;  %v2077_v38 = vmul.f32 %v2059_v16, %v6237_v49  ;;  %v2151_v2 = vsel %vm1060_vm3, %v2137_v51, 0.0 }
 0xebd   :  { %v2051_v53 = vpop.permute.xlu0 %2050 }
 0xebe   :  { %v2072_v60 = vmul.f32 %v2051_v53, %v6195_v17  ;;  %v2098_v31 = vrot.slane %v2090_v55, %v6045_v15 }
 0xec1   :  { %v2053_v21 = vpop.permute.xlu0 %2052 }
 0xec2   :  { %v2073_v8 = vmul.f32 %v2053_v21, %v6213_v28 }
 0xec4   :  { %v2091_v25 = vcombine.low %v2072_v60, %v2073_v8 }
 0xec5   :  { %v2057_v7 = vpop.permute.xlu0 %2056 }
 0xec6   :  { %v2076_v30 = vmul.f32 %v2057_v7, %v6223_v34  ;;  %v2105_v39 = vrot.slane %v2091_v25, %v6045_v15 }
 0xec8   :  { %v2106_v41 = vcombine.low %v2098_v31, %v2105_v39  ;;  %v2114_v52 = vcombine.low %v2075_v59, %v2076_v30 }
 0xec9   :  { %v2061_v42 = vpop.permute.xlu0 %2060 }
 0xeca   :  { %v2078_v45 = vmul.f32 %v2061_v42, %v6204_v12  ;;  %v2142_v3 = vsel %vm437_vm2, %v2106_v41, 0.0  ;;  %v2122_v1 = vrot.slane %v2114_v52, %v6045_v15 }
 0xecb   :  { %2143 = vadd.xlane.f32.xlu1 %v2142_v3 }
 0xecc   :  { %v2115_v57 = vcombine.low %v2077_v38, %v2078_v45 }
 0xece   :  { %v2129_v4 = vrot.slane %v2115_v57, %v6045_v15 }
 0xecf   :  { %2152 = vadd.xlane.f32.xlu1 %v2151_v2 }
 0xed0   :  { %v2130_v29 = vcombine.low %v2122_v1, %v2129_v4 }
 0xed2   :  { %v2148_v6 = vsel %vm437_vm2, %v2130_v29, 0.0 }
 0xed3   :  { %2149 = vadd.xlane.f32.xlu0 %v2148_v6 }
 0xf44   :  { %v2147_v53 = vpop.xlane.xlu0 %2146 }
 0xf45   :  { %v2155_v26 = vadd.f32 %v2147_v53, %v6278_v35 }
 0xf47   :  { %2166 = vperm.xlu1 %5471, %v2155_v26  }
 0xf54   :  { %v2144_v54 = vpop.xlane.xlu1 %2143 }
 0xf55   :  { %v2154_v9 = vadd.f32 %v2144_v54, %v6251_v22 }
 0xf57   :  { %2163 = vperm.xlu0 %5472, %v2154_v9  }
 0xf58   :  { %v2153_v21 = vpop.xlane.xlu1 %2152 }
 0xf59   :  { %v2157_v55 = vadd.f32 %v2153_v21, %v6259_v10 }
 0xf5b   :  { %2172 = vperm.xlu0 %5472, %v2157_v55  }
 0xf5c   :  { %v2150_v60 = vpop.xlane.xlu0 %2149 }
 0xf5d   :  { %v2156_v8 = vadd.f32 %v2150_v60, %v6253_v24 }
 0xf5f   :  { %2169 = vperm.xlu1 %5471, %v2156_v8  }
 0xf63   :  { %1908 = vrot.lane.b32.xlu1 %v6526_v23, %s5905_s4 }
 0xfc2   :  { %v2167_v27 = vpop.permute.xlu1 %2166 }
 0xfc3   :  { %v2181_v39 = vrot.slane %v2167_v27, %v6313_v46 }
 0xfd2   :  { %v2164_v25 = vpop.permute.xlu0 %2163 }
 0xfd3   :  { %v2177_v30 = vrot.slane %v2164_v25, %v6310_v44 }
 0xfd5   :  { %v2182_v41 = vsel %vm1128_vm4, %v2181_v39, %v2177_v30 }
 0xfd6   :  { %v2173_v7 = vpop.permute.xlu0 %2172 }
 0xfd7   :  { %v2190_v16 = vrot.slane %v2173_v7, %v6313_v46 }
 0xfda   :  { %v2170_v31 = vpop.permute.xlu1 %2169 }
 0xfdb   :  { %v2186_v59 = vrot.slane %v2170_v31, %v6310_v44 }
 0xfdd   :  { %v2191_v42 = vsel %vm1128_vm4, %v2190_v16, %v2186_v59 }
 0xfde   :  { %v1909_v51 = vpop.permute.xlu1 %1908  ;;  %v2192_v38 = vsel %vm1139_vm5, %v2191_v42, %v2182_v41 }
 0xfdf   :  { %5337 = vmatmul.mubr.msk.f32.vlgmr.msra.gmra.mxu0 %vm437_vm2, %v1909_v51  ;;  %v2194_v23 = vsel %vm1142_vm6, %v2192_v38, -inf }
 0xfe0   :  { %2195 = vmax.xlane.f32.xlu0 %v2194_v23  ;;  %5351 = vmatpush3.msra.mxu0 %v6274_v32 }
 0xfe1   :  { %5352 = vmatprep.subr.mxu0 %v5913_v0  ;;  %5358 = vmatprep.mubr.msk.f32.mxu0 %vm5915_vm0, %v5913_v0 }
 0xfe2   :  { %5353 = vmatpush3.msra.mxu0 %v6276_v19 }
 0xfe3   :  { %5354 = vmatprep.subr.mxu0 %v5913_v0 }
 0xfe4   :  { %5355 = vmatpush3.msra.mxu0 %v6291_v56 }
 0xfe5   :  { %5356 = vmatprep.subr.mxu0 %v5913_v0 }
 0xfe6   :  { %5357 = vmatpush3.msra.mxu0 %v6294_v36 }
 0xfe7   :  { %5372 = vmatprep.subr.mxu0 %v5913_v0 }
0x1069   :  { %v2196_v52 = vpop.xlane.xlu0 %2195 }
0x106a   :  { %v2201_v32 = vrot.slane %v2196_v52, %v6165_v47  ;;  %v2205_v45 = vrot.slane %v2196_v52, %v6243_v63 }
0x106c   :  { %v2208_v3 = vsub.f32 %v2154_v9, %v2201_v32  ;;  %v2209_v57 = vsub.f32 %v2155_v26, %v2201_v32  ;;  %v2210_v1 = vsub.f32 %v2156_v8, %v2205_v45  ;;  %v2211_v4 = vsub.f32 %v2157_v55, %v2205_v45 }
0x106e   :  { %v2212_v2 = vmul.f32 1.442695, %v2208_v3  ;;  %v2214_v19 = vmul.f32 1.442695, %v2209_v57  ;;  %v2216_v56 = vmul.f32 1.442695, %v2210_v1 }
0x106f   :  { %v2218_v29 = vmul.f32 1.442695, %v2211_v4 }
0x1070   :  { %5527 = vpow2.f32 %v2212_v2 }
0x1071   :  { %5529 = vpow2.f32 %v2214_v19 }
0x1072   :  { %5531 = vpow2.f32 %v2216_v56 }
0x1073   :  { %5533 = vpow2.f32 %v2218_v29 }
0x107d   :  { %v5528_v36 = vpop.eup %5527 }
0x107e   :  { %2225 = vperm.xlu1 %5471, %v5528_v36   ;;  %v5530_v6 = vpop.eup %5529 }
0x107f   :  { %v5532_v53 = vpop.eup %5531 }
0x1080   :  { %v5534_v54 = vpop.eup %5533 }
0x1082   :  { %2228 = vperm.xlu1 %5471, %v5530_v6  }
0x1086   :  { %2231 = vperm.xlu1 %5471, %v5532_v53  }
0x108a   :  { %2234 = vperm.xlu1 %5471, %v5534_v54  }
0x109f   :  { %v1978_v9 = vpop.f32.mrf.mxu0 }
0x10a1   :  { %v5338_v26 = vpop.f32.mrf.mxu0 }
0x10f9   :  { %v2226_v21 = vpop.permute.xlu1 %2225 }
0x10fa   :  { %v2239_v27 = vrot.slane %v2226_v21, %v6310_v44  ;;  %v2263_v42 = vmul.f32 %v2226_v21, %v6362_v62 }
0x10fc   :  { %v2267_v52 = vsel %vm437_vm2, %v2263_v42, 0.0 }
0x10fd   :  { %v2229_v60 = vpop.permute.xlu1 %2228 }
0x10fe   :  { %v2243_v55 = vrot.slane %v2229_v60, %v6313_v46  ;;  %v2264_v41 = vmul.f32 %v2229_v60, %v6360_v61 }
0x1100   :  { %v2244_v31 = vsel %vm1128_vm4, %v2243_v55, %v2239_v27  ;;  %v2268_v38 = vsel %vm1060_vm3, %v2264_v41, 0.0  ;;  %v2294_v27 = vrot.slane %v1978_v9, 1 }
0x1101   :  { %v2232_v8 = vpop.permute.xlu1 %2231  ;;  %v2269_v45 = vadd.f32 %v2268_v38, %v2267_v52 }
0x1102   :  { %v2248_v7 = vrot.slane %v2232_v8, %v6310_v44  ;;  %v2265_v23 = vmul.f32 %v2232_v8, %v6339_v40 }
0x1103   :  { %v2270_v2 = vrot.slane %v2269_v45, 4 }
0x1104   :  { %v2276_v3 = vsel %vm437_vm2, %v2265_v23, 0.0  ;;  %v2309_v23 = vld [vmem:[#allocation2 + $0x6] sm:$0x3] }
0x1105   :  { %v2235_v25 = vpop.permute.xlu1 %2234  ;;  %v2271_v19 = vadd.f32 %v2270_v2, %v2269_v45 }
0x1106   :  { %v2252_v30 = vrot.slane %v2235_v25, %v6313_v46  ;;  %v2266_v51 = vmul.f32 %v2235_v25, %v6365_v5 }
0x1107   :  { %v2272_v29 = vrot.slane %v2271_v19, 2 }
0x1108   :  { %v2253_v39 = vsel %vm1128_vm4, %v2252_v30, %v2248_v7  ;;  %v2277_v32 = vsel %vm1060_vm3, %v2266_v51, 0.0 }
0x1109   :  { %v2254_v16 = vsel %vm1139_vm5, %v2253_v39, %v2244_v31  ;;  %v2278_v57 = vadd.f32 %v2277_v32, %v2276_v3  ;;  %v2273_v6 = vadd.f32 %v2272_v29, %v2271_v19 }
0x110a   :  { %v2256_v59 = vsel %vm1142_vm6, %v2254_v16, 0.0 }
0x110b   :  { %2257 = vadd.xlane.f32.xlu1 %v2256_v59  ;;  %v2279_v1 = vrot.slane %v2278_v57, 4  ;;  %v2274_v54 = vrot.slane %v2273_v6, 1 }
0x110d   :  { %v2280_v4 = vadd.f32 %v2279_v1, %v2278_v57  ;;  %v2275_v21 = vadd.f32 %v2274_v54, %v2273_v6 }
0x110f   :  { %v2281_v36 = vrot.slane %v2280_v4, 2 }
0x1111   :  { %v2282_v53 = vadd.f32 %v2281_v36, %v2280_v4 }
0x1113   :  { %v2283_v26 = vrot.slane %v2282_v53, 1 }
0x1115   :  { %v2284_v8 = vadd.f32 %v2283_v26, %v2282_v53 }
0x1194   :  { %v2258_v56 = vpop.xlane.xlu1 %2257 }
0x1195   :  { %5535 = vrcp.f32 %v2258_v56 }
0x11a2   :  { %v5536_v60 = vpop.eup %5535 }
0x11a3   :  { %v2288_v55 = vrot.slane %v5536_v60, 1  ;;  %v2291_v25 = vmul.f32 %v5536_v60, %v2275_v21 }
0x11a5   :  { %v2292_v7 = vmul.f32 %v2288_v55, %v2284_v8  ;;  %v2297_v30 = vadd.f32 %v2291_v25, %v1978_v9 }
0x11a7   :  { %v2298_v31 = vadd.f32 %v2294_v27, %v2292_v7 }
0x11a9   :  { %5537 = vtanh.f32 %v2298_v31 }
0x11aa   :  { %5539 = vtanh.f32 %v2297_v30 }
0x11b6   :  { %v5538_v39 = vpop.eup %5537 }
0x11b7   :  { %v2303_v16 = vrot.slane %v5538_v39, 7  ;;  %v5540_v59 = vpop.eup %5539 }
0x11b9   :  { %v2304_v41 = vsel %vm1139_vm5, %v2303_v16, %v5540_v59 }
0x11ba   :  { %2307 = vst.msk [vmem:[#allocation3 + $0x4] sm:$0x3] %vm1060_vm3, %v2304_v41  ;;  %5348 = vmatmul.mubr.msk.f32.vlgmr.msra.gmra.mxu1 %vm437_vm2, %v2304_v41 }
0x11bb   :  { %5362 = vmatpush3.msra.mxu1 %v6488_v48  ;;  %5369 = vmatprep.mubr.msk.f32.mxu1 %vm5915_vm0, %v5913_v0 }
0x11bc   :  { %5363 = vmatprep.subr.mxu1 %v5913_v0 }
0x11bd   :  { %5364 = vmatpush3.msra.mxu1 %v6497_v58 }
0x11be   :  { %5365 = vmatprep.subr.mxu1 %v5913_v0 }
0x11bf   :  { %5366 = vmatpush3.msra.mxu1 %v6504_v50 }
0x11c0   :  { %5367 = vmatprep.subr.mxu1 %v5913_v0 }
0x11c1   :  { %v5128_v9 = vld.sshfl [vmem:[#allocation3 + $0x4] sm:$0x11 pattern:$0x75316420]  ;;  %5368 = vmatpush3.msra.mxu1 %v6511_v11 }
0x11c2   :  { %v4880_v42 = vcombine.high %v5128_v9, %v5128_v9  ;;  %v4887_v51 = vrot.slane %v5128_v9, %v6158_v43  ;;  %5383 = vmatprep.subr.mxu1 %v5913_v0 }
0x11c4   :  { %v4894_v38 = vrot.slane %v4880_v42, %v6158_v43  ;;  %4897 = vst.msk [vmem:[#allocation18 + $0x2] sm:$0x1] %vm4840_vm7, %v4887_v51 }
0x11c6   :  { %4898 = vst.msk [vmem:[#allocation18 + $0xa] sm:$0x1] %vm4840_vm7, %v4894_v38 }
0x127a   :  { %v2378_v52 = vpop.f32.mrf.mxu1 }
0x127b   :  { %v2382_v32 = vadd.f32 %v2378_v52, %v2309_v23 }
0x127c   :  { %v5349_v45 = vpop.f32.mrf.mxu1 }
0x127d   :  { %5541 = vtanh.f32 %v2382_v32  ;;  %v5112_v57 = vmul.f32 -1.442695, %v2382_v32 }
0x127f   :  { %5543 = vpow2.f32 %v5112_v57 }
0x128a   :  { %v5542_v3 = vpop.eup %5541 }
0x128b   :  { %2392 = vrot.lane.b32.xlu0 %v5542_v3, %s5916_s9 }
0x128c   :  { %v5544_v2 = vpop.eup %5543 }
0x128d   :  { %v2386_v1 = vadd.f32 1.0, %v5544_v2 }
0x128f   :  { %5545 = vrcp.f32 %v2386_v1 }
0x129c   :  { %v5546_v19 = vpop.eup %5545 }
0x129d   :  { %v2390_v29 = vmul.f32 %v5546_v19, %v6522_v18 }
0x12fd   :  { %v2393_v4 = vpop.permute.xlu0 %2392 }
0x12fe   :  { %v2395_v56 = vmul.f32 %v5546_v19, %v2393_v4 }
0x1300   :  { %2397 = vrot.lane.b32.xlu1 %v2395_v56, %s5905_s4 }
0x1372   :  { %v2398_v36 = vpop.permute.xlu1 %2397 }
0x1373   :  { %v6629_v6 = vadd.f32 %v2398_v36, %v2390_v29 }
0x1375   :  { %5547 = vtanh.f32 %v6629_v6 }
0x1382   :  { %v5548_v53 = vpop.eup %5547 }
0x1383   :  { %2403 = vrot.lane.b32.xlu0 %v5548_v53, %s5916_s9 }
0x13f5   :  { %v2404_v54 = vpop.permute.xlu0 %2403 }
0x13f6   :  { %v6633_v26 = vmul.f32 %v5546_v19, %v2404_v54 }
0x13f8   :  { %v2488_v21 = vrot.slane %v6633_v26, %v6158_v43 }
0x13fa   :  { %v2489_v60 = vcombine.high %v2488_v21, %v2488_v21  ;;  %v2496_v8 = vrot.slane %v2488_v21, %v6158_v43 }
0x13fc   :  { %v2507_v55 = vrot.slane %v2496_v8, %v6165_v47  ;;  %v2503_v18 = vrot.slane %v2489_v60, %v6158_v43 }
0x13fe   :  { %v2519_v25 = vrot.slane %v2507_v55, %v6045_v15  ;;  %v2511_v27 = vrot.slane %v2503_v18, %v6165_v47  ;;  %v2512_v39 = vcombine.high %v2507_v55, %v2507_v55 }
0x1400   :  { %2546 = vrot.lane.b32.xlu0 %v2519_v25, %s5905_s4  ;;  %v2536_v7 = vrot.slane %v2511_v27, %v6045_v15  ;;  %v2529_v30 = vcombine.high %v2511_v27, %v2511_v27  ;;  %v2527_v31 = vcombine.high %v2519_v25, %v2519_v25  ;;  %v2526_v59 = vrot.slane %v2512_v39, %v6045_v15 }
0x1402   :  { %2554 = vrot.lane.b32.xlu1 %v2536_v7, %s5905_s4  ;;  %v2543_v16 = vrot.slane %v2529_v30, %v6045_v15  ;;  %v2528_v41 = vcombine.high %v2526_v59, %v2526_v59  ;;  %v2544_v9 = vcombine.high %v2536_v7, %v2536_v7 }
0x1404   :  { %2548 = vrot.lane.b32.xlu0 %v2527_v31, %s5905_s4  ;;  %v2545_v42 = vcombine.high %v2543_v16, %v2543_v16 }
0x1406   :  { %2558 = vrot.lane.b32.xlu1 %v2543_v16, %s5905_s4 }
0x1408   :  { %2550 = vrot.lane.b32.xlu0 %v2526_v59, %s5905_s4 }
0x140c   :  { %2552 = vrot.lane.b32.xlu0 %v2528_v41, %s5905_s4 }
0x1410   :  { %2556 = vrot.lane.b32.xlu0 %v2544_v9, %s5905_s4 }
0x1414   :  { %2560 = vrot.lane.b32.xlu0 %v2545_v42, %s5905_s4 }
0x1472   :  { %v2547_v51 = vpop.permute.xlu0 %2546 }
0x1473   :  { %v2574_v38 = vmul.f32 %v2547_v51, %v6192_v14  ;;  %v2570_v57 = vmul.f32 %v2547_v51, %v6188_v13 }
0x1474   :  { %v2555_v2 = vpop.permute.xlu1 %2554 }
0x1475   :  { %v2613_v23 = vrot.slane %v2574_v38, %v6045_v15  ;;  %v2579_v36 = vmul.f32 %v2555_v2, %v6220_v33  ;;  %v2575_v55 = vmul.f32 %v2555_v2, %v6228_v37 }
0x1476   :  { %v2549_v52 = vpop.permute.xlu0 %2548 }
0x1477   :  { %v2645_v32 = vsel %vm1060_vm3, %v2613_v23, 0.0  ;;  %v2571_v3 = vmul.f32 %v2549_v52, %v6200_v20  ;;  %v2637_v27 = vrot.slane %v2579_v36, %v6045_v15 }
0x1478   :  { %2646 = vadd.xlane.f32.xlu0 %v2645_v32  ;;  %v2559_v8 = vpop.permute.xlu1 %2558 }
0x1479   :  { %v2590_v19 = vcombine.low %v2570_v57, %v2571_v3  ;;  %v2577_v7 = vmul.f32 %v2559_v8, %v6237_v49  ;;  %v2651_v59 = vsel %vm1060_vm3, %v2637_v27, 0.0  ;;  %v6698_v27 = vld [vmem:[#allocation16 + $0x8] sm:$0xff] }
0x147a   :  { %v2551_v45 = vpop.permute.xlu0 %2550 }
0x147b   :  { %v2572_v4 = vmul.f32 %v2551_v45, %v6195_v17  ;;  %v2598_v21 = vrot.slane %v2590_v19, %v6045_v15 }
0x147e   :  { %v2553_v1 = vpop.permute.xlu0 %2552 }
0x147f   :  { %v2573_v56 = vmul.f32 %v2553_v1, %v6213_v28 }
0x1481   :  { %v2591_v29 = vcombine.low %v2572_v4, %v2573_v56 }
0x1482   :  { %v2557_v53 = vpop.permute.xlu0 %2556 }
0x1483   :  { %v2576_v54 = vmul.f32 %v2557_v53, %v6223_v34  ;;  %v2605_v60 = vrot.slane %v2591_v29, %v6045_v15 }
0x1485   :  { %v2606_v18 = vcombine.low %v2598_v21, %v2605_v60  ;;  %v2614_v30 = vcombine.low %v2575_v55, %v2576_v54 }
0x1486   :  { %v2561_v25 = vpop.permute.xlu0 %2560 }
0x1487   :  { %v2578_v31 = vmul.f32 %v2561_v25, %v6204_v12  ;;  %v2642_v39 = vsel %vm437_vm2, %v2606_v18, 0.0  ;;  %v2622_v41 = vrot.slane %v2614_v30, %v6045_v15  ;;  %v6688_v18 = vld [vmem:[#allocation16 + $0x18] sm:$0xff]  ;;  %v6694_v25 = vld [vmem:[#allocation16 + $0x10] sm:$0xff] }
0x1488   :  { %2643 = vadd.xlane.f32.xlu1 %v2642_v39 }
0x1489   :  { %v2615_v16 = vcombine.low %v2577_v7, %v2578_v31  ;;  %v6702_v7 = vld [vmem:[#allocation16] sm:$0xff] }
0x148b   :  { %v2629_v9 = vrot.slane %v2615_v16, %v6045_v15 }
0x148c   :  { %2652 = vadd.xlane.f32.xlu1 %v2651_v59 }
0x148d   :  { %v2630_v42 = vcombine.low %v2622_v41, %v2629_v9 }
0x148f   :  { %v2648_v51 = vsel %vm437_vm2, %v2630_v42, 0.0 }
0x1490   :  { %2649 = vadd.xlane.f32.xlu0 %v2648_v51 }
0x1501   :  { %v2647_v38 = vpop.xlane.xlu0 %2646 }
0x1502   :  { %v2655_v23 = vadd.f32 %v2647_v38, %v6278_v35 }
0x1504   :  { %2666 = vperm.xlu1 %5471, %v2655_v23  }
0x1511   :  { %v2644_v52 = vpop.xlane.xlu1 %2643 }
0x1512   :  { %v2654_v32 = vadd.f32 %v2644_v52, %v6251_v22 }
0x1514   :  { %2663 = vperm.xlu0 %5472, %v2654_v32  }
0x1515   :  { %v2653_v45 = vpop.xlane.xlu1 %2652 }
0x1516   :  { %v2657_v3 = vadd.f32 %v2653_v45, %v6259_v10 }
0x1518   :  { %2672 = vperm.xlu0 %5472, %v2657_v3  }
0x1519   :  { %v2650_v57 = vpop.xlane.xlu0 %2649 }
0x151a   :  { %v2656_v2 = vadd.f32 %v2650_v57, %v6253_v24 }
0x151c   :  { %2669 = vperm.xlu1 %5471, %v2656_v2  }
0x1520   :  { %2408 = vrot.lane.b32.xlu1 %v6633_v26, %s5905_s4 }
0x157f   :  { %v2667_v19 = vpop.permute.xlu1 %2666 }
0x1580   :  { %v2681_v36 = vrot.slane %v2667_v19, %v6313_v46 }
0x158f   :  { %v2664_v1 = vpop.permute.xlu0 %2663 }
0x1590   :  { %v2677_v56 = vrot.slane %v2664_v1, %v6310_v44 }
0x1592   :  { %v2682_v21 = vsel %vm1128_vm4, %v2681_v36, %v2677_v56 }
0x1593   :  { %v2673_v4 = vpop.permute.xlu0 %2672 }
0x1594   :  { %v2690_v53 = vrot.slane %v2673_v4, %v6313_v46 }
0x1597   :  { %v2670_v29 = vpop.permute.xlu1 %2669 }
0x1598   :  { %v2686_v54 = vrot.slane %v2670_v29, %v6310_v44 }
0x159a   :  { %v2691_v60 = vsel %vm1128_vm4, %v2690_v53, %v2686_v54 }
0x159b   :  { %v2409_v8 = vpop.permute.xlu1 %2408  ;;  %v2692_v55 = vsel %vm1139_vm5, %v2691_v60, %v2682_v21 }
0x159c   :  { %5359 = vmatmul.mubr.msk.f32.vlgmr.msra.gmra.mxu0 %vm437_vm2, %v2409_v8  ;;  %v2694_v26 = vsel %vm1142_vm6, %v2692_v55, -inf }
0x159d   :  { %2695 = vmax.xlane.f32.xlu0 %v2694_v26  ;;  %5373 = vmatpush3.msra.mxu0 %v6688_v18 }
0x159e   :  { %5374 = vmatprep.subr.mxu0 %v5913_v0  ;;  %5380 = vmatprep.mubr.msk.f32.mxu0 %vm5915_vm0, %v5913_v0 }
0x159f   :  { %5375 = vmatpush3.msra.mxu0 %v6694_v25 }
0x15a0   :  { %5376 = vmatprep.subr.mxu0 %v5913_v0 }
0x15a1   :  { %5377 = vmatpush3.msra.mxu0 %v6698_v27 }
0x15a2   :  { %5378 = vmatprep.subr.mxu0 %v5913_v0 }
0x15a3   :  { %5379 = vmatpush3.msra.mxu0 %v6702_v7 }
0x15a4   :  { %5394 = vmatprep.subr.mxu0 %v5913_v0 }
0x1626   :  { %v2696_v30 = vpop.xlane.xlu0 %2695 }
0x1627   :  { %v2701_v31 = vrot.slane %v2696_v30, %v6165_v47  ;;  %v2705_v39 = vrot.slane %v2696_v30, %v6243_v63 }
0x1629   :  { %v2708_v16 = vsub.f32 %v2654_v32, %v2701_v31  ;;  %v2709_v59 = vsub.f32 %v2655_v23, %v2701_v31  ;;  %v2710_v9 = vsub.f32 %v2656_v2, %v2705_v39  ;;  %v2711_v51 = vsub.f32 %v2657_v3, %v2705_v39 }
0x162b   :  { %v2712_v41 = vmul.f32 1.442695, %v2708_v16  ;;  %v2714_v42 = vmul.f32 1.442695, %v2709_v59  ;;  %v2716_v38 = vmul.f32 1.442695, %v2710_v9 }
0x162c   :  { %v2718_v52 = vmul.f32 1.442695, %v2711_v51 }
0x162d   :  { %5549 = vpow2.f32 %v2712_v41 }
0x162e   :  { %5551 = vpow2.f32 %v2714_v42 }
0x162f   :  { %5553 = vpow2.f32 %v2716_v38 }
0x1630   :  { %5555 = vpow2.f32 %v2718_v52 }
0x163a   :  { %v5550_v45 = vpop.eup %5549 }
0x163b   :  { %2725 = vperm.xlu1 %5471, %v5550_v45   ;;  %v5552_v57 = vpop.eup %5551 }
0x163c   :  { %v5554_v1 = vpop.eup %5553 }
0x163d   :  { %v5556_v19 = vpop.eup %5555 }
0x163f   :  { %2728 = vperm.xlu1 %5471, %v5552_v57  }
0x1643   :  { %2731 = vperm.xlu1 %5471, %v5554_v1  }
0x1647   :  { %2734 = vperm.xlu1 %5471, %v5556_v19  }
0x165c   :  { %v2478_v32 = vpop.f32.mrf.mxu0 }
0x165e   :  { %v5360_v23 = vpop.f32.mrf.mxu0 }
0x16b6   :  { %v2726_v4 = vpop.permute.xlu1 %2725 }
0x16b7   :  { %v2739_v36 = vrot.slane %v2726_v4, %v6310_v44  ;;  %v2763_v30 = vmul.f32 %v2726_v4, %v6362_v62 }
0x16b9   :  { %v2767_v59 = vsel %vm437_vm2, %v2763_v30, 0.0 }
0x16ba   :  { %v2729_v2 = vpop.permute.xlu1 %2728 }
0x16bb   :  { %v2743_v3 = vrot.slane %v2729_v2, %v6313_v46  ;;  %v2764_v26 = vmul.f32 %v2729_v2, %v6360_v61 }
0x16bd   :  { %v2744_v21 = vsel %vm1128_vm4, %v2743_v3, %v2739_v36  ;;  %v2768_v39 = vsel %vm1060_vm3, %v2764_v26, 0.0 }
0x16be   :  { %v2732_v56 = vpop.permute.xlu1 %2731  ;;  %v2769_v9 = vadd.f32 %v2768_v39, %v2767_v59 }
0x16bf   :  { %v2748_v53 = vrot.slane %v2732_v56, %v6310_v44  ;;  %v2765_v16 = vmul.f32 %v2732_v56, %v6339_v40 }
0x16c0   :  { %v2770_v38 = vrot.slane %v2769_v9, 4 }
0x16c1   :  { %v2776_v42 = vsel %vm437_vm2, %v2765_v16, 0.0 }
0x16c2   :  { %v2735_v29 = vpop.permute.xlu1 %2734  ;;  %v2771_v45 = vadd.f32 %v2770_v38, %v2769_v9 }
0x16c3   :  { %v2752_v54 = vrot.slane %v2735_v29, %v6313_v46  ;;  %v2766_v31 = vmul.f32 %v2735_v29, %v6365_v5 }
0x16c4   :  { %v2772_v19 = vrot.slane %v2771_v45, 2 }
0x16c5   :  { %v2753_v60 = vsel %vm1128_vm4, %v2752_v54, %v2748_v53  ;;  %v2777_v41 = vsel %vm1060_vm3, %v2766_v31, 0.0 }
0x16c6   :  { %v2754_v8 = vsel %vm1139_vm5, %v2753_v60, %v2744_v21  ;;  %v2778_v51 = vadd.f32 %v2777_v41, %v2776_v42  ;;  %v2773_v4 = vadd.f32 %v2772_v19, %v2771_v45  ;;  %v2794_v60 = vrot.slane %v2478_v32, 1 }
0x16c7   :  { %v2756_v55 = vsel %vm1142_vm6, %v2754_v8, 0.0 }
0x16c8   :  { %2757 = vadd.xlane.f32.xlu1 %v2756_v55  ;;  %v2779_v52 = vrot.slane %v2778_v51, 4  ;;  %v2774_v3 = vrot.slane %v2773_v4, 1 }
0x16ca   :  { %v2780_v57 = vadd.f32 %v2779_v52, %v2778_v51  ;;  %v2775_v29 = vadd.f32 %v2774_v3, %v2773_v4 }
0x16cc   :  { %v2781_v23 = vrot.slane %v2780_v57, 2 }
0x16ce   :  { %v2782_v2 = vadd.f32 %v2781_v23, %v2780_v57 }
0x16d0   :  { %v2783_v56 = vrot.slane %v2782_v2, 1 }
0x16d2   :  { %v2784_v53 = vadd.f32 %v2783_v56, %v2782_v2 }
0x1751   :  { %v2758_v1 = vpop.xlane.xlu1 %2757 }
0x1752   :  { %5557 = vrcp.f32 %v2758_v1 }
0x175f   :  { %v5558_v36 = vpop.eup %5557 }
0x1760   :  { %v2788_v54 = vrot.slane %v5558_v36, 1  ;;  %v2791_v21 = vmul.f32 %v5558_v36, %v2775_v29 }
0x1762   :  { %v2792_v8 = vmul.f32 %v2788_v54, %v2784_v53  ;;  %v2797_v55 = vadd.f32 %v2791_v21, %v2478_v32 }
0x1764   :  { %v2798_v26 = vadd.f32 %v2794_v60, %v2792_v8 }
0x1766   :  { %5559 = vtanh.f32 %v2798_v26 }
0x1767   :  { %5561 = vtanh.f32 %v2797_v55 }
0x1773   :  { %v5560_v30 = vpop.eup %5559 }
0x1774   :  { %v2803_v31 = vrot.slane %v5560_v30, 7  ;;  %v5562_v39 = vpop.eup %5561 }
0x1776   :  { %v2804_v16 = vsel %vm1139_vm5, %v2803_v31, %v5562_v39 }
0x1777   :  { %2807 = vst.msk [vmem:[#allocation3 + $0x6] sm:$0x3] %vm1060_vm3, %v2804_v16  ;;  %5370 = vmatmul.mubr.msk.f32.vlgmr.msra.gmra.mxu1 %vm437_vm2, %v2804_v16 }
0x1778   :  { %5384 = vmatpush3.msra.mxu1 %v6488_v48  ;;  %5391 = vmatprep.mubr.msk.f32.mxu1 %vm5915_vm0, %v5913_v0 }
0x1779   :  { %5385 = vmatprep.subr.mxu1 %v5913_v0 }
0x177a   :  { %5386 = vmatpush3.msra.mxu1 %v6497_v58  ;;  %v2809_v58 = vld [vmem:[#allocation2 + $0x8] sm:$0x3] }
0x177b   :  { %5387 = vmatprep.subr.mxu1 %v5913_v0 }
0x177c   :  { %5388 = vmatpush3.msra.mxu1 %v6504_v50 }
0x177d   :  { %5389 = vmatprep.subr.mxu1 %v5913_v0 }
0x177e   :  { %v5129_v32 = vld.sshfl [vmem:[#allocation3 + $0x6] sm:$0x11 pattern:$0x75316420]  ;;  %5390 = vmatpush3.msra.mxu1 %v6511_v11 }
0x177f   :  { %v4908_v59 = vcombine.high %v5129_v32, %v5129_v32  ;;  %v4915_v41 = vrot.slane %v5129_v32, %v6158_v43  ;;  %5405 = vmatprep.subr.mxu1 %v5913_v0 }
0x1781   :  { %v4922_v48 = vrot.slane %v4908_v59, %v6158_v43  ;;  %4925 = vst.msk [vmem:[#allocation18 + $0x3] sm:$0x1] %vm4840_vm7, %v4915_v41 }
0x1783   :  { %4926 = vst.msk [vmem:[#allocation18 + $0xb] sm:$0x1] %vm4840_vm7, %v4922_v48 }
0x1837   :  { %v2878_v9 = vpop.f32.mrf.mxu1 }
0x1838   :  { %v2882_v42 = vadd.f32 %v2878_v9, %v2809_v58 }
0x1839   :  { %v5371_v50 = vpop.f32.mrf.mxu1 }
0x183a   :  { %5563 = vtanh.f32 %v2882_v42  ;;  %v5115_v11 = vmul.f32 -1.442695, %v2882_v42 }
0x183c   :  { %5565 = vpow2.f32 %v5115_v11 }
0x1847   :  { %v5564_v51 = vpop.eup %5563 }
0x1848   :  { %2892 = vrot.lane.b32.xlu0 %v5564_v51, %s5916_s9 }
0x1849   :  { %v5566_v38 = vpop.eup %5565 }
0x184a   :  { %v2886_v52 = vadd.f32 1.0, %v5566_v38 }
0x184c   :  { %5567 = vrcp.f32 %v2886_v52 }
0x1859   :  { %v5568_v45 = vpop.eup %5567 }
0x185a   :  { %v2890_v19 = vmul.f32 %v5568_v45, %v6629_v6 }
0x18ba   :  { %v2893_v57 = vpop.permute.xlu0 %2892 }
0x18bb   :  { %v2895_v1 = vmul.f32 %v5568_v45, %v2893_v57 }
0x18bd   :  { %2897 = vrot.lane.b32.xlu1 %v2895_v1, %s5905_s4 }
0x192f   :  { %v2898_v23 = vpop.permute.xlu1 %2897 }
0x1930   :  { %v6744_v4 = vadd.f32 %v2898_v23, %v2890_v19 }
0x1932   :  { %5569 = vtanh.f32 %v6744_v4 }
0x193f   :  { %v5570_v2 = vpop.eup %5569 }
0x1940   :  { %2903 = vrot.lane.b32.xlu0 %v5570_v2, %s5916_s9 }
0x19b2   :  { %v2904_v3 = vpop.permute.xlu0 %2903 }
0x19b3   :  { %v6748_v56 = vmul.f32 %v5568_v45, %v2904_v3 }
0x19b5   :  { %v2988_v29 = vrot.slane %v6748_v56, %v6158_v43 }
0x19b7   :  { %v2989_v36 = vcombine.high %v2988_v29, %v2988_v29  ;;  %v2996_v53 = vrot.slane %v2988_v29, %v6158_v43 }
0x19b9   :  { %v3003_v54 = vrot.slane %v2989_v36, %v6158_v43  ;;  %v3007_v6 = vrot.slane %v2996_v53, %v6165_v47 }
0x19bb   :  { %v3019_v21 = vrot.slane %v3007_v6, %v6045_v15  ;;  %v3011_v60 = vrot.slane %v3003_v54, %v6165_v47  ;;  %v3012_v30 = vcombine.high %v3007_v6, %v3007_v6 }
0x19bd   :  { %3046 = vrot.lane.b32.xlu0 %v3019_v21, %s5905_s4  ;;  %v3036_v8 = vrot.slane %v3011_v60, %v6045_v15  ;;  %v3029_v55 = vcombine.high %v3011_v60, %v3011_v60  ;;  %v3027_v26 = vcombine.high %v3019_v21, %v3019_v21  ;;  %v3026_v39 = vrot.slane %v3012_v30, %v6045_v15 }
0x19bf   :  { %3054 = vrot.lane.b32.xlu1 %v3036_v8, %s5905_s4  ;;  %v3043_v31 = vrot.slane %v3029_v55, %v6045_v15  ;;  %v3028_v16 = vcombine.high %v3026_v39, %v3026_v39  ;;  %v3044_v32 = vcombine.high %v3036_v8, %v3036_v8 }
0x19c1   :  { %3048 = vrot.lane.b32.xlu0 %v3027_v26, %s5905_s4  ;;  %v3045_v59 = vcombine.high %v3043_v31, %v3043_v31 }
0x19c3   :  { %3058 = vrot.lane.b32.xlu1 %v3043_v31, %s5905_s4 }
0x19c5   :  { %3050 = vrot.lane.b32.xlu0 %v3026_v39, %s5905_s4 }
0x19c9   :  { %3052 = vrot.lane.b32.xlu0 %v3028_v16, %s5905_s4 }
0x19cd   :  { %3056 = vrot.lane.b32.xlu0 %v3044_v32, %s5905_s4 }
0x19d1   :  { %3060 = vrot.lane.b32.xlu0 %v3045_v59, %s5905_s4 }
0x1a2f   :  { %v3047_v41 = vpop.permute.xlu0 %3046 }
0x1a30   :  { %v3074_v48 = vmul.f32 %v3047_v41, %v6192_v14  ;;  %v3070_v11 = vmul.f32 %v3047_v41, %v6188_v13 }
0x1a31   :  { %v3055_v38 = vpop.permute.xlu1 %3054 }
0x1a32   :  { %v3113_v58 = vrot.slane %v3074_v48, %v6045_v15  ;;  %v3079_v23 = vmul.f32 %v3055_v38, %v6220_v33  ;;  %v3075_v54 = vmul.f32 %v3055_v38, %v6228_v37 }
0x1a33   :  { %v3049_v9 = vpop.permute.xlu0 %3048 }
0x1a34   :  { %v3145_v42 = vsel %vm1060_vm3, %v3113_v58, 0.0  ;;  %v3071_v51 = vmul.f32 %v3049_v9, %v6200_v20  ;;  %v3137_v60 = vrot.slane %v3079_v23, %v6045_v15 }
0x1a35   :  { %3146 = vadd.xlane.f32.xlu0 %v3145_v42  ;;  %v3059_v53 = vpop.permute.xlu1 %3058 }
0x1a36   :  { %v3090_v45 = vcombine.low %v3070_v11, %v3071_v51  ;;  %v3077_v8 = vmul.f32 %v3059_v53, %v6237_v49  ;;  %v3151_v32 = vsel %vm1060_vm3, %v3137_v60, 0.0 }
0x1a37   :  { %v3051_v50 = vpop.permute.xlu0 %3050 }
0x1a38   :  { %v3072_v57 = vmul.f32 %v3051_v50, %v6195_v17  ;;  %v3098_v36 = vrot.slane %v3090_v45, %v6045_v15 }
0x1a3b   :  { %v3053_v52 = vpop.permute.xlu0 %3052 }
0x1a3c   :  { %v3073_v1 = vmul.f32 %v3053_v52, %v6213_v28 }
0x1a3e   :  { %v3091_v19 = vcombine.low %v3072_v57, %v3073_v1 }
0x1a3f   :  { %v3057_v2 = vpop.permute.xlu0 %3056 }
0x1a40   :  { %v3105_v3 = vrot.slane %v3091_v19, %v6045_v15  ;;  %v3076_v29 = vmul.f32 %v3057_v2, %v6223_v34 }
0x1a42   :  { %v3106_v6 = vcombine.low %v3098_v36, %v3105_v3  ;;  %v3114_v55 = vcombine.low %v3075_v54, %v3076_v29 }
0x1a43   :  { %v3061_v21 = vpop.permute.xlu0 %3060 }
0x1a44   :  { %v3078_v26 = vmul.f32 %v3061_v21, %v6204_v12  ;;  %v3142_v30 = vsel %vm437_vm2, %v3106_v6, 0.0  ;;  %v3122_v39 = vrot.slane %v3114_v55, %v6045_v15 }
0x1a45   :  { %3143 = vadd.xlane.f32.xlu1 %v3142_v30 }
0x1a46   :  { %v3115_v31 = vcombine.low %v3077_v8, %v3078_v26 }
0x1a48   :  { %v3129_v16 = vrot.slane %v3115_v31, %v6045_v15 }
0x1a49   :  { %3152 = vadd.xlane.f32.xlu1 %v3151_v32 }
0x1a4a   :  { %v3130_v59 = vcombine.low %v3122_v39, %v3129_v16 }
0x1a4c   :  { %v3148_v41 = vsel %vm437_vm2, %v3130_v59, 0.0 }
0x1a4d   :  { %3149 = vadd.xlane.f32.xlu0 %v3148_v41 }
0x1abe   :  { %v3147_v48 = vpop.xlane.xlu0 %3146 }
0x1abf   :  { %v3155_v58 = vadd.f32 %v3147_v48, %v6278_v35 }
0x1ac1   :  { %3166 = vperm.xlu1 %5471, %v3155_v58  }
0x1ace   :  { %v3144_v9 = vpop.xlane.xlu1 %3143 }
0x1acf   :  { %v3154_v42 = vadd.f32 %v3144_v9, %v6251_v22 }
0x1ad1   :  { %3163 = vperm.xlu0 %5472, %v3154_v42  }
0x1ad2   :  { %v3153_v50 = vpop.xlane.xlu1 %3152 }
0x1ad3   :  { %v3157_v51 = vadd.f32 %v3153_v50, %v6259_v10 }
0x1ad5   :  { %3172 = vperm.xlu0 %5472, %v3157_v51  }
0x1ad6   :  { %v3150_v11 = vpop.xlane.xlu0 %3149 }
0x1ad7   :  { %v3156_v38 = vadd.f32 %v3150_v11, %v6253_v24 }
0x1ad9   :  { %3169 = vperm.xlu1 %5471, %v3156_v38  }
0x1add   :  { %2908 = vrot.lane.b32.xlu1 %v6748_v56, %s5905_s4 }
0x1b3c   :  { %v3167_v45 = vpop.permute.xlu1 %3166 }
0x1b3d   :  { %v3181_v23 = vrot.slane %v3167_v45, %v6313_v46 }
0x1b4c   :  { %v3164_v52 = vpop.permute.xlu0 %3163 }
0x1b4d   :  { %v3177_v1 = vrot.slane %v3164_v52, %v6310_v44 }
0x1b4f   :  { %v3182_v29 = vsel %vm1128_vm4, %v3181_v23, %v3177_v1 }
0x1b50   :  { %v3173_v57 = vpop.permute.xlu0 %3172 }
0x1b51   :  { %v3190_v2 = vrot.slane %v3173_v57, %v6313_v46 }
0x1b54   :  { %v3170_v19 = vpop.permute.xlu1 %3169 }
0x1b55   :  { %v3186_v3 = vrot.slane %v3170_v19, %v6310_v44 }
0x1b57   :  { %v3191_v36 = vsel %vm1128_vm4, %v3190_v2, %v3186_v3 }
0x1b58   :  { %v2909_v53 = vpop.permute.xlu1 %2908  ;;  %v3192_v54 = vsel %vm1139_vm5, %v3191_v36, %v3182_v29 }
0x1b59   :  { %5381 = vmatmul.mubr.msk.f32.vlgmr.msra.gmra.mxu0 %vm437_vm2, %v2909_v53  ;;  %v3194_v56 = vsel %vm1142_vm6, %v3192_v54, -inf }
0x1b5a   :  { %3195 = vmax.xlane.f32.xlu0 %v3194_v56  ;;  %5395 = vmatpush3.msra.mxu0 %v6688_v18 }
0x1b5b   :  { %5396 = vmatprep.subr.mxu0 %v5913_v0  ;;  %5402 = vmatprep.mubr.msk.f32.mxu0 %vm5915_vm0, %v5913_v0 }
0x1b5c   :  { %5397 = vmatpush3.msra.mxu0 %v6694_v25 }
0x1b5d   :  { %5398 = vmatprep.subr.mxu0 %v5913_v0 }
0x1b5e   :  { %5399 = vmatpush3.msra.mxu0 %v6698_v27 }
0x1b5f   :  { %5400 = vmatprep.subr.mxu0 %v5913_v0 }
0x1b60   :  { %5401 = vmatpush3.msra.mxu0 %v6702_v7 }
0x1b61   :  { %5416 = vmatprep.subr.mxu0 %v5913_v0 }
0x1be3   :  { %v3196_v6 = vpop.xlane.xlu0 %3195 }
0x1be4   :  { %v3201_v21 = vrot.slane %v3196_v6, %v6165_v47  ;;  %v3205_v60 = vrot.slane %v3196_v6, %v6243_v63 }
0x1be6   :  { %v3208_v8 = vsub.f32 %v3154_v42, %v3201_v21  ;;  %v3209_v55 = vsub.f32 %v3155_v58, %v3201_v21  ;;  %v3210_v30 = vsub.f32 %v3156_v38, %v3205_v60  ;;  %v3211_v39 = vsub.f32 %v3157_v51, %v3205_v60 }
0x1be8   :  { %v3212_v26 = vmul.f32 1.442695, %v3208_v8  ;;  %v3214_v31 = vmul.f32 1.442695, %v3209_v55  ;;  %v3216_v16 = vmul.f32 1.442695, %v3210_v30 }
0x1be9   :  { %v3218_v32 = vmul.f32 1.442695, %v3211_v39 }
0x1bea   :  { %5571 = vpow2.f32 %v3212_v26 }
0x1beb   :  { %5573 = vpow2.f32 %v3214_v31 }
0x1bec   :  { %5575 = vpow2.f32 %v3216_v16 }
0x1bed   :  { %5577 = vpow2.f32 %v3218_v32 }
0x1bf7   :  { %v5572_v59 = vpop.eup %5571 }
0x1bf8   :  { %3225 = vperm.xlu1 %5471, %v5572_v59   ;;  %v5574_v41 = vpop.eup %5573 }
0x1bf9   :  { %v5576_v48 = vpop.eup %5575 }
0x1bfa   :  { %v5578_v9 = vpop.eup %5577 }
0x1bfc   :  { %3228 = vperm.xlu1 %5471, %v5574_v41  }
0x1c00   :  { %3231 = vperm.xlu1 %5471, %v5576_v48  }
0x1c04   :  { %3234 = vperm.xlu1 %5471, %v5578_v9  }
0x1c19   :  { %v2978_v42 = vpop.f32.mrf.mxu0 }
0x1c1b   :  { %v5382_v58 = vpop.f32.mrf.mxu0 }
0x1c73   :  { %v3226_v50 = vpop.permute.xlu1 %3225 }
0x1c74   :  { %v3263_v11 = vmul.f32 %v3226_v50, %v6362_v62  ;;  %v3239_v2 = vrot.slane %v3226_v50, %v6310_v44 }
0x1c76   :  { %v3267_v52 = vsel %vm437_vm2, %v3263_v11, 0.0 }
0x1c77   :  { %v3229_v38 = vpop.permute.xlu1 %3228 }
0x1c78   :  { %v3264_v51 = vmul.f32 %v3229_v38, %v6360_v61  ;;  %v3243_v19 = vrot.slane %v3229_v38, %v6313_v46 }
0x1c7a   :  { %v3268_v45 = vsel %vm1060_vm3, %v3264_v51, 0.0  ;;  %v3244_v36 = vsel %vm1128_vm4, %v3243_v19, %v3239_v2 }
0x1c7b   :  { %v3269_v57 = vadd.f32 %v3268_v45, %v3267_v52  ;;  %v3232_v1 = vpop.permute.xlu1 %3231  ;;  %v3294_v45 = vrot.slane %v2978_v42, 1 }
0x1c7c   :  { %v3248_v3 = vrot.slane %v3232_v1, %v6310_v44  ;;  %v3265_v21 = vmul.f32 %v3232_v1, %v6339_v40 }
0x1c7d   :  { %v3270_v26 = vrot.slane %v3269_v57, 4 }
0x1c7e   :  { %v3276_v8 = vsel %vm437_vm2, %v3265_v21, 0.0 }
0x1c7f   :  { %v3235_v23 = vpop.permute.xlu1 %3234  ;;  %v3271_v31 = vadd.f32 %v3270_v26, %v3269_v57 }
0x1c80   :  { %v3252_v29 = vrot.slane %v3235_v23, %v6313_v46  ;;  %v3266_v6 = vmul.f32 %v3235_v23, %v6365_v5 }
0x1c81   :  { %v3272_v32 = vrot.slane %v3271_v31, 2 }
0x1c82   :  { %v3253_v53 = vsel %vm1128_vm4, %v3252_v29, %v3248_v3  ;;  %v3277_v60 = vsel %vm1060_vm3, %v3266_v6, 0.0 }
0x1c83   :  { %v3254_v54 = vsel %vm1139_vm5, %v3253_v53, %v3244_v36  ;;  %v3278_v55 = vadd.f32 %v3277_v60, %v3276_v8  ;;  %v3273_v41 = vadd.f32 %v3272_v32, %v3271_v31  ;;  %v6837_v36 = vld [vmem:[%s7173_s6 + $0x18] sm:$0xff]  ;;  %v6853_v53 = vld [vmem:[%s7173_s6 + $0x8] sm:$0xff] }
0x1c84   :  { %v3256_v56 = vsel %vm1142_vm6, %v3254_v54, 0.0  ;;  %v3309_v8 = vld [vmem:[#allocation2 + $0xa] sm:$0x3] }
0x1c85   :  { %3257 = vadd.xlane.f32.xlu1 %v3256_v56  ;;  %v3279_v30 = vrot.slane %v3278_v55, 4  ;;  %v3274_v9 = vrot.slane %v3273_v41, 1  ;;  %v6860_v56 = vld [vmem:[%s7173_s6] sm:$0xff] }
0x1c87   :  { %v3280_v39 = vadd.f32 %v3279_v30, %v3278_v55  ;;  %v3275_v50 = vadd.f32 %v3274_v9, %v3273_v41 }
0x1c89   :  { %v3281_v59 = vrot.slane %v3280_v39, 2 }
0x1c8b   :  { %v3282_v48 = vadd.f32 %v3281_v59, %v3280_v39 }
0x1c8d   :  { %v3283_v58 = vrot.slane %v3282_v48, 1 }
0x1c8f   :  { %v3284_v38 = vadd.f32 %v3283_v58, %v3282_v48 }
0x1d0e   :  { %v3258_v16 = vpop.xlane.xlu1 %3257 }
0x1d0f   :  { %5579 = vrcp.f32 %v3258_v16 }
0x1d1c   :  { %v5580_v11 = vpop.eup %5579 }
0x1d1d   :  { %v3288_v51 = vrot.slane %v5580_v11, 1  ;;  %v3291_v52 = vmul.f32 %v5580_v11, %v3275_v50 }
0x1d1f   :  { %v3292_v1 = vmul.f32 %v3288_v51, %v3284_v38  ;;  %v3297_v19 = vadd.f32 %v3291_v52, %v2978_v42  ;;  %v6846_v42 = vld [vmem:[%s7173_s6 + $0x10] sm:$0xff]  ;;  %s5919_s6 = smov 96  }
0x1d21   :  { %v3298_v23 = vadd.f32 %v3294_v45, %v3292_v1 }
0x1d23   :  { %5581 = vtanh.f32 %v3298_v23 }
0x1d24   :  { %5583 = vtanh.f32 %v3297_v19 }
0x1d30   :  { %v5582_v57 = vpop.eup %5581 }
0x1d31   :  { %v3303_v2 = vrot.slane %v5582_v57, 7  ;;  %v5584_v3 = vpop.eup %5583 }
0x1d33   :  { %v3304_v29 = vsel %vm1139_vm5, %v3303_v2, %v5584_v3 }
0x1d34   :  { %3307 = vst.msk [vmem:[#allocation3 + $0x8] sm:$0x3] %vm1060_vm3, %v3304_v29  ;;  %5392 = vmatmul.mubr.msk.f32.vlgmr.msra.gmra.mxu1 %vm437_vm2, %v3304_v29 }
0x1d35   :  { %5406 = vmatpush3.msra.mxu1 %v6837_v36  ;;  %5413 = vmatprep.mubr.msk.f32.mxu1 %vm5915_vm0, %v5913_v0 }
0x1d36   :  { %5407 = vmatprep.subr.mxu1 %v5913_v0 }
0x1d37   :  { %5408 = vmatpush3.msra.mxu1 %v6846_v42 }
0x1d38   :  { %5409 = vmatprep.subr.mxu1 %v5913_v0 }
0x1d39   :  { %5410 = vmatpush3.msra.mxu1 %v6853_v53 }
0x1d3a   :  { %5411 = vmatprep.subr.mxu1 %v5913_v0 }
0x1d3b   :  { %v5130_v54 = vld.sshfl [vmem:[#allocation3 + $0x8] sm:$0x11 pattern:$0x75316420]  ;;  %5412 = vmatpush3.msra.mxu1 %v6860_v56 }
0x1d3c   :  { %v4936_v6 = vcombine.high %v5130_v54, %v5130_v54  ;;  %v4943_v21 = vrot.slane %v5130_v54, %v6158_v43  ;;  %5427 = vmatprep.subr.mxu1 %v5913_v0 }
0x1d3e   :  { %v4950_v60 = vrot.slane %v4936_v6, %v6158_v43  ;;  %4953 = vst.msk [vmem:[#allocation18 + $0x4] sm:$0x1] %vm4840_vm7, %v4943_v21 }
0x1d40   :  { %4954 = vst.msk [vmem:[#allocation18 + $0xc] sm:$0x1] %vm4840_vm7, %v4950_v60 }
0x1df4   :  { %v3378_v55 = vpop.f32.mrf.mxu1 }
0x1df5   :  { %v3382_v26 = vadd.f32 %v3378_v55, %v3309_v8 }
0x1df6   :  { %v5393_v30 = vpop.f32.mrf.mxu1 }
0x1df7   :  { %5585 = vtanh.f32 %v3382_v26  ;;  %v5118_v39 = vmul.f32 -1.442695, %v3382_v26 }
0x1df9   :  { %5587 = vpow2.f32 %v5118_v39 }
0x1e04   :  { %v5586_v31 = vpop.eup %5585 }
0x1e05   :  { %3392 = vrot.lane.b32.xlu0 %v5586_v31, %s5916_s9 }
0x1e06   :  { %v5588_v16 = vpop.eup %5587 }
0x1e07   :  { %v3386_v32 = vadd.f32 1.0, %v5588_v16 }
0x1e09   :  { %5589 = vrcp.f32 %v3386_v32 }
0x1e16   :  { %v5590_v59 = vpop.eup %5589 }
0x1e17   :  { %v3390_v9 = vmul.f32 %v5590_v59, %v6744_v4 }
0x1e77   :  { %v3393_v41 = vpop.permute.xlu0 %3392 }
0x1e78   :  { %v3395_v48 = vmul.f32 %v5590_v59, %v3393_v41 }
0x1e7a   :  { %3397 = vrot.lane.b32.xlu1 %v3395_v48, %s5905_s4 }
0x1eec   :  { %v3398_v58 = vpop.permute.xlu1 %3397 }
0x1eed   :  { %v6871_v50 = vadd.f32 %v3398_v58, %v3390_v9 }
0x1eef   :  { %5591 = vtanh.f32 %v6871_v50 }
0x1efc   :  { %v5592_v11 = vpop.eup %5591 }
0x1efd   :  { %3403 = vrot.lane.b32.xlu0 %v5592_v11, %s5916_s9 }
0x1f6f   :  { %v3404_v38 = vpop.permute.xlu0 %3403 }
0x1f70   :  { %v6875_v51 = vmul.f32 %v5590_v59, %v3404_v38 }
0x1f72   :  { %v3488_v52 = vrot.slane %v6875_v51, %v6158_v43 }
0x1f74   :  { %v3489_v45 = vcombine.high %v3488_v52, %v3488_v52  ;;  %v3496_v1 = vrot.slane %v3488_v52, %v6158_v43 }
0x1f76   :  { %v3503_v19 = vrot.slane %v3489_v45, %v6158_v43  ;;  %v3507_v4 = vrot.slane %v3496_v1, %v6165_v47 }
0x1f78   :  { %v3519_v23 = vrot.slane %v3507_v4, %v6045_v15  ;;  %v3511_v57 = vrot.slane %v3503_v19, %v6165_v47  ;;  %v3512_v54 = vcombine.high %v3507_v4, %v3507_v4 }
0x1f7a   :  { %3546 = vrot.lane.b32.xlu0 %v3519_v23, %s5905_s4  ;;  %v3536_v2 = vrot.slane %v3511_v57, %v6045_v15  ;;  %v3529_v3 = vcombine.high %v3511_v57, %v3511_v57  ;;  %v3527_v29 = vcombine.high %v3519_v23, %v3519_v23  ;;  %v3526_v21 = vrot.slane %v3512_v54, %v6045_v15 }
0x1f7c   :  { %3554 = vrot.lane.b32.xlu1 %v3536_v2, %s5905_s4  ;;  %v3543_v6 = vrot.slane %v3529_v3, %v6045_v15  ;;  %v3528_v60 = vcombine.high %v3526_v21, %v3526_v21  ;;  %v3544_v8 = vcombine.high %v3536_v2, %v3536_v2 }
0x1f7e   :  { %3548 = vrot.lane.b32.xlu0 %v3527_v29, %s5905_s4  ;;  %v3545_v55 = vcombine.high %v3543_v6, %v3543_v6 }
0x1f80   :  { %3558 = vrot.lane.b32.xlu1 %v3543_v6, %s5905_s4 }
0x1f82   :  { %3550 = vrot.lane.b32.xlu0 %v3526_v21, %s5905_s4 }
0x1f86   :  { %3552 = vrot.lane.b32.xlu0 %v3528_v60, %s5905_s4 }
0x1f8a   :  { %3556 = vrot.lane.b32.xlu0 %v3544_v8, %s5905_s4 }
0x1f8e   :  { %3560 = vrot.lane.b32.xlu0 %v3545_v55, %s5905_s4 }
0x1fec   :  { %v3547_v26 = vpop.permute.xlu0 %3546 }
0x1fed   :  { %v3574_v30 = vmul.f32 %v3547_v26, %v6192_v14  ;;  %v3570_v41 = vmul.f32 %v3547_v26, %v6188_v13 }
0x1fee   :  { %v3555_v48 = vpop.permute.xlu1 %3554 }
0x1fef   :  { %v3613_v31 = vrot.slane %v3574_v30, %v6045_v15  ;;  %v3579_v45 = vmul.f32 %v3555_v48, %v6220_v33  ;;  %v3575_v2 = vmul.f32 %v3555_v48, %v6228_v37 }
0x1ff0   :  { %v3549_v39 = vpop.permute.xlu0 %3548 }
0x1ff1   :  { %v3645_v16 = vsel %vm1060_vm3, %v3613_v31, 0.0  ;;  %v3571_v59 = vmul.f32 %v3549_v39, %v6200_v20  ;;  %v3637_v54 = vrot.slane %v3579_v45, %v6045_v15 }
0x1ff2   :  { %3646 = vadd.xlane.f32.xlu0 %v3645_v16  ;;  %v3559_v57 = vpop.permute.xlu1 %3558 }
0x1ff3   :  { %v3590_v58 = vcombine.low %v3570_v41, %v3571_v59  ;;  %v3577_v6 = vmul.f32 %v3559_v57, %v6237_v49  ;;  %v3651_v31 = vsel %vm1060_vm3, %v3637_v54, 0.0 }
0x1ff4   :  { %v3551_v32 = vpop.permute.xlu0 %3550 }
0x1ff5   :  { %v3572_v11 = vmul.f32 %v3551_v32, %v6195_v17  ;;  %v3598_v19 = vrot.slane %v3590_v58, %v6045_v15 }
0x1ff8   :  { %v3553_v9 = vpop.permute.xlu0 %3552 }
0x1ff9   :  { %v3573_v38 = vmul.f32 %v3553_v9, %v6213_v28 }
0x1ffb   :  { %v3591_v52 = vcombine.low %v3572_v11, %v3573_v38 }
0x1ffc   :  { %v3557_v1 = vpop.permute.xlu0 %3556 }
0x1ffd   :  { %v3605_v4 = vrot.slane %v3591_v52, %v6045_v15  ;;  %v3576_v23 = vmul.f32 %v3557_v1, %v6223_v34 }
0x1fff   :  { %v3606_v3 = vcombine.low %v3598_v19, %v3605_v4  ;;  %v3614_v21 = vcombine.low %v3575_v2, %v3576_v23 }
0x2000   :  { %v3561_v29 = vpop.permute.xlu0 %3560 }
0x2001   :  { %v3578_v60 = vmul.f32 %v3561_v29, %v6204_v12  ;;  %v3642_v8 = vsel %vm437_vm2, %v3606_v3, 0.0  ;;  %v3622_v26 = vrot.slane %v3614_v21, %v6045_v15 }
0x2002   :  { %3643 = vadd.xlane.f32.xlu1 %v3642_v8 }
0x2003   :  { %v3615_v55 = vcombine.low %v3577_v6, %v3578_v60 }
0x2005   :  { %v3629_v30 = vrot.slane %v3615_v55, %v6045_v15 }
0x2006   :  { %3652 = vadd.xlane.f32.xlu1 %v3651_v31 }
0x2007   :  { %v3630_v39 = vcombine.low %v3622_v26, %v3629_v30 }
0x2009   :  { %v3648_v16 = vsel %vm437_vm2, %v3630_v39, 0.0 }
0x200a   :  { %3649 = vadd.xlane.f32.xlu0 %v3648_v16 }
0x207b   :  { %v3647_v32 = vpop.xlane.xlu0 %3646 }
0x207c   :  { %v3655_v59 = vadd.f32 %v3647_v32, %v6278_v35 }
0x207e   :  { %3666 = vperm.xlu1 %5471, %v3655_v59  }
0x208b   :  { %v3644_v41 = vpop.xlane.xlu1 %3643 }
0x208c   :  { %v3654_v48 = vadd.f32 %v3644_v41, %v6251_v22 }
0x208e   :  { %3663 = vperm.xlu0 %5472, %v3654_v48  }
0x208f   :  { %v3653_v9 = vpop.xlane.xlu1 %3652 }
0x2090   :  { %v3657_v58 = vadd.f32 %v3653_v9, %v6259_v10 }
0x2092   :  { %3672 = vperm.xlu0 %5472, %v3657_v58  }
0x2093   :  { %v3650_v11 = vpop.xlane.xlu0 %3649 }
0x2094   :  { %v3656_v38 = vadd.f32 %v3650_v11, %v6253_v24 }
0x2096   :  { %3669 = vperm.xlu1 %5471, %v3656_v38  }
0x209a   :  { %3408 = vrot.lane.b32.xlu1 %v6875_v51, %s5905_s4 }
0x20f9   :  { %v3667_v45 = vpop.permute.xlu1 %3666 }
0x20fa   :  { %v3681_v23 = vrot.slane %v3667_v45, %v6313_v46 }
0x2109   :  { %v3664_v52 = vpop.permute.xlu0 %3663 }
0x210a   :  { %v3677_v19 = vrot.slane %v3664_v52, %v6310_v44 }
0x210c   :  { %v3682_v3 = vsel %vm1128_vm4, %v3681_v23, %v3677_v19 }
0x210d   :  { %v3673_v1 = vpop.permute.xlu0 %3672 }
0x210e   :  { %v3690_v57 = vrot.slane %v3673_v1, %v6313_v46 }
0x2111   :  { %v3670_v4 = vpop.permute.xlu1 %3669 }
0x2112   :  { %v3686_v2 = vrot.slane %v3670_v4, %v6310_v44 }
0x2114   :  { %v3691_v29 = vsel %vm1128_vm4, %v3690_v57, %v3686_v2 }
0x2115   :  { %v3409_v54 = vpop.permute.xlu1 %3408  ;;  %v3692_v6 = vsel %vm1139_vm5, %v3691_v29, %v3682_v3 }
0x2116   :  { %5403 = vmatmul.mubr.msk.f32.vlgmr.msra.gmra.mxu0 %vm437_vm2, %v3409_v54  ;;  %v3694_v51 = vsel %vm1142_vm6, %v3692_v6, -inf }
0x2117   :  { %3695 = vmax.xlane.f32.xlu0 %v3694_v51  ;;  %5417 = vmatpush3.msra.mxu0 %v6688_v18 }
0x2118   :  { %5418 = vmatprep.subr.mxu0 %v5913_v0  ;;  %5424 = vmatprep.mubr.msk.f32.mxu0 %vm5915_vm0, %v5913_v0 }
0x2119   :  { %5419 = vmatpush3.msra.mxu0 %v6694_v25 }
0x211a   :  { %5420 = vmatprep.subr.mxu0 %v5913_v0 }
0x211b   :  { %5421 = vmatpush3.msra.mxu0 %v6698_v27 }
0x211c   :  { %5422 = vmatprep.subr.mxu0 %v5913_v0 }
0x211d   :  { %5423 = vmatpush3.msra.mxu0 %v6702_v7 }
0x211e   :  { %5438 = vmatprep.subr.mxu0 %v5913_v0 }
0x21a0   :  { %v3696_v21 = vpop.xlane.xlu0 %3695 }
0x21a1   :  { %v3701_v18 = vrot.slane %v3696_v21, %v6165_v47  ;;  %v3705_v60 = vrot.slane %v3696_v21, %v6243_v63 }
0x21a3   :  { %v3708_v8 = vsub.f32 %v3654_v48, %v3701_v18  ;;  %v3709_v55 = vsub.f32 %v3655_v59, %v3701_v18  ;;  %v3710_v30 = vsub.f32 %v3656_v38, %v3705_v60  ;;  %v3711_v31 = vsub.f32 %v3657_v58, %v3705_v60 }
0x21a5   :  { %v3712_v26 = vmul.f32 1.442695, %v3708_v8  ;;  %v3714_v25 = vmul.f32 1.442695, %v3709_v55  ;;  %v3716_v27 = vmul.f32 1.442695, %v3710_v30 }
0x21a6   :  { %v3718_v39 = vmul.f32 1.442695, %v3711_v31 }
0x21a7   :  { %5593 = vpow2.f32 %v3712_v26 }
0x21a8   :  { %5595 = vpow2.f32 %v3714_v25 }
0x21a9   :  { %5597 = vpow2.f32 %v3716_v27 }
0x21aa   :  { %5599 = vpow2.f32 %v3718_v39 }
0x21b4   :  { %v5594_v7 = vpop.eup %5593 }
0x21b5   :  { %3725 = vperm.xlu1 %5471, %v5594_v7   ;;  %v5596_v16 = vpop.eup %5595 }
0x21b6   :  { %v5598_v32 = vpop.eup %5597 }
0x21b7   :  { %v5600_v41 = vpop.eup %5599 }
0x21b9   :  { %3728 = vperm.xlu1 %5471, %v5596_v16  }
0x21bd   :  { %3731 = vperm.xlu1 %5471, %v5598_v32  }
0x21c1   :  { %3734 = vperm.xlu1 %5471, %v5600_v41  }
0x21d6   :  { %v3478_v48 = vpop.f32.mrf.mxu0 }
0x21d8   :  { %v5404_v59 = vpop.f32.mrf.mxu0 }
0x2230   :  { %v3726_v9 = vpop.permute.xlu1 %3725 }
0x2231   :  { %v3763_v11 = vmul.f32 %v3726_v9, %v6362_v62  ;;  %v3739_v57 = vrot.slane %v3726_v9, %v6310_v44 }
0x2233   :  { %v3767_v52 = vsel %vm437_vm2, %v3763_v11, 0.0 }
0x2234   :  { %v3729_v38 = vpop.permute.xlu1 %3728 }
0x2235   :  { %v3764_v58 = vmul.f32 %v3729_v38, %v6360_v61  ;;  %v3743_v4 = vrot.slane %v3729_v38, %v6313_v46 }
0x2237   :  { %v3768_v45 = vsel %vm1060_vm3, %v3764_v58, 0.0  ;;  %v3744_v29 = vsel %vm1128_vm4, %v3743_v4, %v3739_v57 }
0x2238   :  { %v3769_v1 = vadd.f32 %v3768_v45, %v3767_v52  ;;  %v3732_v19 = vpop.permute.xlu1 %3731  ;;  %v3794_v45 = vrot.slane %v3478_v48, 1 }
0x2239   :  { %v3748_v2 = vrot.slane %v3732_v19, %v6310_v44  ;;  %v3765_v18 = vmul.f32 %v3732_v19, %v6339_v40 }
0x223a   :  { %v3770_v26 = vrot.slane %v3769_v1, 4 }
0x223b   :  { %v3776_v8 = vsel %vm437_vm2, %v3765_v18, 0.0 }
0x223c   :  { %v3735_v23 = vpop.permute.xlu1 %3734  ;;  %v3771_v25 = vadd.f32 %v3770_v26, %v3769_v1 }
0x223d   :  { %v3752_v3 = vrot.slane %v3735_v23, %v6313_v46  ;;  %v3766_v21 = vmul.f32 %v3735_v23, %v6365_v5 }
0x223e   :  { %v3772_v39 = vrot.slane %v3771_v25, 2 }
0x223f   :  { %v3753_v54 = vsel %vm1128_vm4, %v3752_v3, %v3748_v2  ;;  %v3777_v60 = vsel %vm1060_vm3, %v3766_v21, 0.0 }
0x2240   :  { %v3754_v6 = vsel %vm1139_vm5, %v3753_v54, %v3744_v29  ;;  %v3778_v55 = vadd.f32 %v3777_v60, %v3776_v8  ;;  %v3773_v16 = vadd.f32 %v3772_v39, %v3771_v25 }
0x2241   :  { %v3756_v51 = vsel %vm1142_vm6, %v3754_v6, 0.0  ;;  %v3809_v6 = vld [vmem:[#allocation2 + $0xc] sm:$0x3] }
0x2242   :  { %3757 = vadd.xlane.f32.xlu1 %v3756_v51  ;;  %v3779_v30 = vrot.slane %v3778_v55, 4  ;;  %v3774_v41 = vrot.slane %v3773_v16, 1 }
0x2244   :  { %v3780_v31 = vadd.f32 %v3779_v30, %v3778_v55  ;;  %v3775_v9 = vadd.f32 %v3774_v41, %v3773_v16 }
0x2246   :  { %v3781_v7 = vrot.slane %v3780_v31, 2 }
0x2248   :  { %v3782_v32 = vadd.f32 %v3781_v7, %v3780_v31 }
0x224a   :  { %v3783_v59 = vrot.slane %v3782_v32, 1 }
0x224c   :  { %v3784_v38 = vadd.f32 %v3783_v59, %v3782_v32 }
0x22cb   :  { %v3758_v27 = vpop.xlane.xlu1 %3757 }
0x22cc   :  { %5601 = vrcp.f32 %v3758_v27 }
0x22d9   :  { %v5602_v11 = vpop.eup %5601 }
0x22da   :  { %v3788_v58 = vrot.slane %v5602_v11, 1  ;;  %v3791_v52 = vmul.f32 %v5602_v11, %v3775_v9 }
0x22dc   :  { %v3792_v19 = vmul.f32 %v3788_v58, %v3784_v38  ;;  %v3797_v4 = vadd.f32 %v3791_v52, %v3478_v48 }
0x22de   :  { %v3798_v23 = vadd.f32 %v3794_v45, %v3792_v19 }
0x22e0   :  { %5603 = vtanh.f32 %v3798_v23 }
0x22e1   :  { %5605 = vtanh.f32 %v3797_v4 }
0x22ed   :  { %v5604_v1 = vpop.eup %5603 }
0x22ee   :  { %v3803_v57 = vrot.slane %v5604_v1, 7  ;;  %v5606_v2 = vpop.eup %5605 }
0x22f0   :  { %v3804_v3 = vsel %vm1139_vm5, %v3803_v57, %v5606_v2 }
0x22f1   :  { %3807 = vst.msk [vmem:[#allocation3 + $0xa] sm:$0x3] %vm1060_vm3, %v3804_v3  ;;  %5414 = vmatmul.mubr.msk.f32.vlgmr.msra.gmra.mxu1 %vm437_vm2, %v3804_v3 }
0x22f2   :  { %5428 = vmatpush3.msra.mxu1 %v6837_v36  ;;  %5435 = vmatprep.mubr.msk.f32.mxu1 %vm5915_vm0, %v5913_v0 }
0x22f3   :  { %5429 = vmatprep.subr.mxu1 %v5913_v0 }
0x22f4   :  { %5430 = vmatpush3.msra.mxu1 %v6846_v42 }
0x22f5   :  { %5431 = vmatprep.subr.mxu1 %v5913_v0 }
0x22f6   :  { %5432 = vmatpush3.msra.mxu1 %v6853_v53 }
0x22f7   :  { %5433 = vmatprep.subr.mxu1 %v5913_v0 }
0x22f8   :  { %v5131_v48 = vld.sshfl [vmem:[#allocation3 + $0xa] sm:$0x11 pattern:$0x75316420]  ;;  %5434 = vmatpush3.msra.mxu1 %v6860_v56 }
0x22f9   :  { %v4964_v29 = vcombine.high %v5131_v48, %v5131_v48  ;;  %v4971_v54 = vrot.slane %v5131_v48, %v6158_v43 }
0x22fb   :  { %v4978_v36 = vrot.slane %v4964_v29, %v6158_v43  ;;  %4981 = vst.msk [vmem:[#allocation18 + $0x5] sm:$0x1] %vm4840_vm7, %v4971_v54 }
0x22fd   :  { %4982 = vst.msk [vmem:[#allocation18 + $0xd] sm:$0x1] %vm4840_vm7, %v4978_v36 }
0x23b1   :  { %v3878_v42 = vpop.f32.mrf.mxu1 }
0x23b2   :  { %v3882_v51 = vadd.f32 %v3878_v42, %v3809_v6 }
0x23b3   :  { %v5415_v21 = vpop.f32.mrf.mxu1 }
0x23b4   :  { %5607 = vtanh.f32 %v3882_v51  ;;  %v5121_v18 = vmul.f32 -1.442695, %v3882_v51 }
0x23b6   :  { %5609 = vpow2.f32 %v5121_v18 }
0x23c1   :  { %v5608_v53 = vpop.eup %5607 }
0x23c2   :  { %3892 = vrot.lane.b32.xlu0 %v5608_v53, %s5916_s9 }
0x23c3   :  { %v5610_v56 = vpop.eup %5609 }
0x23c4   :  { %v3886_v60 = vadd.f32 1.0, %v5610_v56 }
0x23c6   :  { %5611 = vrcp.f32 %v3886_v60 }
0x23d3   :  { %v5612_v8 = vpop.eup %5611 }
0x23d4   :  { %v3890_v30 = vmul.f32 %v5612_v8, %v6871_v50 }
0x2434   :  { %v3893_v55 = vpop.permute.xlu0 %3892 }
0x2435   :  { %v3895_v26 = vmul.f32 %v5612_v8, %v3893_v55 }
0x2437   :  { %3897 = vrot.lane.b32.xlu1 %v3895_v26, %s5905_s4 }
0x24a9   :  { %v3898_v25 = vpop.permute.xlu1 %3897 }
0x24aa   :  { %v6977_v31 = vadd.f32 %v3898_v25, %v3890_v30 }
0x24ac   :  { %5613 = vtanh.f32 %v6977_v31 }
0x24b9   :  { %v5614_v27 = vpop.eup %5613 }
0x24ba   :  { %3903 = vrot.lane.b32.xlu0 %v5614_v27, %s5916_s9 }
0x252c   :  { %v3904_v39 = vpop.permute.xlu0 %3903 }
0x252d   :  { %v6981_v7 = vmul.f32 %v5612_v8, %v3904_v39 }
0x252f   :  { %v3988_v16 = vrot.slane %v6981_v7, %v6158_v43 }
0x2531   :  { %v3989_v32 = vcombine.high %v3988_v16, %v3988_v16  ;;  %v3996_v41 = vrot.slane %v3988_v16, %v6158_v43 }
0x2533   :  { %v4003_v59 = vrot.slane %v3989_v32, %v6158_v43  ;;  %v4007_v50 = vrot.slane %v3996_v41, %v6165_v47 }
0x2535   :  { %v4019_v9 = vrot.slane %v4007_v50, %v6045_v15  ;;  %v4011_v11 = vrot.slane %v4003_v59, %v6165_v47  ;;  %v4012_v45 = vcombine.high %v4007_v50, %v4007_v50 }
0x2537   :  { %4046 = vrot.lane.b32.xlu0 %v4019_v9, %s5905_s4  ;;  %v4036_v38 = vrot.slane %v4011_v11, %v6045_v15  ;;  %v4029_v58 = vcombine.high %v4011_v11, %v4011_v11  ;;  %v4027_v52 = vcombine.high %v4019_v9, %v4019_v9  ;;  %v4026_v4 = vrot.slane %v4012_v45, %v6045_v15 }
0x2539   :  { %4054 = vrot.lane.b32.xlu1 %v4036_v38, %s5905_s4  ;;  %v4043_v19 = vrot.slane %v4029_v58, %v6045_v15  ;;  %v4028_v23 = vcombine.high %v4026_v4, %v4026_v4  ;;  %v4044_v1 = vcombine.high %v4036_v38, %v4036_v38 }
0x253b   :  { %4048 = vrot.lane.b32.xlu0 %v4027_v52, %s5905_s4  ;;  %v4045_v57 = vcombine.high %v4043_v19, %v4043_v19 }
0x253d   :  { %4058 = vrot.lane.b32.xlu1 %v4043_v19, %s5905_s4 }
0x253f   :  { %4050 = vrot.lane.b32.xlu0 %v4026_v4, %s5905_s4 }
0x2543   :  { %4052 = vrot.lane.b32.xlu0 %v4028_v23, %s5905_s4 }
0x2547   :  { %4056 = vrot.lane.b32.xlu0 %v4044_v1, %s5905_s4 }
0x254b   :  { %4060 = vrot.lane.b32.xlu0 %v4045_v57, %s5905_s4 }
0x25a9   :  { %v4047_v2 = vpop.permute.xlu0 %4046 }
0x25aa   :  { %v4074_v3 = vmul.f32 %v4047_v2, %v6192_v14  ;;  %v4070_v42 = vmul.f32 %v4047_v2, %v6188_v13 }
0x25ab   :  { %v4055_v51 = vpop.permute.xlu1 %4054 }
0x25ac   :  { %v4113_v48 = vrot.slane %v4074_v3, %v6045_v15  ;;  %v4079_v8 = vmul.f32 %v4055_v51, %v6220_v33  ;;  %v4075_v39 = vmul.f32 %v4055_v51, %v6228_v37 }
0x25ad   :  { %v4049_v29 = vpop.permute.xlu0 %4048 }
0x25ae   :  { %v4145_v54 = vsel %vm1060_vm3, %v4113_v48, 0.0  ;;  %v4071_v6 = vmul.f32 %v4049_v29, %v6200_v20  ;;  %v4137_v41 = vrot.slane %v4079_v8, %v6045_v15 }
0x25af   :  { %4146 = vadd.xlane.f32.xlu0 %v4145_v54  ;;  %v4059_v27 = vpop.permute.xlu1 %4058 }
0x25b0   :  { %v4090_v53 = vcombine.low %v4070_v42, %v4071_v6  ;;  %v4077_v59 = vmul.f32 %v4059_v27, %v6237_v49  ;;  %v4151_v45 = vsel %vm1060_vm3, %v4137_v41, 0.0  ;;  %v5665_v27 = vld [vmem:[#allocation16 + $0x8] sm:$0xff] }
0x25b1   :  { %v4051_v36 = vpop.permute.xlu0 %4050 }
0x25b2   :  { %v4072_v18 = vmul.f32 %v4051_v36, %v6195_v17  ;;  %v4098_v26 = vrot.slane %v4090_v53, %v6045_v15 }
0x25b5   :  { %v4053_v21 = vpop.permute.xlu0 %4052 }
0x25b6   :  { %v4073_v56 = vmul.f32 %v4053_v21, %v6213_v28 }
0x25b8   :  { %v4091_v60 = vcombine.low %v4072_v18, %v4073_v56 }
0x25b9   :  { %v4057_v55 = vpop.permute.xlu0 %4056 }
0x25ba   :  { %v4105_v30 = vrot.slane %v4091_v60, %v6045_v15  ;;  %v4076_v25 = vmul.f32 %v4057_v55, %v6223_v34 }
0x25bc   :  { %v4106_v16 = vcombine.low %v4098_v26, %v4105_v30  ;;  %v4114_v50 = vcombine.low %v4075_v39, %v4076_v25  ;;  %v5663_v30 = vld [vmem:[#allocation16 + $0x18] sm:$0xff]  ;;  %v5664_v25 = vld [vmem:[#allocation16 + $0x10] sm:$0xff]  ;;  %v5666_v39 = vld [vmem:[#allocation16] sm:$0xff] }
0x25bd   :  { %v4061_v32 = vpop.permute.xlu0 %4060 }
0x25be   :  { %v4078_v9 = vmul.f32 %v4061_v32, %v6204_v12  ;;  %v4142_v11 = vsel %vm437_vm2, %v4106_v16, 0.0  ;;  %v4122_v58 = vrot.slane %v4114_v50, %v6045_v15 }
0x25bf   :  { %4143 = vadd.xlane.f32.xlu1 %v4142_v11 }
0x25c0   :  { %v4115_v38 = vcombine.low %v4077_v59, %v4078_v9 }
0x25c2   :  { %v4129_v52 = vrot.slane %v4115_v38, %v6045_v15 }
0x25c3   :  { %4152 = vadd.xlane.f32.xlu1 %v4151_v45 }
0x25c4   :  { %v4130_v19 = vcombine.low %v4122_v58, %v4129_v52 }
0x25c6   :  { %v4148_v4 = vsel %vm437_vm2, %v4130_v19, 0.0 }
0x25c7   :  { %4149 = vadd.xlane.f32.xlu0 %v4148_v4 }
0x2638   :  { %v4147_v23 = vpop.xlane.xlu0 %4146 }
0x2639   :  { %v4155_v1 = vadd.f32 %v4147_v23, %v6278_v35 }
0x263b   :  { %4166 = vperm.xlu1 %5471, %v4155_v1  }
0x2648   :  { %v4144_v57 = vpop.xlane.xlu1 %4143 }
0x2649   :  { %v4154_v2 = vadd.f32 %v4144_v57, %v6251_v22 }
0x264b   :  { %4163 = vperm.xlu0 %5472, %v4154_v2  }
0x264c   :  { %v4153_v3 = vpop.xlane.xlu1 %4152 }
0x264d   :  { %v4157_v48 = vadd.f32 %v4153_v3, %v6259_v10 }
0x264f   :  { %4172 = vperm.xlu0 %5472, %v4157_v48  }
0x2650   :  { %v4150_v29 = vpop.xlane.xlu0 %4149 }
0x2651   :  { %v4156_v54 = vadd.f32 %v4150_v29, %v6253_v24 }
0x2653   :  { %4169 = vperm.xlu1 %5471, %v4156_v54  }
0x2657   :  { %3908 = vrot.lane.b32.xlu1 %v6981_v7, %s5905_s4 }
0x26b6   :  { %v4167_v6 = vpop.permute.xlu1 %4166 }
0x26b7   :  { %v4181_v53 = vrot.slane %v4167_v6, %v6313_v46 }
0x26c6   :  { %v4164_v36 = vpop.permute.xlu0 %4163 }
0x26c7   :  { %v4177_v51 = vrot.slane %v4164_v36, %v6310_v44 }
0x26c9   :  { %v4182_v60 = vsel %vm1128_vm4, %v4181_v53, %v4177_v51 }
0x26ca   :  { %v4173_v42 = vpop.permute.xlu0 %4172 }
0x26cb   :  { %v4190_v18 = vrot.slane %v4173_v42, %v6313_v46 }
0x26ce   :  { %v4170_v21 = vpop.permute.xlu1 %4169 }
0x26cf   :  { %v4186_v56 = vrot.slane %v4170_v21, %v6310_v44 }
0x26d1   :  { %v4191_v8 = vsel %vm1128_vm4, %v4190_v18, %v4186_v56 }
0x26d2   :  { %v3909_v55 = vpop.permute.xlu1 %3908  ;;  %v4192_v26 = vsel %vm1139_vm5, %v4191_v8, %v4182_v60 }
0x26d3   :  { %5425 = vmatmul.mubr.msk.f32.vlgmr.msra.gmra.mxu0 %vm437_vm2, %v3909_v55  ;;  %v4194_v7 = vsel %vm1142_vm6, %v4192_v26, -inf }
0x26d4   :  { %4195 = vmax.xlane.f32.xlu0 %v4194_v7  ;;  %5439 = vmatpush3.msra.mxu0 %v5663_v30 }
0x26d5   :  { %5440 = vmatprep.subr.mxu0 %v5913_v0  ;;  %5446 = vmatprep.mubr.msk.f32.mxu0 %vm5915_vm0, %v5913_v0 }
0x26d6   :  { %5441 = vmatpush3.msra.mxu0 %v5664_v25 }
0x26d7   :  { %5442 = vmatprep.subr.mxu0 %v5913_v0 }
0x26d8   :  { %5443 = vmatpush3.msra.mxu0 %v5665_v27 }
0x26d9   :  { %5444 = vmatprep.subr.mxu0 %v5913_v0 }
0x26da   :  { %5445 = vmatpush3.msra.mxu0 %v5666_v39 }
0x275d   :  { %v4196_v16 = vpop.xlane.xlu0 %4195 }
0x275e   :  { %v4201_v32 = vrot.slane %v4196_v16, %v6165_v47  ;;  %v4205_v41 = vrot.slane %v4196_v16, %v6243_v63 }
0x2760   :  { %v4208_v59 = vsub.f32 %v4154_v2, %v4201_v32  ;;  %v4209_v50 = vsub.f32 %v4155_v1, %v4201_v32  ;;  %v4210_v11 = vsub.f32 %v4156_v54, %v4205_v41  ;;  %v4211_v58 = vsub.f32 %v4157_v48, %v4205_v41 }
0x2762   :  { %v4212_v9 = vmul.f32 1.442695, %v4208_v59  ;;  %v4214_v38 = vmul.f32 1.442695, %v4209_v50  ;;  %v4216_v52 = vmul.f32 1.442695, %v4210_v11 }
0x2763   :  { %v4218_v45 = vmul.f32 1.442695, %v4211_v58 }
0x2764   :  { %5615 = vpow2.f32 %v4212_v9 }
0x2765   :  { %5617 = vpow2.f32 %v4214_v38 }
0x2766   :  { %5619 = vpow2.f32 %v4216_v52 }
0x2767   :  { %5621 = vpow2.f32 %v4218_v45 }
0x2771   :  { %v5616_v0 = vpop.eup %5615 }
0x2772   :  { %4225 = vperm.xlu1 %5471, %v5616_v0   ;;  %v5618_v19 = vpop.eup %5617 }
0x2773   :  { %v5620_v4 = vpop.eup %5619 }
0x2774   :  { %v5622_v23 = vpop.eup %5621 }
0x2776   :  { %4228 = vperm.xlu1 %5471, %v5618_v19  }
0x277a   :  { %4231 = vperm.xlu1 %5471, %v5620_v4  }
0x277e   :  { %4234 = vperm.xlu1 %5471, %v5622_v23  }
0x2793   :  { %v3978_v57 = vpop.f32.mrf.mxu0 }
0x2795   :  { %v5426_v1 = vpop.f32.mrf.mxu0 }
0x27ed   :  { %v4226_v2 = vpop.permute.xlu1 %4225 }
0x27ee   :  { %v4263_v3 = vmul.f32 %v4226_v2, %v6362_v62  ;;  %v4239_v53 = vrot.slane %v4226_v2, %v6310_v44  ;;  %v4294_v2 = vrot.slane %v3978_v57, 1 }
0x27f0   :  { %v4267_v54 = vsel %vm437_vm2, %v4263_v3, 0.0 }
0x27f1   :  { %v4229_v29 = vpop.permute.xlu1 %4228 }
0x27f2   :  { %v4264_v48 = vmul.f32 %v4229_v29, %v6360_v61  ;;  %v4243_v51 = vrot.slane %v4229_v29, %v6313_v46 }
0x27f4   :  { %v4268_v36 = vsel %vm1060_vm3, %v4264_v48, 0.0  ;;  %v4244_v60 = vsel %vm1128_vm4, %v4243_v51, %v4239_v53 }
0x27f5   :  { %v4269_v6 = vadd.f32 %v4268_v36, %v4267_v54  ;;  %v4232_v42 = vpop.permute.xlu1 %4231 }
0x27f6   :  { %v4248_v18 = vrot.slane %v4232_v42, %v6310_v44  ;;  %v4265_v30 = vmul.f32 %v4232_v42, %v6339_v40 }
0x27f7   :  { %v4270_v16 = vrot.slane %v4269_v6, 4 }
0x27f8   :  { %v4276_v27 = vsel %vm437_vm2, %v4265_v30, 0.0 }
0x27f9   :  { %v4235_v21 = vpop.permute.xlu1 %4234  ;;  %v4271_v41 = vadd.f32 %v4270_v16, %v4269_v6 }
0x27fa   :  { %v4252_v56 = vrot.slane %v4235_v21, %v6313_v46  ;;  %v4266_v7 = vmul.f32 %v4235_v21, %v6365_v5 }
0x27fb   :  { %v4272_v9 = vrot.slane %v4271_v41, 2 }
0x27fc   :  { %v4253_v8 = vsel %vm1128_vm4, %v4252_v56, %v4248_v18  ;;  %v4277_v25 = vsel %vm1060_vm3, %v4266_v7, 0.0 }
0x27fd   :  { %v4254_v55 = vsel %vm1139_vm5, %v4253_v8, %v4244_v60  ;;  %v4278_v39 = vadd.f32 %v4277_v25, %v4276_v27  ;;  %v4273_v38 = vadd.f32 %v4272_v9, %v4271_v41 }
0x27fe   :  { %v4256_v26 = vsel %vm1142_vm6, %v4254_v55, 0.0 }
0x27ff   :  { %4257 = vadd.xlane.f32.xlu1 %v4256_v26  ;;  %v4279_v32 = vrot.slane %v4278_v39, 4  ;;  %v4274_v52 = vrot.slane %v4273_v38, 1 }
0x2801   :  { %v4280_v59 = vadd.f32 %v4279_v32, %v4278_v39  ;;  %v4275_v0 = vadd.f32 %v4274_v52, %v4273_v38 }
0x2803   :  { %v4281_v11 = vrot.slane %v4280_v59, 2 }
0x2805   :  { %v4282_v58 = vadd.f32 %v4281_v11, %v4280_v59 }
0x2807   :  { %v4283_v45 = vrot.slane %v4282_v58, 1 }
0x2809   :  { %v4284_v4 = vadd.f32 %v4283_v45, %v4282_v58 }
0x2888   :  { %v4258_v50 = vpop.xlane.xlu1 %4257 }
0x2889   :  { %5623 = vrcp.f32 %v4258_v50 }
0x2896   :  { %v5624_v19 = vpop.eup %5623 }
0x2897   :  { %v4288_v23 = vrot.slane %v5624_v19, 1  ;;  %v4291_v1 = vmul.f32 %v5624_v19, %v4275_v0 }
0x2899   :  { %v4292_v3 = vmul.f32 %v4288_v23, %v4284_v4  ;;  %v4297_v29 = vadd.f32 %v4291_v1, %v3978_v57  ;;  %v4309_v57 = vld [vmem:[#allocation2 + $0xe] sm:$0x3] }
0x289b   :  { %v4298_v48 = vadd.f32 %v4294_v2, %v4292_v3 }
0x289d   :  { %5625 = vtanh.f32 %v4298_v48 }
0x289e   :  { %5627 = vtanh.f32 %v4297_v29 }
0x28aa   :  { %v5626_v54 = vpop.eup %5625 }
0x28ab   :  { %v4303_v36 = vrot.slane %v5626_v54, 7  ;;  %v5628_v6 = vpop.eup %5627 }
0x28ad   :  { %v4304_v42 = vsel %vm1139_vm5, %v4303_v36, %v5628_v6 }
0x28ae   :  { %4307 = vst.msk [vmem:[#allocation3 + $0xc] sm:$0x3] %vm1060_vm3, %v4304_v42  ;;  %5436 = vmatmul.mubr.msk.f32.vlgmr.msra.gmra.mxu1 %vm437_vm2, %v4304_v42 }
0x28b5   :  { %v5132_v51 = vld.sshfl [vmem:[#allocation3 + $0xc] sm:$0x11 pattern:$0x75316420] }
0x28b6   :  { %v4992_v21 = vcombine.high %v5132_v51, %v5132_v51  ;;  %v4999_v53 = vrot.slane %v5132_v51, %v6158_v43 }
0x28b8   :  { %v5006_v18 = vrot.slane %v4992_v21, %v6158_v43  ;;  %5009 = vst.msk [vmem:[#allocation18 + $0x6] sm:$0x1] %vm4840_vm7, %v4999_v53 }
0x28ba   :  { %5010 = vst.msk [vmem:[#allocation18 + $0xe] sm:$0x1] %vm4840_vm7, %v5006_v18 }
0x296e   :  { %v4378_v56 = vpop.f32.mrf.mxu1 }
0x296f   :  { %v4382_v60 = vadd.f32 %v4378_v56, %v4309_v57 }
0x2970   :  { %v5437_v8 = vpop.f32.mrf.mxu1 }
0x2971   :  { %5629 = vtanh.f32 %v4382_v60  ;;  %v5124_v26 = vmul.f32 -1.442695, %v4382_v60 }
0x2973   :  { %5631 = vpow2.f32 %v5124_v26 }
0x297e   :  { %v5630_v55 = vpop.eup %5629 }
0x297f   :  { %4392 = vrot.lane.b32.xlu0 %v5630_v55, %s5916_s9 }
0x2980   :  { %v5632_v7 = vpop.eup %5631 }
0x2981   :  { %v4386_v30 = vadd.f32 1.0, %v5632_v7 }
0x2983   :  { %5633 = vrcp.f32 %v4386_v30 }
0x2990   :  { %v5634_v25 = vpop.eup %5633 }
0x2991   :  { %v4390_v16 = vmul.f32 %v5634_v25, %v6977_v31 }
0x29f1   :  { %v4393_v27 = vpop.permute.xlu0 %4392 }
0x29f2   :  { %v4395_v39 = vmul.f32 %v5634_v25, %v4393_v27 }
0x29f4   :  { %4397 = vrot.lane.b32.xlu1 %v4395_v39, %s5905_s4 }
0x2a66   :  { %v4398_v32 = vpop.permute.xlu1 %4397 }
0x2a67   :  { %v7069_v41 = vadd.f32 %v4398_v32, %v4390_v16 }
0x2a69   :  { %5635 = vtanh.f32 %v7069_v41 }
0x2a76   :  { %v5636_v59 = vpop.eup %5635 }
0x2a77   :  { %4403 = vrot.lane.b32.xlu0 %v5636_v59, %s5916_s9 }
0x2ae9   :  { %v4404_v50 = vpop.permute.xlu0 %4403 }
0x2aea   :  { %v7073_v9 = vmul.f32 %v5634_v25, %v4404_v50 }
0x2aec   :  { %v4488_v11 = vrot.slane %v7073_v9, %v6158_v43 }
0x2aee   :  { %v4489_v38 = vcombine.high %v4488_v11, %v4488_v11  ;;  %v4496_v58 = vrot.slane %v4488_v11, %v6158_v43 }
0x2af0   :  { %v4503_v52 = vrot.slane %v4489_v38, %v6158_v43  ;;  %v4507_v31 = vrot.slane %v4496_v58, %v6165_v47 }
0x2af2   :  { %v4519_v45 = vrot.slane %v4507_v31, %v6045_v15  ;;  %v4511_v0 = vrot.slane %v4503_v52, %v6165_v47  ;;  %v4512_v1 = vcombine.high %v4507_v31, %v4507_v31 }
0x2af4   :  { %4546 = vrot.lane.b32.xlu0 %v4519_v45, %s5905_s4  ;;  %v4536_v19 = vrot.slane %v4511_v0, %v6045_v15  ;;  %v4529_v4 = vcombine.high %v4511_v0, %v4511_v0  ;;  %v4527_v23 = vcombine.high %v4519_v45, %v4519_v45  ;;  %v4526_v3 = vrot.slane %v4512_v1, %v6045_v15 }
0x2af6   :  { %4554 = vrot.lane.b32.xlu1 %v4536_v19, %s5905_s4  ;;  %v4543_v2 = vrot.slane %v4529_v4, %v6045_v15  ;;  %v4528_v29 = vcombine.high %v4526_v3, %v4526_v3  ;;  %v4544_v48 = vcombine.high %v4536_v19, %v4536_v19 }
0x2af8   :  { %4548 = vrot.lane.b32.xlu0 %v4527_v23, %s5905_s4  ;;  %v4545_v54 = vcombine.high %v4543_v2, %v4543_v2 }
0x2afa   :  { %4558 = vrot.lane.b32.xlu1 %v4543_v2, %s5905_s4 }
0x2afc   :  { %4550 = vrot.lane.b32.xlu0 %v4526_v3, %s5905_s4 }
0x2b00   :  { %4552 = vrot.lane.b32.xlu0 %v4528_v29, %s5905_s4 }
0x2b04   :  { %4556 = vrot.lane.b32.xlu0 %v4544_v48, %s5905_s4 }
0x2b08   :  { %4560 = vrot.lane.b32.xlu0 %v4545_v54, %s5905_s4 }
0x2b66   :  { %v4547_v36 = vpop.permute.xlu0 %4546 }
0x2b67   :  { %v4574_v6 = vmul.f32 %v4547_v36, %v6192_v14  ;;  %v4570_v57 = vmul.f32 %v4547_v36, %v6188_v13 }
0x2b68   :  { %v4555_v56 = vpop.permute.xlu1 %4554 }
0x2b69   :  { %v4613_v42 = vrot.slane %v4574_v6, %v6045_v15  ;;  %v4579_v14 = vmul.f32 %v4555_v56, %v6220_v33  ;;  %v4575_v13 = vmul.f32 %v4555_v56, %v6228_v37 }
0x2b6a   :  { %v4549_v51 = vpop.permute.xlu0 %4548 }
0x2b6b   :  { %v4645_v21 = vsel %vm1060_vm3, %v4613_v42, 0.0  ;;  %v4571_v18 = vmul.f32 %v4549_v51, %v6200_v20  ;;  %v4637_v59 = vrot.slane %v4579_v14, %v6045_v15 }
0x2b6c   :  { %4646 = vadd.xlane.f32.xlu0 %v4645_v21  ;;  %v4559_v20 = vpop.permute.xlu1 %4558 }
0x2b6d   :  { %v4590_v8 = vcombine.low %v4570_v57, %v4571_v18  ;;  %v4651_v58 = vsel %vm1060_vm3, %v4637_v59, 0.0 }
0x2b6e   :  { %v4551_v53 = vpop.permute.xlu0 %4550 }
0x2b6f   :  { %v4572_v55 = vmul.f32 %v4551_v53, %v6195_v17  ;;  %v4598_v25 = vrot.slane %v4590_v8, %v6045_v15  ;;  %v4577_v17 = vmul.f32 %v4559_v20, %v6237_v49 }
0x2b72   :  { %v4553_v60 = vpop.permute.xlu0 %4552 }
0x2b73   :  { %v4573_v26 = vmul.f32 %v4553_v60, %v6213_v28 }
0x2b75   :  { %v4591_v7 = vcombine.low %v4572_v55, %v4573_v26 }
0x2b76   :  { %v4557_v30 = vpop.permute.xlu0 %4556 }
0x2b77   :  { %v4605_v27 = vrot.slane %v4591_v7, %v6045_v15  ;;  %v4576_v39 = vmul.f32 %v4557_v30, %v6223_v34 }
0x2b79   :  { %v4606_v16 = vcombine.low %v4598_v25, %v4605_v27  ;;  %v4614_v28 = vcombine.low %v4575_v13, %v4576_v39 }
0x2b7a   :  { %v4561_v32 = vpop.permute.xlu0 %4560 }
0x2b7b   :  { %v4578_v50 = vmul.f32 %v4561_v32, %v6204_v12  ;;  %v4642_v33 = vsel %vm437_vm2, %v4606_v16, 0.0  ;;  %v4622_v38 = vrot.slane %v4614_v28, %v6045_v15 }
0x2b7c   :  { %4643 = vadd.xlane.f32.xlu1 %v4642_v33 }
0x2b7d   :  { %v4615_v11 = vcombine.low %v4577_v17, %v4578_v50 }
0x2b7f   :  { %v4629_v34 = vrot.slane %v4615_v11, %v6045_v15 }
0x2b80   :  { %4652 = vadd.xlane.f32.xlu1 %v4651_v58 }
0x2b81   :  { %v4630_v37 = vcombine.low %v4622_v38, %v4629_v34 }
0x2b83   :  { %v4648_v52 = vsel %vm437_vm2, %v4630_v37, 0.0 }
0x2b84   :  { %4649 = vadd.xlane.f32.xlu0 %v4648_v52 }
0x2bf5   :  { %v4647_v31 = vpop.xlane.xlu0 %4646 }
0x2bf6   :  { %v4655_v49 = vadd.f32 %v4647_v31, %v6278_v35 }
0x2bf8   :  { %4666 = vperm.xlu1 %5471, %v4655_v49  }
0x2c05   :  { %v4644_v12 = vpop.xlane.xlu1 %4643 }
0x2c06   :  { %v4654_v45 = vadd.f32 %v4644_v12, %v6251_v22 }
0x2c08   :  { %4663 = vperm.xlu0 %5472, %v4654_v45  }
0x2c09   :  { %v4653_v0 = vpop.xlane.xlu1 %4652 }
0x2c0a   :  { %v4657_v19 = vadd.f32 %v4653_v0, %v6259_v10 }
0x2c0c   :  { %4672 = vperm.xlu0 %5472, %v4657_v19  }
0x2c0d   :  { %v4650_v15 = vpop.xlane.xlu0 %4649 }
0x2c0e   :  { %v4656_v4 = vadd.f32 %v4650_v15, %v6253_v24 }
0x2c10   :  { %4669 = vperm.xlu1 %5471, %v4656_v4  }
0x2c14   :  { %4408 = vrot.lane.b32.xlu1 %v7073_v9, %s5905_s4  ;;  %s5920_s4 = smov [#allocation19]  }
0x2c15   :  { %s5057_s24 = sshll.u32 %s5920_s4, 4  ;;  %s5058_s24 = int_to_ptr.vmem [resolvable:$true] %s5057_s24 }
0x2c16   :  { %s5827_s3 = scalar_lea.vmem %s5058_s24, 32  ;;  %p5832_p13 = scmp.lt.s32.totalorder %s5058_s24, %s5058_s24 }
0x2c17   :  { %p5828_p12 = scmp.ne.s32.totalorder %s5058_s24, %s5827_s3  ;;  %p5833_p0 = scmp.lt.s32.totalorder %s5827_s3, %s5827_s3 }
0x2c19   :  { %p5834_p1 = por %p5833_p0, %p5832_p13 }
0x2c1b   :  { %p5835_p2 = pnand %p5834_p1, %p5828_p12 }
0x2c73   :  { %v4667_v1 = vpop.permute.xlu1 %4666 }
0x2c74   :  { %v4681_v22 = vrot.slane %v4667_v1, %v6313_v46 }
0x2c83   :  { %v4664_v23 = vpop.permute.xlu0 %4663 }
0x2c84   :  { %v4677_v35 = vrot.slane %v4664_v23, %v6310_v44 }
0x2c86   :  { %v4682_v48 = vsel %vm1128_vm4, %v4681_v22, %v4677_v35 }
0x2c87   :  { %v4673_v2 = vpop.permute.xlu0 %4672 }
0x2c88   :  { %v4690_v29 = vrot.slane %v4673_v2, %v6313_v46 }
0x2c8b   :  { %v4670_v3 = vpop.permute.xlu1 %4669 }
0x2c8c   :  { %v4686_v10 = vrot.slane %v4670_v3, %v6310_v44 }
0x2c8e   :  { %v4691_v24 = vsel %vm1128_vm4, %v4690_v29, %v4686_v10 }
0x2c8f   :  { %v4409_v54 = vpop.permute.xlu1 %4408  ;;  %v4692_v36 = vsel %vm1139_vm5, %v4691_v24, %v4682_v48 }
0x2c90   :  { %5447 = vmatmul.mubr.msk.f32.vlgmr.msra.gmra.mxu0 %vm437_vm2, %v4409_v54  ;;  %v4694_v9 = vsel %vm1142_vm6, %v4692_v36, -inf }
0x2c91   :  { %4695 = vmax.xlane.f32.xlu0 %v4694_v9 }
0x2ca7   :  { %4810 = vrot.lane.b32.xlu0 %v7069_v41, %s5919_s6 }
0x2d1a   :  { %v4696_v6 = vpop.xlane.xlu0 %4695 }
0x2d1b   :  { %v4701_v42 = vrot.slane %v4696_v6, %v6165_v47  ;;  %v4705_v51 = vrot.slane %v4696_v6, %v6243_v63 }
0x2d1d   :  { %v4708_v21 = vsub.f32 %v4654_v45, %v4701_v42  ;;  %v4709_v53 = vsub.f32 %v4655_v49, %v4701_v42  ;;  %v4710_v56 = vsub.f32 %v4656_v4, %v4705_v51  ;;  %v4711_v8 = vsub.f32 %v4657_v19, %v4705_v51 }
0x2d1e   :  { %v4811_v18 = vpop.permute.xlu0 %4810 }
0x2d1f   :  { %v4712_v57 = vmul.f32 1.442695, %v4708_v21  ;;  %4813 = vst.msk [vmem:[#allocation21] sm:$0x3] %vm1060_vm3, %v4811_v18  ;;  %v4714_v60 = vmul.f32 1.442695, %v4709_v53 }
0x2d20   :  { %v4716_v55 = vmul.f32 1.442695, %v4710_v56  ;;  %v4718_v26 = vmul.f32 1.442695, %v4711_v8 }
0x2d21   :  { %5637 = vpow2.f32 %v4712_v57 }
0x2d22   :  { %5639 = vpow2.f32 %v4714_v60 }
0x2d23   :  { %5641 = vpow2.f32 %v4716_v55 }
0x2d24   :  { %5643 = vpow2.f32 %v4718_v26 }
0x2d2e   :  { %v5638_v41 = vpop.eup %5637 }
0x2d2f   :  { %4725 = vperm.xlu1 %5471, %v5638_v41   ;;  %v5640_v47 = vpop.eup %5639 }
0x2d30   :  { %v5642_v63 = vpop.eup %5641 }
0x2d31   :  { %v5644_v7 = vpop.eup %5643 }
0x2d33   :  { %4728 = vperm.xlu1 %5471, %v5640_v47  }
0x2d37   :  { %4731 = vperm.xlu1 %5471, %v5642_v63  }
0x2d3b   :  { %4734 = vperm.xlu1 %5471, %v5644_v7  }
0x2d50   :  { %v4478_v14 = vpop.f32.mrf.mxu0 }
0x2d51   :  { %v4794_v29 = vrot.slane %v4478_v14, 1 }
0x2d52   :  { %v5448_v30 = vpop.f32.mrf.mxu0 }
0x2daa   :  { %v4726_v25 = vpop.permute.xlu1 %4725 }
0x2dab   :  { %v4763_v27 = vmul.f32 %v4726_v25, %v6362_v62  ;;  %v4739_v50 = vrot.slane %v4726_v25, %v6310_v44 }
0x2dad   :  { %v4767_v13 = vsel %vm437_vm2, %v4763_v27, 0.0 }
0x2dae   :  { %v4729_v39 = vpop.permute.xlu1 %4728 }
0x2daf   :  { %v4764_v20 = vmul.f32 %v4729_v39, %v6360_v61  ;;  %v4743_v17 = vrot.slane %v4729_v39, %v6313_v46 }
0x2db1   :  { %v4768_v16 = vsel %vm1060_vm3, %v4764_v20, 0.0  ;;  %v4744_v62 = vsel %vm1128_vm4, %v4743_v17, %v4739_v50 }
0x2db2   :  { %v4769_v32 = vadd.f32 %v4768_v16, %v4767_v13  ;;  %v4732_v59 = vpop.permute.xlu1 %4731 }
0x2db3   :  { %v4748_v33 = vrot.slane %v4732_v59, %v6310_v44  ;;  %v4765_v37 = vmul.f32 %v4732_v59, %v6339_v40 }
0x2db4   :  { %v4770_v49 = vrot.slane %v4769_v32, 4 }
0x2db5   :  { %v4776_v31 = vsel %vm437_vm2, %v4765_v37, 0.0 }
0x2db6   :  { %v4735_v28 = vpop.permute.xlu1 %4734  ;;  %v4771_v12 = vadd.f32 %v4770_v49, %v4769_v32 }
0x2db7   :  { %v4752_v11 = vrot.slane %v4735_v28, %v6313_v46  ;;  %v4766_v58 = vmul.f32 %v4735_v28, %v6365_v5 }
0x2db8   :  { %v4772_v19 = vrot.slane %v4771_v12, 2 }
0x2db9   :  { %v4753_v38 = vsel %vm1128_vm4, %v4752_v11, %v4748_v33  ;;  %v4777_v52 = vsel %vm1060_vm3, %v4766_v58, 0.0 }
0x2dba   :  { %v4754_v61 = vsel %vm1139_vm5, %v4753_v38, %v4744_v62  ;;  %v4778_v44 = vadd.f32 %v4777_v52, %v4776_v31  ;;  %v4773_v4 = vadd.f32 %v4772_v19, %v4771_v12 }
0x2dbb   :  { %v4756_v34 = vsel %vm1142_vm6, %v4754_v61, 0.0 }
0x2dbc   :  { %4757 = vadd.xlane.f32.xlu1 %v4756_v34  ;;  %v4779_v46 = vrot.slane %v4778_v44, 4  ;;  %v4774_v1 = vrot.slane %v4773_v4, 1 }
0x2dbe   :  { %v4780_v45 = vadd.f32 %v4779_v46, %v4778_v44  ;;  %v4775_v5 = vadd.f32 %v4774_v1, %v4773_v4 }
0x2dc0   :  { %v4781_v15 = vrot.slane %v4780_v45, 2 }
0x2dc2   :  { %v4782_v23 = vadd.f32 %v4781_v15, %v4780_v45 }
0x2dc4   :  { %v4783_v2 = vrot.slane %v4782_v23, 1 }
0x2dc6   :  { %v4784_v40 = vadd.f32 %v4783_v2, %v4782_v23 }
0x2e45   :  { %v4758_v0 = vpop.xlane.xlu1 %4757 }
0x2e46   :  { %5645 = vrcp.f32 %v4758_v0 }
0x2e53   :  { %v5646_v35 = vpop.eup %5645 }
0x2e54   :  { %v4788_v3 = vrot.slane %v5646_v35, 1  ;;  %v4791_v22 = vmul.f32 %v5646_v35, %v4775_v5 }
0x2e56   :  { %v4792_v10 = vmul.f32 %v4788_v3, %v4784_v40  ;;  %v4797_v48 = vadd.f32 %v4791_v22, %v4478_v14 }
0x2e58   :  { %v4798_v24 = vadd.f32 %v4794_v29, %v4792_v10 }
0x2e5a   :  { %5647 = vtanh.f32 %v4798_v24 }
0x2e5b   :  { %5649 = vtanh.f32 %v4797_v48 }
0x2e67   :  { %v5648_v54 = vpop.eup %5647 }
0x2e68   :  { %v4803_v36 = vrot.slane %v5648_v54, 7  ;;  %v5650_v9 = vpop.eup %5649 }
0x2e6a   :  { %v4804_v6 = vsel %vm1139_vm5, %v4803_v36, %v5650_v9 }
0x2e6b   :  { %4807 = vst.msk [vmem:[#allocation3 + $0xe] sm:$0x3] %vm1060_vm3, %v4804_v6  ;;  %4808 = vst.msk [vmem:[#allocation19] sm:$0x3] %vm1060_vm3, %v4804_v6 }
0x2e6c   :  { %5838 = shalt.err (!%p5835_p2)
}
0x2e6d   :  { %5060 = dma.vmem_to_hbm [thread:$0]  %s5058_s24, 32, %s7179_s12, [#allocation20]  }
0x2e6e   :  { %s5847_s28 = scalar_lea.vmem %s5068_s26, 32  ;;  %p5852_p4 = scmp.lt.s32.totalorder %s5068_s26, %s5068_s26 }
0x2e6f   :  { %p5848_p3 = scmp.ne.s32.totalorder %s5068_s26, %s5847_s28  ;;  %p5853_p5 = scmp.lt.s32.totalorder %s5847_s28, %s5847_s28 }
0x2e71   :  { %p5854_p6 = por %p5853_p5, %p5852_p4 }
0x2e73   :  { %p5855_p7 = pnand %p5854_p6, %p5848_p3 }
0x2e75   :  { %5858 = shalt.err (!%p5855_p7)
}
0x2e76   :  { %5070 = dma.vmem_to_hbm [thread:$0]  %s5068_s26, 32, %s7180_s13, [#allocation20]   ;;  %v5133_v42 = vld.sshfl [vmem:[#allocation3 + $0xe] sm:$0x11 pattern:$0x75316420] }
0x2e77   :  { %s5922_s29 = smov [#allocation18]   ;;  %v5020_v51 = vcombine.high %v5133_v42, %v5133_v42  ;;  %v5027_v21 = vrot.slane %v5133_v42, %v6158_v43 }
0x2e78   :  { %s5044_s30 = sshll.u32 %s5922_s29, 4  ;;  %s5045_s30 = int_to_ptr.vmem [resolvable:$true] %s5044_s30 }
0x2e79   :  { %v5034_v53 = vrot.slane %v5020_v51, %v6158_v43  ;;  %5037 = vst.msk [vmem:[#allocation18 + $0x7] sm:$0x1] %vm4840_vm7, %v5027_v21  ;;  %s5867_s12 = scalar_lea.vmem %s5045_s30, 256  ;;  %p5872_p9 = scmp.lt.s32.totalorder %s5045_s30, %s5045_s30 }
0x2e7a   :  { %p5868_p8 = scmp.ne.s32.totalorder %s5045_s30, %s5867_s12  ;;  %p5873_p10 = scmp.lt.s32.totalorder %s5867_s12, %s5867_s12 }
0x2e7b   :  { %5038 = vst.msk [vmem:[#allocation18 + $0xf] sm:$0x1] %vm4840_vm7, %v5034_v53 }
0x2e7c   :  { %p5874_p11 = por %p5873_p10, %p5872_p9 }
0x2e7e   :  { %p5875_p12 = pnand %p5874_p11, %p5868_p8 }
0x2e80   :  { %5878 = shalt.err (!%p5875_p12)
}
0x2e81   :  { %5050 = dma.vmem_to_hbm [thread:$0]  %s5045_s30, 256, %s7178_s11, [#allocation6], %s5909_s0, %s5909_s0, %s5910_s19  }
0x2e82   :  { %5897 = dma.done.wait [#allocation6], 256  }
0x2e83   :  { %5898 = vsyncadd [#allocation6], 4294967040 }
0x2e84   :  { %5899 = dma.done.wait [#allocation20], 64  }
0x2e85   :  { %5900 = vsyncadd [#allocation20], 4294967232 }
0x2e86   :  { %5080 = vsyncpa [#allocation5], 1 }
0x2e87   :  { %5081 = vsyncpa [#allocation8], 1 }
0x2e88   :  { %5082 = vsyncpa [#allocation11], 1 }
0x2e89   :  { %5083 = vsyncpa [#allocation14], 1 }
0x2e8a   :  { %5084 = vsyncpa [#allocation17], 1 }
0x2e8b   :  { %5085 = vsyncpa [#allocation6], 1 }
0x2e8c   :  { %5086 = vsyncpa [#allocation20], 1 }

</bundles_post_ra>
